<compile_context>
chip_gen: v6e
topology: v6e:2x2x1
jax: 0.10.0
libtpu: 0.0.40
codegen_flags: <defaults>
</compile_context>

<pallas_src>
import numpy as np
import jax
import jax.numpy as jnp
from jax.experimental import pallas as pl
from jax.experimental.pallas import tpu as pltpu

# ------------------------- synthetic (reduced) config -----------------------

IN_CH = 3
STEM_OUT = 8
BLOCK_CFG = [
    dict(expand=1, cin=8,  cout=8,  stride=1),   # residual
    dict(expand=6, cin=8,  cout=16, stride=2),
    dict(expand=6, cin=16, cout=16, stride=1),   # residual
]
LAST_CONV = 32
NUM_LABELS = 10

N_BATCH = 2
IN_HW = 16

_PAD = 128   # lane-aligned left/right halo of the flattened-position scratch
_TAPS = [(dy, dx) for dy in (-1, 0, 1) for dx in (-1, 0, 1)]


# -------------- host-side constant helpers (built at trace time) ------------

def _stride2_select(n, h, w):
    """(n*h*w, n*(h//2)*(w//2)) 0/1 matrix selecting the stride-2 positions."""
    ho, wo = h // 2, w // 2
    s = np.zeros((n * h * w, n * ho * wo), np.float32)
    for nn in range(n):
        for io in range(ho):
            for jo in range(wo):
                q = nn * ho * wo + io * wo + jo
                p = nn * h * w + (2 * io) * w + (2 * jo)
                s[p, q] = 1.0
    return s


def _gap_matrix(n, hw):
    """(n*hw, n) matrix computing the per-image spatial mean (1/hw exact bf16)."""
    p = np.zeros((n * hw, n), np.float32)
    for nn in range(n):
        p[nn * hw:(nn + 1) * hw, nn] = 1.0 / hw
    return p


# ------------------------------- parameters ---------------------------------

def _fold_bn(key, c):
    kg, kb, km, kv = jax.random.split(key, 4)
    gamma = 1.0 + 0.1 * jax.random.normal(kg, (c,), jnp.float32)
    beta = 0.1 * jax.random.normal(kb, (c,), jnp.float32)
    mean = 0.1 * jax.random.normal(km, (c,), jnp.float32)
    var = 1.0 + 0.1 * jnp.abs(jax.random.normal(kv, (c,), jnp.float32))
    scale = gamma / jnp.sqrt(var + 1e-5)
    bias = beta - mean * scale
    return scale, bias


def init_params(key):
    """BN scale folded into conv weights; MXU matmul weights stored bf16,
    biases and depthwise (VPU-path) weights stay f32."""
    params = {}
    key, k = jax.random.split(key)
    w = 0.2 * jax.random.normal(k, (9, STEM_OUT, IN_CH), jnp.float32)
    key, k = jax.random.split(key)
    s, b = _fold_bn(k, STEM_OUT)
    params['stem_w'] = (w * s[None, :, None]).astype(jnp.bfloat16)
    params['stem_b'] = b.reshape(STEM_OUT, 1)

    blocks = []
    for cfg in BLOCK_CFG:
        hidden = cfg['cin'] * cfg['expand']
        p = {}
        if cfg['expand'] != 1:
            key, k = jax.random.split(key)
            w = 0.2 * jax.random.normal(k, (hidden, cfg['cin']), jnp.float32)
            key, k = jax.random.split(key)
            s, b = _fold_bn(k, hidden)
            p['expand_w'] = (w * s[:, None]).astype(jnp.bfloat16)
            p['expand_b'] = b.reshape(hidden, 1)
        key, k = jax.random.split(key)
        w = 0.2 * jax.random.normal(k, (9, hidden), jnp.float32)
        key, k = jax.random.split(key)
        s, b = _fold_bn(k, hidden)
        p['dw_w'] = (w * s[None, :]).reshape(9, hidden, 1)        # f32, VPU path
        p['dw_b'] = b.reshape(hidden, 1)
        key, k = jax.random.split(key)
        w = 0.2 * jax.random.normal(k, (cfg['cout'], hidden), jnp.float32)
        key, k = jax.random.split(key)
        s, b = _fold_bn(k, cfg['cout'])
        p['proj_w'] = (w * s[:, None]).astype(jnp.bfloat16)
        p['proj_b'] = b.reshape(cfg['cout'], 1)
        blocks.append(p)
    params['blocks'] = blocks

    key, k = jax.random.split(key)
    w = 0.2 * jax.random.normal(k, (LAST_CONV, BLOCK_CFG[-1]['cout']), jnp.float32)
    key, k = jax.random.split(key)
    s, b = _fold_bn(k, LAST_CONV)
    params['last_w'] = (w * s[:, None]).astype(jnp.bfloat16)
    params['last_b'] = b.reshape(LAST_CONV, 1)

    key, k = jax.random.split(key)
    params['cls_w'] = 0.2 * jax.random.normal(k, (NUM_LABELS, LAST_CONV), jnp.float32)
    key, k = jax.random.split(key)
    params['cls_b'] = 0.1 * jax.random.normal(k, (NUM_LABELS, 1), jnp.float32)
    return params


# --------------------------- operand slab packing ---------------------------

class _SlabPacker:
    """Packs many small 2-D operands into one (rows, width) slab so the kernel
    gets a single HBM->VMEM DMA instead of ~25 tiny descriptor-bound ones.
    Offsets are static Python ints -> in-kernel reads are zero-cost static
    slices of the slab ref."""

    def __init__(self, width, dtype, row_align):
        self.width, self.dtype, self.row_align = width, dtype, row_align
        self._pieces, self.offsets, self._rows = [], {}, 0

    def add(self, name, arr):
        arr = jnp.asarray(arr)
        r, c = arr.shape
        assert c <= self.width, (name, arr.shape)
        self.offsets[name] = (self._rows, r, c)
        pad_r = -(-r // self.row_align) * self.row_align
        piece = jnp.zeros((pad_r, self.width), self.dtype)
        piece = piece.at[:r, :c].set(arr.astype(self.dtype))
        self._pieces.append(piece)
        self._rows += pad_r

    def finalize(self):
        return jnp.concatenate(self._pieces, axis=0)


# ------------------------------ fused forward -------------------------------

def mobilenet_v2_logits(params, x_nchw):
    """MobileNetV2 logits; the whole network is one fused Pallas TPU kernel."""
    n, cin, h0, w0 = x_nchw.shape
    m0 = n * h0 * w0
    h1, w1 = h0 // 2, w0 // 2                      # after the stride-2 stem

    blk_hw = []
    ch, cw = h1, w1
    for cfg in BLOCK_CFG:
        hin, win = ch, cw
        if cfg['stride'] == 2:
            ch, cw = ch // 2, cw // 2
        blk_hw.append(((hin, win), (ch, cw)))
    hf, wf = ch, cw

    # NCHW -> lane-dense (C, M) with M = N*H*W flattened row-major.
    x_cm = jnp.transpose(x_nchw.astype(jnp.float32), (1, 0, 2, 3)).reshape(cin, m0)

    # ---- pack operands: one bf16 matmul-weight slab + one f32 column slab ---
    wp = _SlabPacker(width=128, dtype=jnp.bfloat16, row_align=16)
    fp = _SlabPacker(width=1, dtype=jnp.float32, row_align=8)

    # stem weights packed to (STEM_OUT, 27): column index = 3*tap + channel.
    wp.add('stem_w',
           jnp.transpose(params['stem_w'], (1, 0, 2)).reshape(STEM_OUT, 9 * IN_CH))
    wp.add('stem_S', _stride2_select(n, h0, w0))           # exact in bf16 (0/1)
    fp.add('stem_b', params['stem_b'])
    for bi, cfg in enumerate(BLOCK_CFG):
        p = params['blocks'][bi]
        hidden = cfg['cin'] * cfg['expand']
        (hin, win), _ = blk_hw[bi]
        if cfg['expand'] != 1:
            wp.add(f'b{bi}_exp_w', p['expand_w'])
            fp.add(f'b{bi}_exp_b', p['expand_b'])
        fp.add(f'b{bi}_dw_w', p['dw_w'].reshape(9 * hidden, 1))
        fp.add(f'b{bi}_dw_b', p['dw_b'])
        wp.add(f'b{bi}_proj_w', p['proj_w'])
        fp.add(f'b{bi}_proj_b', p['proj_b'])
        if cfg['stride'] == 2:
            wp.add(f'b{bi}_S', _stride2_select(n, hin, win))
    wp.add('last_w', params['last_w'])
    fp.add('last_b', params['last_b'])
    wp.add('gap_P', _gap_matrix(n, hf * wf))               # 1/16 exact in bf16
    fp.add('cls_b', params['cls_b'])
    wslab, woffs = wp.finalize(), wp.offsets
    fslab, foffs = fp.finalize(), fp.offsets

    # Zero-halo pad scratches (flattened positions) + stacked-tap stem scratch.
    scratch_shapes = [
        pltpu.VMEM((IN_CH, m0 + 2 * _PAD), jnp.float32),   # stem pad
        pltpu.VMEM((9 * IN_CH, m0), jnp.float32),          # stacked stem taps
    ]
    for bi, cfg in enumerate(BLOCK_CFG):
        hidden = cfg['cin'] * cfg['expand']
        (hin, win), _ = blk_hw[bi]
        scratch_shapes.append(
            pltpu.VMEM((hidden, n * hin * win + 2 * _PAD), jnp.float32))

    def kernel(x_ref, w_ref, f_ref, clsw_ref, o_ref, stem_pad, stem_stack,
               *blk_pads):
        bf16, f32 = jnp.bfloat16, jnp.float32

        def W(name):                           # bf16 slab slice (static offsets)
            off, r, c = woffs[name]
            return w_ref[off:off + r, 0:c]

        def F(name):                           # f32 column slab slice
            off, r, _ = foffs[name]
            return f_ref[off:off + r, :]

        def Fdw(name, k, hidden):              # tap k of a depthwise weight
            off, _, _ = foffs[name]
            return f_ref[off + k * hidden:off + (k + 1) * hidden, :]

        def boundary_masks(h, w, m):
            """Per-tap in-bounds masks from iota (H/W powers of two -> cheap)."""
            idx = jax.lax.broadcasted_iota(jnp.int32, (1, m), 1)
            if w & (w - 1) == 0:
                jj = idx & (w - 1)
                q = idx >> (w.bit_length() - 1)
            else:
                jj = idx % w
                q = idx // w
            ii = (q & (h - 1)) if (h & (h - 1) == 0) else (q % h)
            row = {-1: ii >= 1, 0: None, 1: ii <= h - 2}
            col = {-1: jj >= 1, 0: None, 1: jj <= w - 2}
            out = {}
            for dy, dx in _TAPS:
                cs = [c for c in (row[dy], col[dx]) if c is not None]
                if not cs:
                    out[(dy, dx)] = None
                elif len(cs) == 1:
                    out[(dy, dx)] = cs[0]
                else:
                    out[(dy, dx)] = jnp.logical_and(cs[0], cs[1])
            return out

        def fill_pad(pad_ref, val, m):
            # Only the halos need zeroing; the interior is fully overwritten.
            rows = pad_ref.shape[0]
            zeros = jnp.zeros((rows, _PAD), pad_ref.dtype)
            pad_ref[:, pl.ds(0, _PAD)] = zeros
            pad_ref[:, pl.ds(_PAD + m, _PAD)] = zeros
            pad_ref[:, pl.ds(_PAD, m)] = val

        def mm(wname, xval):
            """(Cout, Cin) @ (Cin, M): bf16 MXU operands, f32 accumulation."""
            return jnp.dot(W(wname), xval.astype(bf16), preferred_element_type=f32)

        # ---------- stem: 3x3 stride-2 conv (folded BN) + ReLU6 --------------
        fill_pad(stem_pad, x_ref[...], m0)
        masks = boundary_masks(h0, w0, m0)
        for k, (dy, dx) in enumerate(_TAPS):
            t = stem_pad[:, pl.ds(_PAD + dy * w0 + dx, m0)]
            mk = masks[(dy, dx)]
            if mk is not None:
                t = jnp.where(mk, t, 0.0)
            stem_stack[IN_CH * k:IN_CH * (k + 1), :] = t
        # Single K=27 MXU matmul over all 9 taps (accumulation stays in MXU).
        y = jnp.dot(W('stem_w'), stem_stack[...].astype(bf16),
                    preferred_element_type=f32)                    # (8, m0)
        # Stride-2 subsampling as a bf16 0/1 selection matmul.
        y = jnp.dot(y.astype(bf16), W('stem_S'), preferred_element_type=f32)
        act = jnp.clip(y + F('stem_b'), 0.0, 6.0)                  # (8, m1)

        # ---------- inverted residual blocks ----------------------------------
        for bi, cfg in enumerate(BLOCK_CFG):
            (hin, win), _ = blk_hw[bi]
            m_in = n * hin * win
            hidden = cfg['cin'] * cfg['expand']
            inp = act
            h = act
            if cfg['expand'] != 1:
                h = jnp.clip(mm(f'b{bi}_exp_w', h) + F(f'b{bi}_exp_b'), 0.0, 6.0)
            # depthwise 3x3: masked taps, 3 independent partial accumulators.
            fill_pad(blk_pads[bi], h, m_in)
            masks = boundary_masks(hin, win, m_in)
            parts = [None, None, None]
            for k, (dy, dx) in enumerate(_TAPS):
                t = blk_pads[bi][:, pl.ds(_PAD + dy * win + dx, m_in)]
                mk = masks[(dy, dx)]
                if mk is not None:
                    t = jnp.where(mk, t, 0.0)
                term = Fdw(f'b{bi}_dw_w', k, hidden) * t
                g = k % 3
                parts[g] = term if parts[g] is None else parts[g] + term
            h = (parts[0] + parts[1]) + parts[2]
            h = jnp.clip(h + F(f'b{bi}_dw_b'), 0.0, 6.0)
            # 1x1 linear projection BEFORE the stride-2 selection (they commute;
            # select then runs at Cout=16 instead of hidden=48, both bf16).
            h = mm(f'b{bi}_proj_w', h)
            if cfg['stride'] == 2:
                h = jnp.dot(h.astype(bf16), W(f'b{bi}_S'),
                            preferred_element_type=f32)
            h = h + F(f'b{bi}_proj_b')
            if cfg['stride'] == 1 and cfg['cin'] == cfg['cout']:
                h = h + inp
            act = h

        # TODO(synk): for the M<128 tail (block 2 onward, M=32) a (M, C) layout
        # flip would restore full lane utilization on the VPU; skipped at toy
        # shapes.

        # ---------- last 1x1 conv + ReLU6, GAP (bf16 matmul), classifier -----
        act = jnp.clip(mm('last_w', act) + F('last_b'), 0.0, 6.0)
        pooled = jnp.dot(act.astype(bf16), W('gap_P'),
                         preferred_element_type=f32)               # (LAST_CONV, N)
        # TODO(synk): HF MobileNetV2 applies Dropout before the classifier; identity in eval mode.
        logits_t = jnp.dot(clsw_ref[...], pooled,
                           preferred_element_type=f32) + F('cls_b')
        o_ref[...] = logits_t                                      # (NUM_LABELS, N)

    vmem = pl.BlockSpec(memory_space=pltpu.MemorySpace.VMEM)
    # TODO(synk): at real MobileNetV2 resolutions this single-shot kernel needs a
    # grid over M marked "parallel" (tiles sized for v7x's 64 MiB VMEM / two
    # TensorCores) and an explicit vmem_limit_bytes; unnecessary at these toy
    # shapes (~1.5 MiB of VMEM total).
    logits_t = pl.pallas_call(
        kernel,
        out_shape=jax.ShapeDtypeStruct((NUM_LABELS, n), jnp.float32),
        in_specs=[vmem] * 4,
        out_specs=vmem,
        scratch_shapes=scratch_shapes,
    )(x_cm, wslab, fslab, params['cls_w'])
    return logits_t.T                                              # (N, NUM_LABELS)


# ----------------------- pure-JAX reference (self-check) --------------------

def reference_logits(params, x_nchw):
    """XLA reference with the same folded weights and the same bf16-operand /
    f32-accumulate matmul arithmetic (incl. the exact bf16 rounding points of
    the kernel's bf16 selection / pooling matmuls)."""
    f32 = jnp.float32

    def r16(v):      # mirror the kernel's bf16 cast before select/GAP matmuls
        return v.astype(jnp.bfloat16).astype(f32)

    x = jnp.transpose(x_nchw.astype(f32), (0, 2, 3, 1))              # NHWC
    dn = ('NHWC', 'HWIO', 'NHWC')

    def conv(h, w_hwio, stride, groups=1):
        return jax.lax.conv_general_dilated(
            h, w_hwio, (stride, stride), ((1, 1), (1, 1)),
            dimension_numbers=dn, feature_group_count=groups,
            preferred_element_type=f32, precision=jax.lax.Precision.HIGHEST)

    def mm1x1(h, w_oc):
        return jnp.einsum('nhwc,oc->nhwo', h.astype(jnp.bfloat16), w_oc,
                          preferred_element_type=f32)

    w = params['stem_w'].astype(f32).reshape(3, 3, STEM_OUT, IN_CH)
    w = jnp.transpose(w, (0, 1, 3, 2)).astype(jnp.bfloat16)          # HWIO
    y = conv(x.astype(jnp.bfloat16), w, 2)
    y = jnp.clip(r16(y) + params['stem_b'][:, 0], 0.0, 6.0)

    for cfg, p in zip(BLOCK_CFG, params['blocks']):
        inp = y
        hidden = cfg['cin'] * cfg['expand']
        h = y
        if cfg['expand'] != 1:
            h = jnp.clip(mm1x1(h, p['expand_w']) + p['expand_b'][:, 0], 0.0, 6.0)
        wd = p['dw_w'][:, :, 0].astype(f32).reshape(3, 3, 1, hidden)
        h = jnp.clip(conv(h, wd, cfg['stride'], groups=hidden) + p['dw_b'][:, 0],
                     0.0, 6.0)
        h = mm1x1(h, p['proj_w'])
        if cfg['stride'] == 2:
            h = r16(h)          # kernel rounds proj output before its bf16 select
        h = h + p['proj_b'][:, 0]
        if cfg['stride'] == 1 and cfg['cin'] == cfg['cout']:
            h = h + inp
        y = h

    y = jnp.clip(mm1x1(y, params['last_w']) + params['last_b'][:, 0], 0.0, 6.0)
    pooled = jnp.mean(r16(y), axis=(1, 2))                           # (N, LAST_CONV)
    return pooled @ params['cls_w'].T + params['cls_b'][:, 0]


if __name__ == "__main__":
    key = jax.random.PRNGKey(0)
    kp, kx = jax.random.split(key)
    params = init_params(kp)
    x = jax.random.normal(kx, (N_BATCH, IN_CH, IN_HW, IN_HW), jnp.float32)  # NCHW

    logits = jax.jit(mobilenet_v2_logits)(params, x)
    jax.block_until_ready(logits)
    assert logits.shape == (N_BATCH, NUM_LABELS)
    assert logits.dtype == jnp.float32

    ref = jax.jit(reference_logits)(params, x)
    max_diff = float(jnp.max(jnp.abs(logits - ref)))
    assert jnp.allclose(logits, ref, rtol=3e-2, atol=3e-2), f"max |diff| = {max_diff}"
    print("KERNEL_OK")
</pallas_src>

<mosaic_0001>
module attributes {stable_mosaic.version = 11 : i64} {
  func.func @kernel(%arg0: memref<3x512xf32, #tpu.memory_space<vmem>>, %arg1: memref<912x128xbf16, #tpu.memory_space<vmem>>, %arg2: memref<1760x1xf32, #tpu.memory_space<vmem>>, %arg3: memref<10x32xf32, #tpu.memory_space<vmem>>, %arg4: memref<10x2xf32, #tpu.memory_space<vmem>>, %arg5: memref<3x768xf32, #tpu.memory_space<vmem>>, %arg6: memref<27x512xf32, #tpu.memory_space<vmem>>, %arg7: memref<8x384xf32, #tpu.memory_space<vmem>>, %arg8: memref<48x384xf32, #tpu.memory_space<vmem>>, %arg9: memref<96x288xf32, #tpu.memory_space<vmem>>) attributes {dimension_semantics = [], scalar_prefetch = 0 : i64, scratch_operands = 5 : i64, tpu.core_type = #tpu.core_type<tc>} {
    %c0 = arith.constant 0 : index
    %c0_0 = arith.constant 0 : index
    %0 = vector.load %arg0[%c0, %c0_0] : memref<3x512xf32, #tpu.memory_space<vmem>>, vector<3x512xf32>
    %cst = arith.constant 0.000000e+00 : f32
    %1 = vector.broadcast %cst : f32 to vector<3x128xf32>
    %c0_1 = arith.constant 0 : index
    %c0_2 = arith.constant 0 : index
    %2 = vector.load %arg5[%c0_1, %c0_2] : memref<3x768xf32, #tpu.memory_space<vmem>>, vector<3x128xf32>
    tpu.vector_store %arg5[%c0_1, %c0_2], %1 {strides = array<i32>} : memref<3x768xf32, #tpu.memory_space<vmem>>, vector<3x128xf32>,
    %c0_3 = arith.constant 0 : index
    %c640 = arith.constant 640 : index
    %3 = vector.load %arg5[%c0_3, %c640] : memref<3x768xf32, #tpu.memory_space<vmem>>, vector<3x128xf32>
    tpu.vector_store %arg5[%c0_3, %c640], %1 {strides = array<i32>} : memref<3x768xf32, #tpu.memory_space<vmem>>, vector<3x128xf32>,
    %c0_4 = arith.constant 0 : index
    %c128 = arith.constant 128 : index
    %4 = vector.load %arg5[%c0_4, %c128] : memref<3x768xf32, #tpu.memory_space<vmem>>, vector<3x512xf32>
    tpu.vector_store %arg5[%c0_4, %c128], %0 {strides = array<i32>} : memref<3x768xf32, #tpu.memory_space<vmem>>, vector<3x512xf32>,
    %5 = tpu.iota {dimensions = array<i32: 1>} : vector<1x512xi32>
    %c15_i32 = arith.constant 15 : i32
    %6 = vector.broadcast %c15_i32 : i32 to vector<1x512xi32>
    %7 = arith.andi %5, %6 : vector<1x512xi32>
    %c4_i32 = arith.constant 4 : i32
    %8 = vector.broadcast %c4_i32 : i32 to vector<1x512xi32>
    %9 = arith.shrsi %5, %8 : vector<1x512xi32>
    %c15_i32_5 = arith.constant 15 : i32
    %10 = vector.broadcast %c15_i32_5 : i32 to vector<1x512xi32>
    %11 = arith.andi %9, %10 : vector<1x512xi32>
    %c1_i32 = arith.constant 1 : i32
    %12 = vector.broadcast %c1_i32 : i32 to vector<1x512xi32>
    %13 = arith.cmpi sge, %11, %12 : vector<1x512xi32>
    %c14_i32 = arith.constant 14 : i32
    %14 = vector.broadcast %c14_i32 : i32 to vector<1x512xi32>
    %15 = arith.cmpi sle, %11, %14 : vector<1x512xi32>
    %c1_i32_6 = arith.constant 1 : i32
    %16 = vector.broadcast %c1_i32_6 : i32 to vector<1x512xi32>
    %17 = arith.cmpi sge, %7, %16 : vector<1x512xi32>
    %c14_i32_7 = arith.constant 14 : i32
    %18 = vector.broadcast %c14_i32_7 : i32 to vector<1x512xi32>
    %19 = arith.cmpi sle, %7, %18 : vector<1x512xi32>
    %20 = arith.andi %13, %17 : vector<1x512xi1>
    %21 = arith.andi %13, %19 : vector<1x512xi1>
    %22 = arith.andi %15, %17 : vector<1x512xi1>
    %23 = arith.andi %15, %19 : vector<1x512xi1>
    %c0_8 = arith.constant 0 : index
    %c111 = arith.constant 111 : index
    %24 = vector.load %arg5[%c0_8, %c111] : memref<3x768xf32, #tpu.memory_space<vmem>>, vector<3x512xf32>
    %cst_9 = arith.constant 0.000000e+00 : f32
    %25 = vector.shape_cast %20 : vector<1x512xi1> to vector<1x512xi1>
    %26 = vector.broadcast %25 : vector<1x512xi1> to vector<3x512xi1>
    %27 = vector.broadcast %cst_9 : f32 to vector<3x512xf32>
    %28 = arith.select %26, %24, %27 : vector<3x512xi1>, vector<3x512xf32>
    %c0_10 = arith.constant 0 : index
    %c0_11 = arith.constant 0 : index
    %29 = vector.load %arg6[%c0_10, %c0_11] : memref<27x512xf32, #tpu.memory_space<vmem>>, vector<3x512xf32>
    tpu.vector_store %arg6[%c0_10, %c0_11], %28 {strides = array<i32>} : memref<27x512xf32, #tpu.memory_space<vmem>>, vector<3x512xf32>,
    %c0_12 = arith.constant 0 : index
    %c112 = arith.constant 112 : index
    %30 = vector.load %arg5[%c0_12, %c112] : memref<3x768xf32, #tpu.memory_space<vmem>>, vector<3x512xf32>
    %cst_13 = arith.constant 0.000000e+00 : f32
    %31 = vector.shape_cast %13 : vector<1x512xi1> to vector<1x512xi1>
    %32 = vector.broadcast %31 : vector<1x512xi1> to vector<3x512xi1>
    %33 = vector.broadcast %cst_13 : f32 to vector<3x512xf32>
    %34 = arith.select %32, %30, %33 : vector<3x512xi1>, vector<3x512xf32>
    %c3 = arith.constant 3 : index
    %c0_14 = arith.constant 0 : index
    %35 = vector.load %arg6[%c3, %c0_14] : memref<27x512xf32, #tpu.memory_space<vmem>>, vector<3x512xf32>
    tpu.vector_store %arg6[%c3, %c0_14], %34 {strides = array<i32>} : memref<27x512xf32, #tpu.memory_space<vmem>>, vector<3x512xf32>,
    %c0_15 = arith.constant 0 : index
    %c113 = arith.constant 113 : index
    %36 = vector.load %arg5[%c0_15, %c113] : memref<3x768xf32, #tpu.memory_space<vmem>>, vector<3x512xf32>
    %cst_16 = arith.constant 0.000000e+00 : f32
    %37 = vector.shape_cast %21 : vector<1x512xi1> to vector<1x512xi1>
    %38 = vector.broadcast %37 : vector<1x512xi1> to vector<3x512xi1>
    %39 = vector.broadcast %cst_16 : f32 to vector<3x512xf32>
    %40 = arith.select %38, %36, %39 : vector<3x512xi1>, vector<3x512xf32>
    %c6 = arith.constant 6 : index
    %c0_17 = arith.constant 0 : index
    %41 = vector.load %arg6[%c6, %c0_17] : memref<27x512xf32, #tpu.memory_space<vmem>>, vector<3x512xf32>
    tpu.vector_store %arg6[%c6, %c0_17], %40 {strides = array<i32>} : memref<27x512xf32, #tpu.memory_space<vmem>>, vector<3x512xf32>,
    %c0_18 = arith.constant 0 : index
    %c127 = arith.constant 127 : index
    %42 = vector.load %arg5[%c0_18, %c127] : memref<3x768xf32, #tpu.memory_space<vmem>>, vector<3x512xf32>
    %cst_19 = arith.constant 0.000000e+00 : f32
    %43 = vector.shape_cast %17 : vector<1x512xi1> to vector<1x512xi1>
    %44 = vector.broadcast %43 : vector<1x512xi1> to vector<3x512xi1>
    %45 = vector.broadcast %cst_19 : f32 to vector<3x512xf32>
    %46 = arith.select %44, %42, %45 : vector<3x512xi1>, vector<3x512xf32>
    %c9 = arith.constant 9 : index
    %c0_20 = arith.constant 0 : index
    %47 = vector.load %arg6[%c9, %c0_20] : memref<27x512xf32, #tpu.memory_space<vmem>>, vector<3x512xf32>
    tpu.vector_store %arg6[%c9, %c0_20], %46 {strides = array<i32>} : memref<27x512xf32, #tpu.memory_space<vmem>>, vector<3x512xf32>,
    %c0_21 = arith.constant 0 : index
    %c128_22 = arith.constant 128 : index
    %48 = vector.load %arg5[%c0_21, %c128_22] : memref<3x768xf32, #tpu.memory_space<vmem>>, vector<3x512xf32>
    %c12 = arith.constant 12 : index
    %c0_23 = arith.constant 0 : index
    %49 = vector.load %arg6[%c12, %c0_23] : memref<27x512xf32, #tpu.memory_space<vmem>>, vector<3x512xf32>
    tpu.vector_store %arg6[%c12, %c0_23], %48 {strides = array<i32>} : memref<27x512xf32, #tpu.memory_space<vmem>>, vector<3x512xf32>,
    %c0_24 = arith.constant 0 : index
    %c129 = arith.constant 129 : index
    %50 = vector.load %arg5[%c0_24, %c129] : memref<3x768xf32, #tpu.memory_space<vmem>>, vector<3x512xf32>
    %cst_25 = arith.constant 0.000000e+00 : f32
    %51 = vector.shape_cast %19 : vector<1x512xi1> to vector<1x512xi1>
    %52 = vector.broadcast %51 : vector<1x512xi1> to vector<3x512xi1>
    %53 = vector.broadcast %cst_25 : f32 to vector<3x512xf32>
    %54 = arith.select %52, %50, %53 : vector<3x512xi1>, vector<3x512xf32>
    %c15 = arith.constant 15 : index
    %c0_26 = arith.constant 0 : index
    %55 = vector.load %arg6[%c15, %c0_26] : memref<27x512xf32, #tpu.memory_space<vmem>>, vector<3x512xf32>
    tpu.vector_store %arg6[%c15, %c0_26], %54 {strides = array<i32>} : memref<27x512xf32, #tpu.memory_space<vmem>>, vector<3x512xf32>,
    %c0_27 = arith.constant 0 : index
    %c143 = arith.constant 143 : index
    %56 = vector.load %arg5[%c0_27, %c143] : memref<3x768xf32, #tpu.memory_space<vmem>>, vector<3x512xf32>
    %cst_28 = arith.constant 0.000000e+00 : f32
    %57 = vector.shape_cast %22 : vector<1x512xi1> to vector<1x512xi1>
    %58 = vector.broadcast %57 : vector<1x512xi1> to vector<3x512xi1>
    %59 = vector.broadcast %cst_28 : f32 to vector<3x512xf32>
    %60 = arith.select %58, %56, %59 : vector<3x512xi1>, vector<3x512xf32>
    %c18 = arith.constant 18 : index
    %c0_29 = arith.constant 0 : index
    %61 = vector.load %arg6[%c18, %c0_29] : memref<27x512xf32, #tpu.memory_space<vmem>>, vector<3x512xf32>
    tpu.vector_store %arg6[%c18, %c0_29], %60 {strides = array<i32>} : memref<27x512xf32, #tpu.memory_space<vmem>>, vector<3x512xf32>,
    %c0_30 = arith.constant 0 : index
    %c144 = arith.constant 144 : index
    %62 = vector.load %arg5[%c0_30, %c144] : memref<3x768xf32, #tpu.memory_space<vmem>>, vector<3x512xf32>
    %cst_31 = arith.constant 0.000000e+00 : f32
    %63 = vector.shape_cast %15 : vector<1x512xi1> to vector<1x512xi1>
    %64 = vector.broadcast %63 : vector<1x512xi1> to vector<3x512xi1>
    %65 = vector.broadcast %cst_31 : f32 to vector<3x512xf32>
    %66 = arith.select %64, %62, %65 : vector<3x512xi1>, vector<3x512xf32>
    %c21 = arith.constant 21 : index
    %c0_32 = arith.constant 0 : index
    %67 = vector.load %arg6[%c21, %c0_32] : memref<27x512xf32, #tpu.memory_space<vmem>>, vector<3x512xf32>
    tpu.vector_store %arg6[%c21, %c0_32], %66 {strides = array<i32>} : memref<27x512xf32, #tpu.memory_space<vmem>>, vector<3x512xf32>,
    %c0_33 = arith.constant 0 : index
    %c145 = arith.constant 145 : index
    %68 = vector.load %arg5[%c0_33, %c145] : memref<3x768xf32, #tpu.memory_space<vmem>>, vector<3x512xf32>
    %cst_34 = arith.constant 0.000000e+00 : f32
    %69 = vector.shape_cast %23 : vector<1x512xi1> to vector<1x512xi1>
    %70 = vector.broadcast %69 : vector<1x512xi1> to vector<3x512xi1>
    %71 = vector.broadcast %cst_34 : f32 to vector<3x512xf32>
    %72 = arith.select %70, %68, %71 : vector<3x512xi1>, vector<3x512xf32>
    %c24 = arith.constant 24 : index
    %c0_35 = arith.constant 0 : index
    %73 = vector.load %arg6[%c24, %c0_35] : memref<27x512xf32, #tpu.memory_space<vmem>>, vector<3x512xf32>
    tpu.vector_store %arg6[%c24, %c0_35], %72 {strides = array<i32>} : memref<27x512xf32, #tpu.memory_space<vmem>>, vector<3x512xf32>,
    %c0_36 = arith.constant 0 : index
    %c0_37 = arith.constant 0 : index
    %74 = vector.load %arg1[%c0_36, %c0_37] : memref<912x128xbf16, #tpu.memory_space<vmem>>, vector<8x27xbf16>
    %c0_38 = arith.constant 0 : index
    %c0_39 = arith.constant 0 : index
    %75 = vector.load %arg6[%c0_38, %c0_39] : memref<27x512xf32, #tpu.memory_space<vmem>>, vector<27x512xf32>
    %76 = arith.truncf %75 : vector<27x512xf32> to vector<27x512xbf16>
    %cst_40 = arith.constant dense<0.000000e+00> : vector<8x512xf32>
    %77 = tpu.matmul %74, %76, %cst_40 {dimension_numbers = #tpu.dot_dimension_numbers<[1], [0], [0], [1], [0, 0, 1, 1], [], []>} : vector<8x27xbf16>, vector<27x512xbf16>, vector<8x512xf32> -> vector<8x512xf32>
    %78 = arith.truncf %77 : vector<8x512xf32> to vector<8x512xbf16>
    %c16 = arith.constant 16 : index
    %c0_41 = arith.constant 0 : index
    %79 = vector.load %arg1[%c16, %c0_41] : memref<912x128xbf16, #tpu.memory_space<vmem>>, vector<512x128xbf16>
    %cst_42 = arith.constant dense<0.000000e+00> : vector<8x128xf32>
    %80 = tpu.matmul %78, %79, %cst_42 {dimension_numbers = #tpu.dot_dimension_numbers<[1], [0], [0], [1], [0, 0, 1, 1], [], []>} : vector<8x512xbf16>, vector<512x128xbf16>, vector<8x128xf32> -> vector<8x128xf32>
    %c0_43 = arith.constant 0 : index
    %c0_44 = arith.constant 0 : index
    %81 = vector.load %arg2[%c0_43, %c0_44] : memref<1760x1xf32, #tpu.memory_space<vmem>>, vector<8x1xf32>
    %82 = vector.broadcast %81 : vector<8x1xf32> to vector<8x128xf32>
    %83 = arith.addf %80, %82 : vector<8x128xf32>
    %cst_45 = arith.constant 0.000000e+00 : f32
    %cst_46 = arith.constant 6.000000e+00 : f32
    %84 = vector.broadcast %cst_45 : f32 to vector<8x128xf32>
    %85 = arith.maximumf %84, %83 : vector<8x128xf32>
    %86 = vector.broadcast %cst_46 : f32 to vector<8x128xf32>
    %87 = arith.minimumf %86, %85 : vector<8x128xf32>
    %cst_47 = arith.constant 0.000000e+00 : f32
    %88 = vector.broadcast %cst_47 : f32 to vector<8x128xf32>
    %c0_48 = arith.constant 0 : index
    %c0_49 = arith.constant 0 : index
    %89 = vector.load %arg7[%c0_48, %c0_49] : memref<8x384xf32, #tpu.memory_space<vmem>>, vector<8x128xf32>
    tpu.vector_store %arg7[%c0_48, %c0_49], %88 {strides = array<i32>} : memref<8x384xf32, #tpu.memory_space<vmem>>, vector<8x128xf32>,
    %c0_50 = arith.constant 0 : index
    %c256 = arith.constant 256 : index
    %90 = vector.load %arg7[%c0_50, %c256] : memref<8x384xf32, #tpu.memory_space<vmem>>, vector<8x128xf32>
    tpu.vector_store %arg7[%c0_50, %c256], %88 {strides = array<i32>} : memref<8x384xf32, #tpu.memory_space<vmem>>, vector<8x128xf32>,
    %c0_51 = arith.constant 0 : index
    %c128_52 = arith.constant 128 : index
    %91 = vector.load %arg7[%c0_51, %c128_52] : memref<8x384xf32, #tpu.memory_space<vmem>>, vector<8x128xf32>
    tpu.vector_store %arg7[%c0_51, %c128_52], %87 {strides = array<i32>} : memref<8x384xf32, #tpu.memory_space<vmem>>, vector<8x128xf32>,
    %92 = tpu.iota {dimensions = array<i32: 1>} : vector<1x128xi32>
    %c7_i32 = arith.constant 7 : i32
    %93 = vector.broadcast %c7_i32 : i32 to vector<1x128xi32>
    %94 = arith.andi %92, %93 : vector<1x128xi32>
    %c3_i32 = arith.constant 3 : i32
    %95 = vector.broadcast %c3_i32 : i32 to vector<1x128xi32>
    %96 = arith.shrsi %92, %95 : vector<1x128xi32>
    %c7_i32_53 = arith.constant 7 : i32
    %97 = vector.broadcast %c7_i32_53 : i32 to vector<1x128xi32>
    %98 = arith.andi %96, %97 : vector<1x128xi32>
    %c1_i32_54 = arith.constant 1 : i32
    %99 = vector.broadcast %c1_i32_54 : i32 to vector<1x128xi32>
    %100 = arith.cmpi sge, %98, %99 : vector<1x128xi32>
    %c6_i32 = arith.constant 6 : i32
    %101 = vector.broadcast %c6_i32 : i32 to vector<1x128xi32>
    %102 = arith.cmpi sle, %98, %101 : vector<1x128xi32>
    %c1_i32_55 = arith.constant 1 : i32
    %103 = vector.broadcast %c1_i32_55 : i32 to vector<1x128xi32>
    %104 = arith.cmpi sge, %94, %103 : vector<1x128xi32>
    %c6_i32_56 = arith.constant 6 : i32
    %105 = vector.broadcast %c6_i32_56 : i32 to vector<1x128xi32>
    %106 = arith.cmpi sle, %94, %105 : vector<1x128xi32>
    %107 = arith.andi %100, %104 : vector<1x128xi1>
    %108 = arith.andi %100, %106 : vector<1x128xi1>
    %109 = arith.andi %102, %104 : vector<1x128xi1>
    %110 = arith.andi %102, %106 : vector<1x128xi1>
    %c0_57 = arith.constant 0 : index
    %c119 = arith.constant 119 : index
    %111 = vector.load %arg7[%c0_57, %c119] : memref<8x384xf32, #tpu.memory_space<vmem>>, vector<8x128xf32>
    %cst_58 = arith.constant 0.000000e+00 : f32
    %112 = vector.shape_cast %107 : vector<1x128xi1> to vector<1x128xi1>
    %113 = vector.broadcast %112 : vector<1x128xi1> to vector<8x128xi1>
    %114 = vector.broadcast %cst_58 : f32 to vector<8x128xf32>
    %115 = arith.select %113, %111, %114 : vector<8x128xi1>, vector<8x128xf32>
    %c8 = arith.constant 8 : index
    %c0_59 = arith.constant 0 : index
    %116 = vector.load %arg2[%c8, %c0_59] : memref<1760x1xf32, #tpu.memory_space<vmem>>, vector<8x1xf32>
    %117 = vector.broadcast %116 : vector<8x1xf32> to vector<8x128xf32>
    %118 = arith.mulf %117, %115 : vector<8x128xf32>
    %c0_60 = arith.constant 0 : index
    %c120 = arith.constant 120 : index
    %119 = vector.load %arg7[%c0_60, %c120] : memref<8x384xf32, #tpu.memory_space<vmem>>, vector<8x128xf32>
    %cst_61 = arith.constant 0.000000e+00 : f32
    %120 = vector.shape_cast %100 : vector<1x128xi1> to vector<1x128xi1>
    %121 = vector.broadcast %120 : vector<1x128xi1> to vector<8x128xi1>
    %122 = vector.broadcast %cst_61 : f32 to vector<8x128xf32>
    %123 = arith.select %121, %119, %122 : vector<8x128xi1>, vector<8x128xf32>
    %c16_62 = arith.constant 16 : index
    %c0_63 = arith.constant 0 : index
    %124 = vector.load %arg2[%c16_62, %c0_63] : memref<1760x1xf32, #tpu.memory_space<vmem>>, vector<8x1xf32>
    %125 = vector.broadcast %124 : vector<8x1xf32> to vector<8x128xf32>
    %126 = arith.mulf %125, %123 : vector<8x128xf32>
    %c0_64 = arith.constant 0 : index
    %c121 = arith.constant 121 : index
    %127 = vector.load %arg7[%c0_64, %c121] : memref<8x384xf32, #tpu.memory_space<vmem>>, vector<8x128xf32>
    %cst_65 = arith.constant 0.000000e+00 : f32
    %128 = vector.shape_cast %108 : vector<1x128xi1> to vector<1x128xi1>
    %129 = vector.broadcast %128 : vector<1x128xi1> to vector<8x128xi1>
    %130 = vector.broadcast %cst_65 : f32 to vector<8x128xf32>
    %131 = arith.select %129, %127, %130 : vector<8x128xi1>, vector<8x128xf32>
    %c24_66 = arith.constant 24 : index
    %c0_67 = arith.constant 0 : index
    %132 = vector.load %arg2[%c24_66, %c0_67] : memref<1760x1xf32, #tpu.memory_space<vmem>>, vector<8x1xf32>
    %133 = vector.broadcast %132 : vector<8x1xf32> to vector<8x128xf32>
    %134 = arith.mulf %133, %131 : vector<8x128xf32>
    %c0_68 = arith.constant 0 : index
    %c127_69 = arith.constant 127 : index
    %135 = vector.load %arg7[%c0_68, %c127_69] : memref<8x384xf32, #tpu.memory_space<vmem>>, vector<8x128xf32>
    %cst_70 = arith.constant 0.000000e+00 : f32
    %136 = vector.shape_cast %104 : vector<1x128xi1> to vector<1x128xi1>
    %137 = vector.broadcast %136 : vector<1x128xi1> to vector<8x128xi1>
    %138 = vector.broadcast %cst_70 : f32 to vector<8x128xf32>
    %139 = arith.select %137, %135, %138 : vector<8x128xi1>, vector<8x128xf32>
    %c32 = arith.constant 32 : index
    %c0_71 = arith.constant 0 : index
    %140 = vector.load %arg2[%c32, %c0_71] : memref<1760x1xf32, #tpu.memory_space<vmem>>, vector<8x1xf32>
    %141 = vector.broadcast %140 : vector<8x1xf32> to vector<8x128xf32>
    %142 = arith.mulf %141, %139 : vector<8x128xf32>
    %143 = arith.addf %118, %142 : vector<8x128xf32>
    %c0_72 = arith.constant 0 : index
    %c128_73 = arith.constant 128 : index
    %144 = vector.load %arg7[%c0_72, %c128_73] : memref<8x384xf32, #tpu.memory_space<vmem>>, vector<8x128xf32>
    %c40 = arith.constant 40 : index
    %c0_74 = arith.constant 0 : index
    %145 = vector.load %arg2[%c40, %c0_74] : memref<1760x1xf32, #tpu.memory_space<vmem>>, vector<8x1xf32>
    %146 = vector.broadcast %145 : vector<8x1xf32> to vector<8x128xf32>
    %147 = arith.mulf %146, %144 : vector<8x128xf32>
    %148 = arith.addf %126, %147 : vector<8x128xf32>
    %c0_75 = arith.constant 0 : index
    %c129_76 = arith.constant 129 : index
    %149 = vector.load %arg7[%c0_75, %c129_76] : memref<8x384xf32, #tpu.memory_space<vmem>>, vector<8x128xf32>
    %cst_77 = arith.constant 0.000000e+00 : f32
    %150 = vector.shape_cast %106 : vector<1x128xi1> to vector<1x128xi1>
    %151 = vector.broadcast %150 : vector<1x128xi1> to vector<8x128xi1>
    %152 = vector.broadcast %cst_77 : f32 to vector<8x128xf32>
    %153 = arith.select %151, %149, %152 : vector<8x128xi1>, vector<8x128xf32>
    %c48 = arith.constant 48 : index
    %c0_78 = arith.constant 0 : index
    %154 = vector.load %arg2[%c48, %c0_78] : memref<1760x1xf32, #tpu.memory_space<vmem>>, vector<8x1xf32>
    %155 = vector.broadcast %154 : vector<8x1xf32> to vector<8x128xf32>
    %156 = arith.mulf %155, %153 : vector<8x128xf32>
    %157 = arith.addf %134, %156 : vector<8x128xf32>
    %c0_79 = arith.constant 0 : index
    %c135 = arith.constant 135 : index
    %158 = vector.load %arg7[%c0_79, %c135] : memref<8x384xf32, #tpu.memory_space<vmem>>, vector<8x128xf32>
    %cst_80 = arith.constant 0.000000e+00 : f32
    %159 = vector.shape_cast %109 : vector<1x128xi1> to vector<1x128xi1>
    %160 = vector.broadcast %159 : vector<1x128xi1> to vector<8x128xi1>
    %161 = vector.broadcast %cst_80 : f32 to vector<8x128xf32>
    %162 = arith.select %160, %158, %161 : vector<8x128xi1>, vector<8x128xf32>
    %c56 = arith.constant 56 : index
    %c0_81 = arith.constant 0 : index
    %163 = vector.load %arg2[%c56, %c0_81] : memref<1760x1xf32, #tpu.memory_space<vmem>>, vector<8x1xf32>
    %164 = vector.broadcast %163 : vector<8x1xf32> to vector<8x128xf32>
    %165 = arith.mulf %164, %162 : vector<8x128xf32>
    %166 = arith.addf %143, %165 : vector<8x128xf32>
    %c0_82 = arith.constant 0 : index
    %c136 = arith.constant 136 : index
    %167 = vector.load %arg7[%c0_82, %c136] : memref<8x384xf32, #tpu.memory_space<vmem>>, vector<8x128xf32>
    %cst_83 = arith.constant 0.000000e+00 : f32
    %168 = vector.shape_cast %102 : vector<1x128xi1> to vector<1x128xi1>
    %169 = vector.broadcast %168 : vector<1x128xi1> to vector<8x128xi1>
    %170 = vector.broadcast %cst_83 : f32 to vector<8x128xf32>
    %171 = arith.select %169, %167, %170 : vector<8x128xi1>, vector<8x128xf32>
    %c64 = arith.constant 64 : index
    %c0_84 = arith.constant 0 : index
    %172 = vector.load %arg2[%c64, %c0_84] : memref<1760x1xf32, #tpu.memory_space<vmem>>, vector<8x1xf32>
    %173 = vector.broadcast %172 : vector<8x1xf32> to vector<8x128xf32>
    %174 = arith.mulf %173, %171 : vector<8x128xf32>
    %175 = arith.addf %148, %174 : vector<8x128xf32>
    %c0_85 = arith.constant 0 : index
    %c137 = arith.constant 137 : index
    %176 = vector.load %arg7[%c0_85, %c137] : memref<8x384xf32, #tpu.memory_space<vmem>>, vector<8x128xf32>
    %cst_86 = arith.constant 0.000000e+00 : f32
    %177 = vector.shape_cast %110 : vector<1x128xi1> to vector<1x128xi1>
    %178 = vector.broadcast %177 : vector<1x128xi1> to vector<8x128xi1>
    %179 = vector.broadcast %cst_86 : f32 to vector<8x128xf32>
    %180 = arith.select %178, %176, %179 : vector<8x128xi1>, vector<8x128xf32>
    %c72 = arith.constant 72 : index
    %c0_87 = arith.constant 0 : index
    %181 = vector.load %arg2[%c72, %c0_87] : memref<1760x1xf32, #tpu.memory_space<vmem>>, vector<8x1xf32>
    %182 = vector.broadcast %181 : vector<8x1xf32> to vector<8x128xf32>
    %183 = arith.mulf %182, %180 : vector<8x128xf32>
    %184 = arith.addf %157, %183 : vector<8x128xf32>
    %185 = arith.addf %166, %175 : vector<8x128xf32>
    %186 = arith.addf %185, %184 : vector<8x128xf32>
    %c80 = arith.constant 80 : index
    %c0_88 = arith.constant 0 : index
    %187 = vector.load %arg2[%c80, %c0_88] : memref<1760x1xf32, #tpu.memory_space<vmem>>, vector<8x1xf32>
    %188 = vector.broadcast %187 : vector<8x1xf32> to vector<8x128xf32>
    %189 = arith.addf %186, %188 : vector<8x128xf32>
    %cst_89 = arith.constant 0.000000e+00 : f32
    %cst_90 = arith.constant 6.000000e+00 : f32
    %190 = vector.broadcast %cst_89 : f32 to vector<8x128xf32>
    %191 = arith.maximumf %190, %189 : vector<8x128xf32>
    %192 = vector.broadcast %cst_90 : f32 to vector<8x128xf32>
    %193 = arith.minimumf %192, %191 : vector<8x128xf32>
    %c528 = arith.constant 528 : index
    %c0_91 = arith.constant 0 : index
    %194 = vector.load %arg1[%c528, %c0_91] : memref<912x128xbf16, #tpu.memory_space<vmem>>, vector<8x8xbf16>
    %195 = arith.truncf %193 : vector<8x128xf32> to vector<8x128xbf16>
    %cst_92 = arith.constant dense<0.000000e+00> : vector<8x128xf32>
    %196 = tpu.matmul %194, %195, %cst_92 {dimension_numbers = #tpu.dot_dimension_numbers<[1], [0], [0], [1], [0, 0, 1, 1], [], []>} : vector<8x8xbf16>, vector<8x128xbf16>, vector<8x128xf32> -> vector<8x128xf32>
    %c88 = arith.constant 88 : index
    %c0_93 = arith.constant 0 : index
    %197 = vector.load %arg2[%c88, %c0_93] : memref<1760x1xf32, #tpu.memory_space<vmem>>, vector<8x1xf32>
    %198 = vector.broadcast %197 : vector<8x1xf32> to vector<8x128xf32>
    %199 = arith.addf %196, %198 : vector<8x128xf32>
    %200 = arith.addf %199, %87 : vector<8x128xf32>
    %c544 = arith.constant 544 : index
    %c0_94 = arith.constant 0 : index
    %201 = vector.load %arg1[%c544, %c0_94] : memref<912x128xbf16, #tpu.memory_space<vmem>>, vector<48x8xbf16>
    %202 = arith.truncf %200 : vector<8x128xf32> to vector<8x128xbf16>
    %cst_95 = arith.constant dense<0.000000e+00> : vector<48x128xf32>
    %203 = tpu.matmul %201, %202, %cst_95 {dimension_numbers = #tpu.dot_dimension_numbers<[1], [0], [0], [1], [0, 0, 1, 1], [], []>} : vector<48x8xbf16>, vector<8x128xbf16>, vector<48x128xf32> -> vector<48x128xf32>
    %c96 = arith.constant 96 : index
    %c0_96 = arith.constant 0 : index
    %204 = vector.load %arg2[%c96, %c0_96] : memref<1760x1xf32, #tpu.memory_space<vmem>>, vector<48x1xf32>
    %205 = vector.broadcast %204 : vector<48x1xf32> to vector<48x128xf32>
    %206 = arith.addf %203, %205 : vector<48x128xf32>
    %cst_97 = arith.constant 0.000000e+00 : f32
    %cst_98 = arith.constant 6.000000e+00 : f32
    %207 = vector.broadcast %cst_97 : f32 to vector<48x128xf32>
    %208 = arith.maximumf %207, %206 : vector<48x128xf32>
    %209 = vector.broadcast %cst_98 : f32 to vector<48x128xf32>
    %210 = arith.minimumf %209, %208 : vector<48x128xf32>
    %cst_99 = arith.constant 0.000000e+00 : f32
    %211 = vector.broadcast %cst_99 : f32 to vector<48x128xf32>
    %c0_100 = arith.constant 0 : index
    %c0_101 = arith.constant 0 : index
    %212 = vector.load %arg8[%c0_100, %c0_101] : memref<48x384xf32, #tpu.memory_space<vmem>>, vector<48x128xf32>
    tpu.vector_store %arg8[%c0_100, %c0_101], %211 {strides = array<i32>} : memref<48x384xf32, #tpu.memory_space<vmem>>, vector<48x128xf32>,
    %c0_102 = arith.constant 0 : index
    %c256_103 = arith.constant 256 : index
    %213 = vector.load %arg8[%c0_102, %c256_103] : memref<48x384xf32, #tpu.memory_space<vmem>>, vector<48x128xf32>
    tpu.vector_store %arg8[%c0_102, %c256_103], %211 {strides = array<i32>} : memref<48x384xf32, #tpu.memory_space<vmem>>, vector<48x128xf32>,
    %c0_104 = arith.constant 0 : index
    %c128_105 = arith.constant 128 : index
    %214 = vector.load %arg8[%c0_104, %c128_105] : memref<48x384xf32, #tpu.memory_space<vmem>>, vector<48x128xf32>
    tpu.vector_store %arg8[%c0_104, %c128_105], %210 {strides = array<i32>} : memref<48x384xf32, #tpu.memory_space<vmem>>, vector<48x128xf32>,
    %215 = tpu.iota {dimensions = array<i32: 1>} : vector<1x128xi32>
    %c7_i32_106 = arith.constant 7 : i32
    %216 = vector.broadcast %c7_i32_106 : i32 to vector<1x128xi32>
    %217 = arith.andi %215, %216 : vector<1x128xi32>
    %c3_i32_107 = arith.constant 3 : i32
    %218 = vector.broadcast %c3_i32_107 : i32 to vector<1x128xi32>
    %219 = arith.shrsi %215, %218 : vector<1x128xi32>
    %c7_i32_108 = arith.constant 7 : i32
    %220 = vector.broadcast %c7_i32_108 : i32 to vector<1x128xi32>
    %221 = arith.andi %219, %220 : vector<1x128xi32>
    %c1_i32_109 = arith.constant 1 : i32
    %222 = vector.broadcast %c1_i32_109 : i32 to vector<1x128xi32>
    %223 = arith.cmpi sge, %221, %222 : vector<1x128xi32>
    %c6_i32_110 = arith.constant 6 : i32
    %224 = vector.broadcast %c6_i32_110 : i32 to vector<1x128xi32>
    %225 = arith.cmpi sle, %221, %224 : vector<1x128xi32>
    %c1_i32_111 = arith.constant 1 : i32
    %226 = vector.broadcast %c1_i32_111 : i32 to vector<1x128xi32>
    %227 = arith.cmpi sge, %217, %226 : vector<1x128xi32>
    %c6_i32_112 = arith.constant 6 : i32
    %228 = vector.broadcast %c6_i32_112 : i32 to vector<1x128xi32>
    %229 = arith.cmpi sle, %217, %228 : vector<1x128xi32>
    %230 = arith.andi %223, %227 : vector<1x128xi1>
    %231 = arith.andi %223, %229 : vector<1x128xi1>
    %232 = arith.andi %225, %227 : vector<1x128xi1>
    %233 = arith.andi %225, %229 : vector<1x128xi1>
    %c0_113 = arith.constant 0 : index
    %c119_114 = arith.constant 119 : index
    %234 = vector.load %arg8[%c0_113, %c119_114] : memref<48x384xf32, #tpu.memory_space<vmem>>, vector<48x128xf32>
    %cst_115 = arith.constant 0.000000e+00 : f32
    %235 = vector.shape_cast %230 : vector<1x128xi1> to vector<1x128xi1>
    %236 = vector.broadcast %235 : vector<1x128xi1> to vector<48x128xi1>
    %237 = vector.broadcast %cst_115 : f32 to vector<48x128xf32>
    %238 = arith.select %236, %234, %237 : vector<48x128xi1>, vector<48x128xf32>
    %c144_116 = arith.constant 144 : index
    %c0_117 = arith.constant 0 : index
    %239 = vector.load %arg2[%c144_116, %c0_117] : memref<1760x1xf32, #tpu.memory_space<vmem>>, vector<48x1xf32>
    %240 = vector.broadcast %239 : vector<48x1xf32> to vector<48x128xf32>
    %241 = arith.mulf %240, %238 : vector<48x128xf32>
    %c0_118 = arith.constant 0 : index
    %c120_119 = arith.constant 120 : index
    %242 = vector.load %arg8[%c0_118, %c120_119] : memref<48x384xf32, #tpu.memory_space<vmem>>, vector<48x128xf32>
    %cst_120 = arith.constant 0.000000e+00 : f32
    %243 = vector.shape_cast %223 : vector<1x128xi1> to vector<1x128xi1>
    %244 = vector.broadcast %243 : vector<1x128xi1> to vector<48x128xi1>
    %245 = vector.broadcast %cst_120 : f32 to vector<48x128xf32>
    %246 = arith.select %244, %242, %245 : vector<48x128xi1>, vector<48x128xf32>
    %c192 = arith.constant 192 : index
    %c0_121 = arith.constant 0 : index
    %247 = vector.load %arg2[%c192, %c0_121] : memref<1760x1xf32, #tpu.memory_space<vmem>>, vector<48x1xf32>
    %248 = vector.broadcast %247 : vector<48x1xf32> to vector<48x128xf32>
    %249 = arith.mulf %248, %246 : vector<48x128xf32>
    %c0_122 = arith.constant 0 : index
    %c121_123 = arith.constant 121 : index
    %250 = vector.load %arg8[%c0_122, %c121_123] : memref<48x384xf32, #tpu.memory_space<vmem>>, vector<48x128xf32>
    %cst_124 = arith.constant 0.000000e+00 : f32
    %251 = vector.shape_cast %231 : vector<1x128xi1> to vector<1x128xi1>
    %252 = vector.broadcast %251 : vector<1x128xi1> to vector<48x128xi1>
    %253 = vector.broadcast %cst_124 : f32 to vector<48x128xf32>
    %254 = arith.select %252, %250, %253 : vector<48x128xi1>, vector<48x128xf32>
    %c240 = arith.constant 240 : index
    %c0_125 = arith.constant 0 : index
    %255 = vector.load %arg2[%c240, %c0_125] : memref<1760x1xf32, #tpu.memory_space<vmem>>, vector<48x1xf32>
    %256 = vector.broadcast %255 : vector<48x1xf32> to vector<48x128xf32>
    %257 = arith.mulf %256, %254 : vector<48x128xf32>
    %c0_126 = arith.constant 0 : index
    %c127_127 = arith.constant 127 : index
    %258 = vector.load %arg8[%c0_126, %c127_127] : memref<48x384xf32, #tpu.memory_space<vmem>>, vector<48x128xf32>
    %cst_128 = arith.constant 0.000000e+00 : f32
    %259 = vector.shape_cast %227 : vector<1x128xi1> to vector<1x128xi1>
    %260 = vector.broadcast %259 : vector<1x128xi1> to vector<48x128xi1>
    %261 = vector.broadcast %cst_128 : f32 to vector<48x128xf32>
    %262 = arith.select %260, %258, %261 : vector<48x128xi1>, vector<48x128xf32>
    %c288 = arith.constant 288 : index
    %c0_129 = arith.constant 0 : index
    %263 = vector.load %arg2[%c288, %c0_129] : memref<1760x1xf32, #tpu.memory_space<vmem>>, vector<48x1xf32>
    %264 = vector.broadcast %263 : vector<48x1xf32> to vector<48x128xf32>
    %265 = arith.mulf %264, %262 : vector<48x128xf32>
    %266 = arith.addf %241, %265 : vector<48x128xf32>
    %c0_130 = arith.constant 0 : index
    %c128_131 = arith.constant 128 : index
    %267 = vector.load %arg8[%c0_130, %c128_131] : memref<48x384xf32, #tpu.memory_space<vmem>>, vector<48x128xf32>
    %c336 = arith.constant 336 : index
    %c0_132 = arith.constant 0 : index
    %268 = vector.load %arg2[%c336, %c0_132] : memref<1760x1xf32, #tpu.memory_space<vmem>>, vector<48x1xf32>
    %269 = vector.broadcast %268 : vector<48x1xf32> to vector<48x128xf32>
    %270 = arith.mulf %269, %267 : vector<48x128xf32>
    %271 = arith.addf %249, %270 : vector<48x128xf32>
    %c0_133 = arith.constant 0 : index
    %c129_134 = arith.constant 129 : index
    %272 = vector.load %arg8[%c0_133, %c129_134] : memref<48x384xf32, #tpu.memory_space<vmem>>, vector<48x128xf32>
    %cst_135 = arith.constant 0.000000e+00 : f32
    %273 = vector.shape_cast %229 : vector<1x128xi1> to vector<1x128xi1>
    %274 = vector.broadcast %273 : vector<1x128xi1> to vector<48x128xi1>
    %275 = vector.broadcast %cst_135 : f32 to vector<48x128xf32>
    %276 = arith.select %274, %272, %275 : vector<48x128xi1>, vector<48x128xf32>
    %c384 = arith.constant 384 : index
    %c0_136 = arith.constant 0 : index
    %277 = vector.load %arg2[%c384, %c0_136] : memref<1760x1xf32, #tpu.memory_space<vmem>>, vector<48x1xf32>
    %278 = vector.broadcast %277 : vector<48x1xf32> to vector<48x128xf32>
    %279 = arith.mulf %278, %276 : vector<48x128xf32>
    %280 = arith.addf %257, %279 : vector<48x128xf32>
    %c0_137 = arith.constant 0 : index
    %c135_138 = arith.constant 135 : index
    %281 = vector.load %arg8[%c0_137, %c135_138] : memref<48x384xf32, #tpu.memory_space<vmem>>, vector<48x128xf32>
    %cst_139 = arith.constant 0.000000e+00 : f32
    %282 = vector.shape_cast %232 : vector<1x128xi1> to vector<1x128xi1>
    %283 = vector.broadcast %282 : vector<1x128xi1> to vector<48x128xi1>
    %284 = vector.broadcast %cst_139 : f32 to vector<48x128xf32>
    %285 = arith.select %283, %281, %284 : vector<48x128xi1>, vector<48x128xf32>
    %c432 = arith.constant 432 : index
    %c0_140 = arith.constant 0 : index
    %286 = vector.load %arg2[%c432, %c0_140] : memref<1760x1xf32, #tpu.memory_space<vmem>>, vector<48x1xf32>
    %287 = vector.broadcast %286 : vector<48x1xf32> to vector<48x128xf32>
    %288 = arith.mulf %287, %285 : vector<48x128xf32>
    %289 = arith.addf %266, %288 : vector<48x128xf32>
    %c0_141 = arith.constant 0 : index
    %c136_142 = arith.constant 136 : index
    %290 = vector.load %arg8[%c0_141, %c136_142] : memref<48x384xf32, #tpu.memory_space<vmem>>, vector<48x128xf32>
    %cst_143 = arith.constant 0.000000e+00 : f32
    %291 = vector.shape_cast %225 : vector<1x128xi1> to vector<1x128xi1>
    %292 = vector.broadcast %291 : vector<1x128xi1> to vector<48x128xi1>
    %293 = vector.broadcast %cst_143 : f32 to vector<48x128xf32>
    %294 = arith.select %292, %290, %293 : vector<48x128xi1>, vector<48x128xf32>
    %c480 = arith.constant 480 : index
    %c0_144 = arith.constant 0 : index
    %295 = vector.load %arg2[%c480, %c0_144] : memref<1760x1xf32, #tpu.memory_space<vmem>>, vector<48x1xf32>
    %296 = vector.broadcast %295 : vector<48x1xf32> to vector<48x128xf32>
    %297 = arith.mulf %296, %294 : vector<48x128xf32>
    %298 = arith.addf %271, %297 : vector<48x128xf32>
    %c0_145 = arith.constant 0 : index
    %c137_146 = arith.constant 137 : index
    %299 = vector.load %arg8[%c0_145, %c137_146] : memref<48x384xf32, #tpu.memory_space<vmem>>, vector<48x128xf32>
    %cst_147 = arith.constant 0.000000e+00 : f32
    %300 = vector.shape_cast %233 : vector<1x128xi1> to vector<1x128xi1>
    %301 = vector.broadcast %300 : vector<1x128xi1> to vector<48x128xi1>
    %302 = vector.broadcast %cst_147 : f32 to vector<48x128xf32>
    %303 = arith.select %301, %299, %302 : vector<48x128xi1>, vector<48x128xf32>
    %c528_148 = arith.constant 528 : index
    %c0_149 = arith.constant 0 : index
    %304 = vector.load %arg2[%c528_148, %c0_149] : memref<1760x1xf32, #tpu.memory_space<vmem>>, vector<48x1xf32>
    %305 = vector.broadcast %304 : vector<48x1xf32> to vector<48x128xf32>
    %306 = arith.mulf %305, %303 : vector<48x128xf32>
    %307 = arith.addf %280, %306 : vector<48x128xf32>
    %308 = arith.addf %289, %298 : vector<48x128xf32>
    %309 = arith.addf %308, %307 : vector<48x128xf32>
    %c576 = arith.constant 576 : index
    %c0_150 = arith.constant 0 : index
    %310 = vector.load %arg2[%c576, %c0_150] : memref<1760x1xf32, #tpu.memory_space<vmem>>, vector<48x1xf32>
    %311 = vector.broadcast %310 : vector<48x1xf32> to vector<48x128xf32>
    %312 = arith.addf %309, %311 : vector<48x128xf32>
    %cst_151 = arith.constant 0.000000e+00 : f32
    %cst_152 = arith.constant 6.000000e+00 : f32
    %313 = vector.broadcast %cst_151 : f32 to vector<48x128xf32>
    %314 = arith.maximumf %313, %312 : vector<48x128xf32>
    %315 = vector.broadcast %cst_152 : f32 to vector<48x128xf32>
    %316 = arith.minimumf %315, %314 : vector<48x128xf32>
    %c592 = arith.constant 592 : index
    %c0_153 = arith.constant 0 : index
    %317 = vector.load %arg1[%c592, %c0_153] : memref<912x128xbf16, #tpu.memory_space<vmem>>, vector<16x48xbf16>
    %318 = arith.truncf %316 : vector<48x128xf32> to vector<48x128xbf16>
    %cst_154 = arith.constant dense<0.000000e+00> : vector<16x128xf32>
    %319 = tpu.matmul %317, %318, %cst_154 {dimension_numbers = #tpu.dot_dimension_numbers<[1], [0], [0], [1], [0, 0, 1, 1], [], []>} : vector<16x48xbf16>, vector<48x128xbf16>, vector<16x128xf32> -> vector<16x128xf32>
    %320 = arith.truncf %319 : vector<16x128xf32> to vector<16x128xbf16>
    %c608 = arith.constant 608 : index
    %c0_155 = arith.constant 0 : index
    %321 = vector.load %arg1[%c608, %c0_155] : memref<912x128xbf16, #tpu.memory_space<vmem>>, vector<128x32xbf16>
    %cst_156 = arith.constant dense<0.000000e+00> : vector<16x32xf32>
    %322 = tpu.matmul %320, %321, %cst_156 {dimension_numbers = #tpu.dot_dimension_numbers<[1], [0], [0], [1], [0, 0, 1, 1], [], []>} : vector<16x128xbf16>, vector<128x32xbf16>, vector<16x32xf32> -> vector<16x32xf32>
    %c624 = arith.constant 624 : index
    %c0_157 = arith.constant 0 : index
    %323 = vector.load %arg2[%c624, %c0_157] : memref<1760x1xf32, #tpu.memory_space<vmem>>, vector<16x1xf32>
    %324 = vector.broadcast %323 : vector<16x1xf32> to vector<16x32xf32>
    %325 = arith.addf %322, %324 : vector<16x32xf32>
    %c736 = arith.constant 736 : index
    %c0_158 = arith.constant 0 : index
    %326 = vector.load %arg1[%c736, %c0_158] : memref<912x128xbf16, #tpu.memory_space<vmem>>, vector<96x16xbf16>
    %327 = arith.truncf %325 : vector<16x32xf32> to vector<16x32xbf16>
    %cst_159 = arith.constant dense<0.000000e+00> : vector<96x32xf32>
    %328 = tpu.matmul %326, %327, %cst_159 {dimension_numbers = #tpu.dot_dimension_numbers<[1], [0], [0], [1], [0, 0, 1, 1], [], []>} : vector<96x16xbf16>, vector<16x32xbf16>, vector<96x32xf32> -> vector<96x32xf32>
    %c640_160 = arith.constant 640 : index
    %c0_161 = arith.constant 0 : index
    %329 = vector.load %arg2[%c640_160, %c0_161] : memref<1760x1xf32, #tpu.memory_space<vmem>>, vector<96x1xf32>
    %330 = vector.broadcast %329 : vector<96x1xf32> to vector<96x32xf32>
    %331 = arith.addf %328, %330 : vector<96x32xf32>
    %cst_162 = arith.constant 0.000000e+00 : f32
    %cst_163 = arith.constant 6.000000e+00 : f32
    %332 = vector.broadcast %cst_162 : f32 to vector<96x32xf32>
    %333 = arith.maximumf %332, %331 : vector<96x32xf32>
    %334 = vector.broadcast %cst_163 : f32 to vector<96x32xf32>
    %335 = arith.minimumf %334, %333 : vector<96x32xf32>
    %cst_164 = arith.constant 0.000000e+00 : f32
    %336 = vector.broadcast %cst_164 : f32 to vector<96x128xf32>
    %c0_165 = arith.constant 0 : index
    %c0_166 = arith.constant 0 : index
    %337 = vector.load %arg9[%c0_165, %c0_166] : memref<96x288xf32, #tpu.memory_space<vmem>>, vector<96x128xf32>
    tpu.vector_store %arg9[%c0_165, %c0_166], %336 {strides = array<i32>} : memref<96x288xf32, #tpu.memory_space<vmem>>, vector<96x128xf32>,
    %c0_167 = arith.constant 0 : index
    %c160 = arith.constant 160 : index
    %338 = vector.load %arg9[%c0_167, %c160] : memref<96x288xf32, #tpu.memory_space<vmem>>, vector<96x128xf32>
    tpu.vector_store %arg9[%c0_167, %c160], %336 {strides = array<i32>} : memref<96x288xf32, #tpu.memory_space<vmem>>, vector<96x128xf32>,
    %c0_168 = arith.constant 0 : index
    %c128_169 = arith.constant 128 : index
    %339 = vector.load %arg9[%c0_168, %c128_169] : memref<96x288xf32, #tpu.memory_space<vmem>>, vector<96x32xf32>
    tpu.vector_store %arg9[%c0_168, %c128_169], %335 {strides = array<i32>} : memref<96x288xf32, #tpu.memory_space<vmem>>, vector<96x32xf32>,
    %340 = tpu.iota {dimensions = array<i32: 1>} : vector<1x32xi32>
    %c3_i32_170 = arith.constant 3 : i32
    %341 = vector.broadcast %c3_i32_170 : i32 to vector<1x32xi32>
    %342 = arith.andi %340, %341 : vector<1x32xi32>
    %c2_i32 = arith.constant 2 : i32
    %343 = vector.broadcast %c2_i32 : i32 to vector<1x32xi32>
    %344 = arith.shrsi %340, %343 : vector<1x32xi32>
    %c3_i32_171 = arith.constant 3 : i32
    %345 = vector.broadcast %c3_i32_171 : i32 to vector<1x32xi32>
    %346 = arith.andi %344, %345 : vector<1x32xi32>
    %c1_i32_172 = arith.constant 1 : i32
    %347 = vector.broadcast %c1_i32_172 : i32 to vector<1x32xi32>
    %348 = arith.cmpi sge, %346, %347 : vector<1x32xi32>
    %c2_i32_173 = arith.constant 2 : i32
    %349 = vector.broadcast %c2_i32_173 : i32 to vector<1x32xi32>
    %350 = arith.cmpi sle, %346, %349 : vector<1x32xi32>
    %c1_i32_174 = arith.constant 1 : i32
    %351 = vector.broadcast %c1_i32_174 : i32 to vector<1x32xi32>
    %352 = arith.cmpi sge, %342, %351 : vector<1x32xi32>
    %c2_i32_175 = arith.constant 2 : i32
    %353 = vector.broadcast %c2_i32_175 : i32 to vector<1x32xi32>
    %354 = arith.cmpi sle, %342, %353 : vector<1x32xi32>
    %355 = arith.andi %348, %352 : vector<1x32xi1>
    %356 = arith.andi %348, %354 : vector<1x32xi1>
    %357 = arith.andi %350, %352 : vector<1x32xi1>
    %358 = arith.andi %350, %354 : vector<1x32xi1>
    %c0_176 = arith.constant 0 : index
    %c123 = arith.constant 123 : index
    %359 = vector.load %arg9[%c0_176, %c123] : memref<96x288xf32, #tpu.memory_space<vmem>>, vector<96x32xf32>
    %cst_177 = arith.constant 0.000000e+00 : f32
    %360 = vector.shape_cast %355 : vector<1x32xi1> to vector<1x32xi1>
    %361 = vector.broadcast %360 : vector<1x32xi1> to vector<96x32xi1>
    %362 = vector.broadcast %cst_177 : f32 to vector<96x32xf32>
    %363 = arith.select %361, %359, %362 : vector<96x32xi1>, vector<96x32xf32>
    %c736_178 = arith.constant 736 : index
    %c0_179 = arith.constant 0 : index
    %364 = vector.load %arg2[%c736_178, %c0_179] : memref<1760x1xf32, #tpu.memory_space<vmem>>, vector<96x1xf32>
    %365 = vector.broadcast %364 : vector<96x1xf32> to vector<96x32xf32>
    %366 = arith.mulf %365, %363 : vector<96x32xf32>
    %c0_180 = arith.constant 0 : index
    %c124 = arith.constant 124 : index
    %367 = vector.load %arg9[%c0_180, %c124] : memref<96x288xf32, #tpu.memory_space<vmem>>, vector<96x32xf32>
    %cst_181 = arith.constant 0.000000e+00 : f32
    %368 = vector.shape_cast %348 : vector<1x32xi1> to vector<1x32xi1>
    %369 = vector.broadcast %368 : vector<1x32xi1> to vector<96x32xi1>
    %370 = vector.broadcast %cst_181 : f32 to vector<96x32xf32>
    %371 = arith.select %369, %367, %370 : vector<96x32xi1>, vector<96x32xf32>
    %c832 = arith.constant 832 : index
    %c0_182 = arith.constant 0 : index
    %372 = vector.load %arg2[%c832, %c0_182] : memref<1760x1xf32, #tpu.memory_space<vmem>>, vector<96x1xf32>
    %373 = vector.broadcast %372 : vector<96x1xf32> to vector<96x32xf32>
    %374 = arith.mulf %373, %371 : vector<96x32xf32>
    %c0_183 = arith.constant 0 : index
    %c125 = arith.constant 125 : index
    %375 = vector.load %arg9[%c0_183, %c125] : memref<96x288xf32, #tpu.memory_space<vmem>>, vector<96x32xf32>
    %cst_184 = arith.constant 0.000000e+00 : f32
    %376 = vector.shape_cast %356 : vector<1x32xi1> to vector<1x32xi1>
    %377 = vector.broadcast %376 : vector<1x32xi1> to vector<96x32xi1>
    %378 = vector.broadcast %cst_184 : f32 to vector<96x32xf32>
    %379 = arith.select %377, %375, %378 : vector<96x32xi1>, vector<96x32xf32>
    %c928 = arith.constant 928 : index
    %c0_185 = arith.constant 0 : index
    %380 = vector.load %arg2[%c928, %c0_185] : memref<1760x1xf32, #tpu.memory_space<vmem>>, vector<96x1xf32>
    %381 = vector.broadcast %380 : vector<96x1xf32> to vector<96x32xf32>
    %382 = arith.mulf %381, %379 : vector<96x32xf32>
    %c0_186 = arith.constant 0 : index
    %c127_187 = arith.constant 127 : index
    %383 = vector.load %arg9[%c0_186, %c127_187] : memref<96x288xf32, #tpu.memory_space<vmem>>, vector<96x32xf32>
    %cst_188 = arith.constant 0.000000e+00 : f32
    %384 = vector.shape_cast %352 : vector<1x32xi1> to vector<1x32xi1>
    %385 = vector.broadcast %384 : vector<1x32xi1> to vector<96x32xi1>
    %386 = vector.broadcast %cst_188 : f32 to vector<96x32xf32>
    %387 = arith.select %385, %383, %386 : vector<96x32xi1>, vector<96x32xf32>
    %c1024 = arith.constant 1024 : index
    %c0_189 = arith.constant 0 : index
    %388 = vector.load %arg2[%c1024, %c0_189] : memref<1760x1xf32, #tpu.memory_space<vmem>>, vector<96x1xf32>
    %389 = vector.broadcast %388 : vector<96x1xf32> to vector<96x32xf32>
    %390 = arith.mulf %389, %387 : vector<96x32xf32>
    %391 = arith.addf %366, %390 : vector<96x32xf32>
    %c0_190 = arith.constant 0 : index
    %c128_191 = arith.constant 128 : index
    %392 = vector.load %arg9[%c0_190, %c128_191] : memref<96x288xf32, #tpu.memory_space<vmem>>, vector<96x32xf32>
    %c1120 = arith.constant 1120 : index
    %c0_192 = arith.constant 0 : index
    %393 = vector.load %arg2[%c1120, %c0_192] : memref<1760x1xf32, #tpu.memory_space<vmem>>, vector<96x1xf32>
    %394 = vector.broadcast %393 : vector<96x1xf32> to vector<96x32xf32>
    %395 = arith.mulf %394, %392 : vector<96x32xf32>
    %396 = arith.addf %374, %395 : vector<96x32xf32>
    %c0_193 = arith.constant 0 : index
    %c129_194 = arith.constant 129 : index
    %397 = vector.load %arg9[%c0_193, %c129_194] : memref<96x288xf32, #tpu.memory_space<vmem>>, vector<96x32xf32>
    %cst_195 = arith.constant 0.000000e+00 : f32
    %398 = vector.shape_cast %354 : vector<1x32xi1> to vector<1x32xi1>
    %399 = vector.broadcast %398 : vector<1x32xi1> to vector<96x32xi1>
    %400 = vector.broadcast %cst_195 : f32 to vector<96x32xf32>
    %401 = arith.select %399, %397, %400 : vector<96x32xi1>, vector<96x32xf32>
    %c1216 = arith.constant 1216 : index
    %c0_196 = arith.constant 0 : index
    %402 = vector.load %arg2[%c1216, %c0_196] : memref<1760x1xf32, #tpu.memory_space<vmem>>, vector<96x1xf32>
    %403 = vector.broadcast %402 : vector<96x1xf32> to vector<96x32xf32>
    %404 = arith.mulf %403, %401 : vector<96x32xf32>
    %405 = arith.addf %382, %404 : vector<96x32xf32>
    %c0_197 = arith.constant 0 : index
    %c131 = arith.constant 131 : index
    %406 = vector.load %arg9[%c0_197, %c131] : memref<96x288xf32, #tpu.memory_space<vmem>>, vector<96x32xf32>
    %cst_198 = arith.constant 0.000000e+00 : f32
    %407 = vector.shape_cast %357 : vector<1x32xi1> to vector<1x32xi1>
    %408 = vector.broadcast %407 : vector<1x32xi1> to vector<96x32xi1>
    %409 = vector.broadcast %cst_198 : f32 to vector<96x32xf32>
    %410 = arith.select %408, %406, %409 : vector<96x32xi1>, vector<96x32xf32>
    %c1312 = arith.constant 1312 : index
    %c0_199 = arith.constant 0 : index
    %411 = vector.load %arg2[%c1312, %c0_199] : memref<1760x1xf32, #tpu.memory_space<vmem>>, vector<96x1xf32>
    %412 = vector.broadcast %411 : vector<96x1xf32> to vector<96x32xf32>
    %413 = arith.mulf %412, %410 : vector<96x32xf32>
    %414 = arith.addf %391, %413 : vector<96x32xf32>
    %c0_200 = arith.constant 0 : index
    %c132 = arith.constant 132 : index
    %415 = vector.load %arg9[%c0_200, %c132] : memref<96x288xf32, #tpu.memory_space<vmem>>, vector<96x32xf32>
    %cst_201 = arith.constant 0.000000e+00 : f32
    %416 = vector.shape_cast %350 : vector<1x32xi1> to vector<1x32xi1>
    %417 = vector.broadcast %416 : vector<1x32xi1> to vector<96x32xi1>
    %418 = vector.broadcast %cst_201 : f32 to vector<96x32xf32>
    %419 = arith.select %417, %415, %418 : vector<96x32xi1>, vector<96x32xf32>
    %c1408 = arith.constant 1408 : index
    %c0_202 = arith.constant 0 : index
    %420 = vector.load %arg2[%c1408, %c0_202] : memref<1760x1xf32, #tpu.memory_space<vmem>>, vector<96x1xf32>
    %421 = vector.broadcast %420 : vector<96x1xf32> to vector<96x32xf32>
    %422 = arith.mulf %421, %419 : vector<96x32xf32>
    %423 = arith.addf %396, %422 : vector<96x32xf32>
    %c0_203 = arith.constant 0 : index
    %c133 = arith.constant 133 : index
    %424 = vector.load %arg9[%c0_203, %c133] : memref<96x288xf32, #tpu.memory_space<vmem>>, vector<96x32xf32>
    %cst_204 = arith.constant 0.000000e+00 : f32
    %425 = vector.shape_cast %358 : vector<1x32xi1> to vector<1x32xi1>
    %426 = vector.broadcast %425 : vector<1x32xi1> to vector<96x32xi1>
    %427 = vector.broadcast %cst_204 : f32 to vector<96x32xf32>
    %428 = arith.select %426, %424, %427 : vector<96x32xi1>, vector<96x32xf32>
    %c1504 = arith.constant 1504 : index
    %c0_205 = arith.constant 0 : index
    %429 = vector.load %arg2[%c1504, %c0_205] : memref<1760x1xf32, #tpu.memory_space<vmem>>, vector<96x1xf32>
    %430 = vector.broadcast %429 : vector<96x1xf32> to vector<96x32xf32>
    %431 = arith.mulf %430, %428 : vector<96x32xf32>
    %432 = arith.addf %405, %431 : vector<96x32xf32>
    %433 = arith.addf %414, %423 : vector<96x32xf32>
    %434 = arith.addf %433, %432 : vector<96x32xf32>
    %c1600 = arith.constant 1600 : index
    %c0_206 = arith.constant 0 : index
    %435 = vector.load %arg2[%c1600, %c0_206] : memref<1760x1xf32, #tpu.memory_space<vmem>>, vector<96x1xf32>
    %436 = vector.broadcast %435 : vector<96x1xf32> to vector<96x32xf32>
    %437 = arith.addf %434, %436 : vector<96x32xf32>
    %cst_207 = arith.constant 0.000000e+00 : f32
    %cst_208 = arith.constant 6.000000e+00 : f32
    %438 = vector.broadcast %cst_207 : f32 to vector<96x32xf32>
    %439 = arith.maximumf %438, %437 : vector<96x32xf32>
    %440 = vector.broadcast %cst_208 : f32 to vector<96x32xf32>
    %441 = arith.minimumf %440, %439 : vector<96x32xf32>
    %c832_209 = arith.constant 832 : index
    %c0_210 = arith.constant 0 : index
    %442 = vector.load %arg1[%c832_209, %c0_210] : memref<912x128xbf16, #tpu.memory_space<vmem>>, vector<16x96xbf16>
    %443 = arith.truncf %441 : vector<96x32xf32> to vector<96x32xbf16>
    %cst_211 = arith.constant dense<0.000000e+00> : vector<16x32xf32>
    %444 = tpu.matmul %442, %443, %cst_211 {dimension_numbers = #tpu.dot_dimension_numbers<[1], [0], [0], [1], [0, 0, 1, 1], [], []>} : vector<16x96xbf16>, vector<96x32xbf16>, vector<16x32xf32> -> vector<16x32xf32>
    %c1696 = arith.constant 1696 : index
    %c0_212 = arith.constant 0 : index
    %445 = vector.load %arg2[%c1696, %c0_212] : memref<1760x1xf32, #tpu.memory_space<vmem>>, vector<16x1xf32>
    %446 = vector.broadcast %445 : vector<16x1xf32> to vector<16x32xf32>
    %447 = arith.addf %444, %446 : vector<16x32xf32>
    %448 = arith.addf %447, %325 : vector<16x32xf32>
    %c848 = arith.constant 848 : index
    %c0_213 = arith.constant 0 : index
    %449 = vector.load %arg1[%c848, %c0_213] : memref<912x128xbf16, #tpu.memory_space<vmem>>, vector<32x16xbf16>
    %450 = arith.truncf %448 : vector<16x32xf32> to vector<16x32xbf16>
    %cst_214 = arith.constant dense<0.000000e+00> : vector<32x32xf32>
    %451 = tpu.matmul %449, %450, %cst_214 {dimension_numbers = #tpu.dot_dimension_numbers<[1], [0], [0], [1], [0, 0, 1, 1], [], []>} : vector<32x16xbf16>, vector<16x32xbf16>, vector<32x32xf32> -> vector<32x32xf32>
    %c1712 = arith.constant 1712 : index
    %c0_215 = arith.constant 0 : index
    %452 = vector.load %arg2[%c1712, %c0_215] : memref<1760x1xf32, #tpu.memory_space<vmem>>, vector<32x1xf32>
    %453 = vector.broadcast %452 : vector<32x1xf32> to vector<32x32xf32>
    %454 = arith.addf %451, %453 : vector<32x32xf32>
    %cst_216 = arith.constant 0.000000e+00 : f32
    %cst_217 = arith.constant 6.000000e+00 : f32
    %455 = vector.broadcast %cst_216 : f32 to vector<32x32xf32>
    %456 = arith.maximumf %455, %454 : vector<32x32xf32>
    %457 = vector.broadcast %cst_217 : f32 to vector<32x32xf32>
    %458 = arith.minimumf %457, %456 : vector<32x32xf32>
    %459 = arith.truncf %458 : vector<32x32xf32> to vector<32x32xbf16>
    %c880 = arith.constant 880 : index
    %c0_218 = arith.constant 0 : index
    %460 = vector.load %arg1[%c880, %c0_218] : memref<912x128xbf16, #tpu.memory_space<vmem>>, vector<32x2xbf16>
    %cst_219 = arith.constant dense<0.000000e+00> : vector<32x2xf32>
    %461 = tpu.matmul %459, %460, %cst_219 {dimension_numbers = #tpu.dot_dimension_numbers<[1], [0], [0], [1], [0, 0, 1, 1], [], []>} : vector<32x32xbf16>, vector<32x2xbf16>, vector<32x2xf32> -> vector<32x2xf32>
    %c0_220 = arith.constant 0 : index
    %c0_221 = arith.constant 0 : index
    %462 = vector.load %arg3[%c0_220, %c0_221] : memref<10x32xf32, #tpu.memory_space<vmem>>, vector<10x32xf32>
    %cst_222 = arith.constant dense<0.000000e+00> : vector<10x2xf32>
    %463 = tpu.matmul %462, %461, %cst_222 {dimension_numbers = #tpu.dot_dimension_numbers<[1], [0], [0], [1], [0, 0, 1, 1], [], []>} : vector<10x32xf32>, vector<32x2xf32>, vector<10x2xf32> -> vector<10x2xf32>
    %c1744 = arith.constant 1744 : index
    %c0_223 = arith.constant 0 : index
    %464 = vector.load %arg2[%c1744, %c0_223] : memref<1760x1xf32, #tpu.memory_space<vmem>>, vector<10x1xf32>
    %465 = vector.broadcast %464 : vector<10x1xf32> to vector<10x2xf32>
    %466 = arith.addf %463, %465 : vector<10x2xf32>
    %c0_224 = arith.constant 0 : index
    %c0_225 = arith.constant 0 : index
    %467 = vector.load %arg4[%c0_224, %c0_225] : memref<10x2xf32, #tpu.memory_space<vmem>>, vector<10x2xf32>
    tpu.vector_store %arg4[%c0_224, %c0_225], %466 {strides = array<i32>} : memref<10x2xf32, #tpu.memory_space<vmem>>, vector<10x2xf32>,
    return
  }
}

</mosaic_0001>

<bundles_post_ra>
// kernel: mobilenet_v2_logits.1
= control target key start
LH: loop header
LB: loop body
LE: loop exit
PB: predicated region body
PF: predicated region fallthrough
CT: control target
= control target key end

     0   :  { %v5234_v2 = vmov 0.0   ;;  %s5235_s19 = smov 113   ;;  %s5236_s20 = smov 127   ;;  %v5243_v47 = vmov 0   ;;  %v24_v48 = vlaneseq  ;;  %vm8581_vm0 = vcmask 1039360   ;;  %s8575_s0 = inlined_call_operand.vmem [shape: f32[3,512], index: 0, kind: input, shape index: {}]   ;;  %s8576_s1 = inlined_call_operand.vmem [shape: bf16[912,128], index: 1, kind: input, shape index: {}]   ;;  %s8577_s2 = inlined_call_operand.vmem [shape: f32[1760,1], index: 2, kind: input, shape index: {}]   ;;  %s8578_s3 = inlined_call_operand.vmem [shape: f32[10,32], index: 3, kind: input, shape index: {}]   ;;  %s8579_s4 = inlined_call_operand.vmem [shape: f32[10,2], index: 4, kind: output, shape index: {}]  }
   0x1   :  { %v19_v0 = vld [vmem:[%s8575_s0 + $0x8] sm:$0x77]  ;;  %v18_v1 = vld [vmem:[%s8575_s0] sm:$0x77]  ;;  %21 = vst [vmem:[#allocation2 + $0x14] sm:$0x7] %v5234_v2  ;;  %586 = vmatprep.mubr.bf16.mxu0 %v5243_v47  ;;  %627 = vmatprep.mubr.bf16.mxu1 %v5243_v47 }
   0x2   :  { %20 = vst [vmem:[#allocation2] sm:$0x7] %v5234_v2  ;;  %2652 = vst [vmem:[#allocation6] sm:$0xff] %v5234_v2  ;;  %s5237_s21 = smov 112   ;;  %s5238_s0 = smov 111   ;;  %4912 = vset.pattern.permute.xlu0 %v5243_v47  ;;  %4913 = vset.pattern.permute.xlu1 %v5243_v47  ;;  %v5309_v49 = vand.u32 127, %v24_v48 }
   0x3   :  { %23 = vst [vmem:[#allocation2 + $0xc] sm:$0x77] %v19_v0  ;;  %22 = vst [vmem:[#allocation2 + $0x4] sm:$0x77] %v18_v1  ;;  %s5239_s22 = smov 16   ;;  %s5240_s23 = smov 15  }
   0x4   :  { %s5241_s24 = smov 1   ;;  %s5242_s25 = smov 17   ;;  %8627 = vst [vmem:[#allocation7_spill] sm:$0xff] %v5309_v49  ;;  %v26_v50 = vadd.s32 128, %v5309_v49  ;;  %v33_v51 = vshra.s32 %v5309_v49, 4  ;;  %v29_v52 = vand.u32 15, %v5309_v49 }
   0x5   :  { %v27_v61 = vadd.s32 256, %v5309_v49  ;;  %vm382_vm8 = vcmask 924672   ;;  %vm437_vm9 = vcmask 916480   ;;  %s5245_s9 = smov 9   ;;  %s5246_s10 = smov 8  }
   0x6   :  { %v30_v53 = vand.u32 15, %v26_v50  ;;  %v34_v54 = vshra.s32 %v26_v50, 4  ;;  %v5314_v55 = vand.u32 15, %v33_v51  ;;  %vm5323_vm1 = vcmp.le.s32.totalorder %v29_v52, 14  ;;  %s5247_s13 = smov 121   ;;  %s5248_s14 = smov 120  }
   0x7   :  { %vm5332_vm4 = vcmp.ge.s32.totalorder %v29_v52, 1  ;;  %s5249_s15 = smov 7   ;;  %s5250_s16 = smov 119  }
   0x8   :  { %v299_v14 = vld [vmem:[#allocation2 + $0x14] sm:$0x7]  ;;  %v5320_v60 = vand.u32 15, %v34_v54  ;;  %vm5327_vm2 = vcmp.le.s32.totalorder %v30_v53, 14  ;;  %vm45_vm3 = vcmp.le.s32.totalorder %v5314_v55, 14  ;;  %vm5337_vm6 = vcmp.ge.s32.totalorder %v30_v53, 1 }
   0x9   :  { %v358_v16 = vld [vmem:[#allocation2 + $0x14] sm:$0x7]  ;;  %vm5352_vm7 = vmand %vm45_vm3, %vm5332_vm4  ;;  %s5257_s26 = smov 124  }
   0xa   :  { %v357_v3 = vld [vmem:[#allocation2 + $0xc] sm:$0x77]  ;;  %v297_v6 = vld [vmem:[#allocation2 + $0x4] sm:$0x77]  ;;  %v413_v19 = vld [vmem:[#allocation2 + $0x14] sm:$0x7] }
   0xb   :  { %v298_v4 = vld [vmem:[#allocation2 + $0xc] sm:$0x77]  ;;  %376 = vrot.lane.b32.xlu1 %v357_v3, %s5235_s19  ;;  %v311_v7 = vcombine.high %v297_v6, %v297_v6  ;;  %v356_v8 = vld [vmem:[#allocation2 + $0x4] sm:$0x77]  ;;  %v371_v13 = vcombine.high %v357_v3, %v357_v3  ;;  %v468_v22 = vld [vmem:[#allocation2 + $0x14] sm:$0x7] }
   0xc   :  { %317 = vrot.lane.b32.xlu0 %v298_v4, %s5236_s20  ;;  %v412_v5 = vld [vmem:[#allocation2 + $0xc] sm:$0x77]  ;;  %v411_v9 = vld [vmem:[#allocation2 + $0x4] sm:$0x77]  ;;  %v370_v10 = vcombine.high %v356_v8, %v356_v8  ;;  %v312_v12 = vcombine.high %v298_v4, %v298_v4  ;;  %vm8580_vm5 = vcmp.le.s32.totalorder %v5320_v60, 14  ;;  %v35_v4 = vshra.s32 %v27_v61, 4 }
   0xd   :  { %v425_v11 = vcombine.high %v411_v9, %v411_v9  ;;  %v426_v15 = vcombine.high %v412_v5, %v412_v5  ;;  %v466_v17 = vld [vmem:[#allocation2 + $0x4] sm:$0x77]  ;;  %v467_v20 = vld [vmem:[#allocation2 + $0xc] sm:$0x77]  ;;  %vm5360_vm10 = vmand %vm8580_vm5, %vm5337_vm6 }
   0xe   :  { %v480_v18 = vcombine.high %v466_v17, %v466_v17  ;;  %v481_v21 = vcombine.high %v467_v20, %v467_v20  ;;  %v116_v23 = vld [vmem:[#allocation2] sm:$0x77]  ;;  %v117_v25 = vld [vmem:[#allocation2 + $0x8] sm:$0x77]  ;;  %v118_v41 = vld [vmem:[#allocation2 + $0x10] sm:$0x7] }
   0xf   :  { %431 = vrot.lane.b32.xlu1 %v412_v5, %s5237_s21  ;;  %v130_v24 = vcombine.high %v116_v23, %v116_v23  ;;  %v171_v26 = vld [vmem:[#allocation2] sm:$0x77]  ;;  %v172_v29 = vld [vmem:[#allocation2 + $0x8] sm:$0x77]  ;;  %v131_v36 = vcombine.high %v117_v25, %v117_v25  ;;  %v173_v43 = vld [vmem:[#allocation2 + $0x10] sm:$0x7] }
  0x10   :  { %313 = vrot.lane.b32.xlu0 %v297_v6, %s5236_s20  ;;  %v285_v27 = vld [vmem:[#allocation2 + $0x4] sm:$0x77]  ;;  %v185_v28 = vcombine.high %v171_v26, %v171_v26  ;;  %v286_v37 = vld [vmem:[#allocation2 + $0xc] sm:$0x77]  ;;  %v186_v40 = vcombine.high %v172_v29, %v172_v29  ;;  %v28_v5 = vadd.s32 384, %v5309_v49 }
  0x11   :  { %294 = vst [vmem:[#allocation3 + $0x68] sm:$0x70] %v285_v27  ;;  %v230_v30 = vld [vmem:[#allocation2] sm:$0x77]  ;;  %v231_v32 = vld [vmem:[#allocation2 + $0x8] sm:$0x77]  ;;  %v289_v33 = vcombine.low %v285_v27, %v285_v27  ;;  %v290_v39 = vcombine.low %v286_v37, %v286_v37 }
  0x12   :  { %v244_v31 = vcombine.high %v230_v30, %v230_v30  ;;  %v73_v34 = vld [vmem:[#allocation2] sm:$0x77]  ;;  %v74_v38 = vld [vmem:[#allocation2 + $0x8] sm:$0x77]  ;;  %296 = vst [vmem:[#allocation3 + $0x48] sm:$0x70] %v286_v37  ;;  %v245_v42 = vcombine.high %v231_v32, %v231_v32 }
  0x13   :  { %372 = vrot.lane.b32.xlu1 %v356_v8, %s5235_s19  ;;  %293 = vst [vmem:[#allocation3 + $0x50] sm:$0x70] %v289_v33  ;;  %v87_v35 = vcombine.high %v73_v34, %v73_v34  ;;  %295 = vst [vmem:[#allocation3 + $0x8] sm:$0x70] %v290_v39  ;;  %v232_v44 = vld [vmem:[#allocation2 + $0x10] sm:$0x7]  ;;  %v88_v45 = vcombine.high %v74_v38, %v74_v38 }
  0x14   :  { %315 = vrot.lane.b32.xlu0 %v311_v7, %s5236_s20  ;;  %v75_v46 = vld [vmem:[#allocation2 + $0x10] sm:$0x7] }
  0x17   :  { %374 = vrot.lane.b32.xlu1 %v370_v10, %s5235_s19 }
  0x18   :  { %429 = vrot.lane.b32.xlu0 %v425_v11, %s5237_s21 }
  0x1b   :  { %319 = vrot.lane.b32.xlu1 %v312_v12, %s5236_s20 }
  0x1c   :  { %427 = vrot.lane.b32.xlu0 %v411_v9, %s5237_s21 }
  0x1f   :  { %378 = vrot.lane.b32.xlu1 %v371_v13, %s5235_s19 }
  0x20   :  { %321 = vrot.lane.b32.xlu0 %v299_v14, %s5236_s20  ;;  %v31_v14 = vand.u32 15, %v27_v61 }
  0x22   :  { %vm5377_vm11 = vcmp.le.s32.totalorder %v31_v14, 14  ;;  %vm5382_vm13 = vcmp.ge.s32.totalorder %v31_v14, 1 }
  0x23   :  { %433 = vrot.lane.b32.xlu1 %v426_v15, %s5237_s21 }
  0x24   :  { %380 = vrot.lane.b32.xlu0 %v358_v16, %s5235_s19 }
  0x27   :  { %484 = vrot.lane.b32.xlu1 %v480_v18, %s5238_s0  ;;  %v36_v18 = vshra.s32 %v28_v5, 4 }
  0x28   :  { %435 = vrot.lane.b32.xlu0 %v413_v19, %s5237_s21 }
  0x29   :  { %v5386_v33 = vand.u32 15, %v36_v18 }
  0x2b   :  { %482 = vrot.lane.b32.xlu1 %v466_v17, %s5238_s0  ;;  %v5364_v17 = vand.u32 15, %v35_v4 }
  0x2c   :  { %486 = vrot.lane.b32.xlu0 %v467_v20, %s5238_s0 }
  0x2d   :  { %vm47_vm12 = vcmp.le.s32.totalorder %v5364_v17, 14 }
  0x2e   :  { %vm67_vm14 = vmand %vm47_vm12, %vm5382_vm13 }
  0x2f   :  { %490 = vrot.lane.b32.xlu1 %v468_v22, %s5238_s0 }
  0x30   :  { %488 = vrot.lane.b32.xlu0 %v481_v21, %s5238_s0  ;;  %s5253_s0 = smov 3  }
  0x33   :  { %136 = vrot.lane.b32.xlu1 %v117_v25, %s5239_s22  ;;  %v32_v25 = vand.u32 15, %v28_v5 }
  0x34   :  { %134 = vrot.lane.b32.xlu0 %v130_v24, %s5239_s22 }
  0x35   :  { %vm5398_vm15 = vcmp.le.s32.totalorder %v32_v25, 14 }
  0x37   :  { %191 = vrot.lane.b32.xlu1 %v172_v29, %s5240_s23 }
  0x38   :  { %189 = vrot.lane.b32.xlu0 %v185_v28, %s5240_s23 }
  0x3b   :  { %250 = vrot.lane.b32.xlu1 %v231_v32, %s5241_s24 }
  0x3c   :  { %248 = vrot.lane.b32.xlu0 %v244_v31, %s5241_s24 }
  0x3f   :  { %187 = vrot.lane.b32.xlu1 %v171_v26, %s5240_s23 }
  0x40   :  { %132 = vrot.lane.b32.xlu0 %v116_v23, %s5239_s22 }
  0x43   :  { %91 = vrot.lane.b32.xlu1 %v87_v35, %s5242_s25 }
  0x44   :  { %246 = vrot.lane.b32.xlu0 %v230_v30, %s5241_s24 }
  0x47   :  { %138 = vrot.lane.b32.xlu1 %v131_v36, %s5239_s22 }
  0x48   :  { %93 = vrot.lane.b32.xlu0 %v74_v38, %s5242_s25 }
  0x4b   :  { %193 = vrot.lane.b32.xlu1 %v186_v40, %s5240_s23 }
  0x4c   :  { %140 = vrot.lane.b32.xlu0 %v118_v41, %s5239_s22 }
  0x4f   :  { %252 = vrot.lane.b32.xlu1 %v245_v42, %s5241_s24 }
  0x50   :  { %195 = vrot.lane.b32.xlu0 %v173_v43, %s5240_s23  ;;  %v5172_v43 = vld [vmem:[%s8576_s1 + $0x80] sm:$0xff]   ;;  %s5255_s23 = smov 123  }
  0x53   :  { %89 = vrot.lane.b32.xlu1 %v73_v34, %s5242_s25 }
  0x54   :  { %254 = vrot.lane.b32.xlu0 %v232_v44, %s5241_s24 }
  0x57   :  { %97 = vrot.lane.b32.xlu1 %v75_v46, %s5242_s25 }
  0x58   :  { %95 = vrot.lane.b32.xlu0 %v88_v45, %s5242_s25  ;;  %s5256_s25 = smov 125  }
  0x7d   :  { %v5316_v56 = vpop.permute.xlu1 %376 }
  0x7e   :  { %v318_v57 = vpop.permute.xlu0 %317 }
  0x81   :  { %v5318_v58 = vpop.permute.xlu1 %431 }
  0x82   :  { %v314_v59 = vpop.permute.xlu0 %313 }
  0x85   :  { %v373_v1 = vpop.permute.xlu1 %372 }
  0x86   :  { %v316_v2 = vpop.permute.xlu0 %315 }
  0x87   :  { %v324_v6 = vsel %vm8581_vm0, %v314_v59, %v316_v2  ;;  %v325_v7 = vsel %vm8581_vm0, %v316_v2, %v318_v57 }
  0x88   :  { %v332_v8 = vsel %vm5323_vm1, %v324_v6, 0.0  ;;  %v333_v9 = vsel %vm5327_vm2, %v325_v7, 0.0 }
  0x89   :  { %v340_v11 = vrot.slane %v332_v8, 1  ;;  %v341_v12 = vrot.slane %v333_v9, 1  ;;  %v375_v15 = vpop.permute.xlu1 %374 }
  0x8a   :  { %v430_v16 = vpop.permute.xlu0 %429  ;;  %v383_v19 = vsel %vm382_vm8, %v373_v1, %v375_v15  ;;  %v384_v20 = vsel %vm382_vm8, %v375_v15, %v5316_v56 }
  0x8b   :  { %348 = vst [vmem:[#allocation3 + $0x40] ss:$20 sps:$4 sm:$0x83] %v340_v11   ;;  %349 = vst [vmem:[#allocation3 + $0x20] ss:$76 sps:$4 sm:$0x83] %v341_v12   ;;  %v439_v21 = vsel %vm437_vm9, %v430_v16, %v5318_v58 }
  0x8c   :  { %v391_v22 = vsel %vm5352_vm7, %v383_v19, 0.0  ;;  %v392_v23 = vsel %vm5360_vm10, %v384_v20, 0.0  ;;  %v447_v24 = vsel %vm8580_vm5, %v439_v21, 0.0  ;;  %vm48_vm7 = vcmp.le.s32.totalorder %v5386_v33, 14 }
  0x8d   :  { %v399_v26 = vrot.slane %v391_v22, 6  ;;  %v400_v27 = vrot.slane %v392_v23, 6  ;;  %v455_v28 = vrot.slane %v447_v24, 3  ;;  %v320_v30 = vpop.permute.xlu1 %319  ;;  %vm5403_vm10 = vcmp.ge.s32.totalorder %v32_v25, 1 }
  0x8e   :  { %v428_v31 = vpop.permute.xlu0 %427  ;;  %v326_v34 = vsel %vm8581_vm0, %v318_v57, %v320_v30  ;;  %vm68_vm5 = vmand %vm48_vm7, %vm5403_vm10  ;;  %v5244_v19 = vmov 65535  }
  0x8f   :  { %407 = vst [vmem:[#allocation3 + $0x40] sm:$0x1c] %v399_v26  ;;  %408 = vst [vmem:[#allocation3 + $0x20] sm:$0x1c] %v400_v27  ;;  %v438_v35 = vsel %vm437_vm9, %v428_v31, %v430_v16  ;;  %v334_v36 = vsel %vm5377_vm11, %v326_v34, 0.0 }
  0x90   :  { %463 = vst [vmem:[#allocation3 + $0x20] sm:$0xe0] %v455_v28  ;;  %v446_v37 = vsel %vm45_vm3, %v438_v35, 0.0  ;;  %v342_v38 = vrot.slane %v334_v36, 1 }
  0x91   :  { %v454_v39 = vrot.slane %v446_v37, 3  ;;  %v379_v41 = vpop.permute.xlu1 %378 }
  0x92   :  { %v322_v42 = vpop.permute.xlu0 %321  ;;  %350 = vst [vmem:[#allocation3 + $0x10] ss:$-4 sps:$4 sm:$0x83] %v342_v38   ;;  %v385_v44 = vsel %vm382_vm8, %v5316_v56, %v379_v41 }
  0x93   :  { %462 = vst [vmem:[#allocation3 + $0x40] sm:$0xe0] %v454_v39  ;;  %v327_v45 = vsel %vm8581_vm0, %v320_v30, %v322_v42  ;;  %v393_v46 = vsel %vm67_vm14, %v385_v44, 0.0  ;;  %vm492_vm14 = vcmask 908288  }
  0x94   :  { %v335_v47 = vsel %vm5398_vm15, %v327_v45, 0.0  ;;  %v401_v48 = vrot.slane %v393_v46, 6 }
  0x95   :  { %v343_v50 = vrot.slane %v335_v47, 1  ;;  %v434_v51 = vpop.permute.xlu1 %433 }
  0x96   :  { %v381_v52 = vpop.permute.xlu0 %380  ;;  %409 = vst [vmem:[#allocation3 + $0x10] sm:$0x1c] %v401_v48  ;;  %v440_v53 = vsel %vm437_vm9, %v5318_v58, %v434_v51 }
  0x97   :  { %351 = vst [vmem:[#allocation3 + $0x38] ss:$20 sps:$4 sm:$0x83] %v343_v50   ;;  %v386_v54 = vsel %vm382_vm8, %v379_v41, %v381_v52  ;;  %v448_v56 = vsel %vm47_vm12, %v440_v53, 0.0  ;;  %vm69_vm8 = vmand %vm45_vm3, %vm5323_vm1  ;;  %v519_v24 = vld [vmem:[#allocation3 + $0x20] sm:$0xff] }
  0x98   :  { %v394_v57 = vsel %vm68_vm5, %v386_v54, 0.0  ;;  %v456_v59 = vrot.slane %v448_v56, 3  ;;  %vm8648_vm5 = vcmp.le.s32.totalorder %v5320_v60, 14  ;;  %vm71_vm3 = vmand %vm47_vm12, %vm5377_vm11  ;;  %vm42_vm12 = vcmp.ge.s32.totalorder %v5320_v60, 1 }
  0x99   :  { %v402_v61 = vrot.slane %v394_v57, 6  ;;  %v485_v1 = vpop.permute.xlu1 %484  ;;  %vm70_vm0 = vmand %vm8648_vm5, %vm5327_vm2  ;;  %vm538_vm5 = vcmask 1044480  }
  0x9a   :  { %v436_v2 = vpop.permute.xlu0 %435  ;;  %464 = vst [vmem:[#allocation3 + $0x10] sm:$0xe0] %v456_v59  ;;  %v540_v20 = vsel %vm538_vm5, 4294967295, %v5244_v19  ;;  %v518_v28 = vld [vmem:[#allocation3 + $0x40] sm:$0xff]  ;;  %vm58_vm5 = vmand %vm42_vm12, %vm5337_vm6 }
  0x9b   :  { %410 = vst [vmem:[#allocation3 + $0x38] sm:$0x1c] %v402_v61  ;;  %v441_v4 = vsel %vm437_vm9, %v434_v51, %v436_v2  ;;  %vm72_vm9 = vmand %vm48_vm7, %vm5398_vm15 }
  0x9c   :  { %v449_v5 = vsel %vm48_vm7, %v441_v4, 0.0  ;;  %vm197_vm7 = vcmask 121856  }
  0x9d   :  { %v457_v58 = vrot.slane %v449_v5, 3  ;;  %v483_v6 = vpop.permute.xlu1 %482 }
  0x9e   :  { %v487_v7 = vpop.permute.xlu0 %486  ;;  %v493_v8 = vsel %vm492_vm14, %v483_v6, %v485_v1 }
  0x9f   :  { %465 = vst [vmem:[#allocation3 + $0x38] sm:$0xe0] %v457_v58  ;;  %v494_v9 = vsel %vm492_vm14, %v485_v1, %v487_v7  ;;  %v501_v10 = vsel %vm69_vm8, %v493_v8, 0.0  ;;  %vm539_vm8 = vcmask 1045504  }
  0xa0   :  { %v502_v11 = vsel %vm70_vm0, %v494_v9, 0.0  ;;  %505 = vst [vmem:[#allocation3 + $0x60] sm:$0x7] %v501_v10  ;;  %vm8582_vm0 = vcmask 130048   ;;  %v541_v25 = vsel %vm539_vm8, %v540_v20, 0  ;;  %vm43_vm8 = vcmp.ge.s32.totalorder %v5364_v17, 1 }
  0xa1   :  { %506 = vst [vmem:[#allocation3 + $0x70] sm:$0x7] %v502_v11  ;;  %v491_v12 = vpop.permute.xlu1 %490  ;;  %v520_v42 = vld [vmem:[#allocation3 + $0x10] sm:$0xff] }
  0xa2   :  { %v489_v13 = vpop.permute.xlu0 %488 }
  0xa3   :  { %v495_v14 = vsel %vm492_vm14, %v487_v7, %v489_v13  ;;  %v496_v15 = vsel %vm492_vm14, %v489_v13, %v491_v12  ;;  %vm62_vm14 = vmand %vm42_vm12, %vm5327_vm2  ;;  %vm41_vm2 = vcmp.ge.s32.totalorder %v5314_v55, 1 }
  0xa4   :  { %v503_v16 = vsel %vm71_vm3, %v495_v14, 0.0  ;;  %v504_v18 = vsel %vm72_vm9, %v496_v15, 0.0  ;;  %vm256_vm3 = vcmask 7168   ;;  %vm61_vm9 = vmand %vm41_vm2, %vm5323_vm1  ;;  %vm99_vm1 = vcmask 138240  }
  0xa5   :  { %507 = vst [vmem:[#allocation3 + $0x78] sm:$0x7] %v503_v16  ;;  %508 = vst [vmem:[#allocation3 + $0x28] sm:$0x7] %v504_v18  ;;  %v5445_v21 = vpop.permute.xlu1 %136 }
  0xa6   :  { %v135_v22 = vpop.permute.xlu0 %134  ;;  %v521_v45 = vld [vmem:[#allocation3 + $0x38] sm:$0xff] }
  0xa7   :  { %v144_v23 = vsel %vm8582_vm0, %v135_v22, %v5445_v21  ;;  %v522_v30 = vld [vmem:[#allocation3 + $0x60] sm:$0x7] }
  0xa8   :  { %v152_v26 = vsel %vm42_vm12, %v144_v23, 0.0  ;;  %v523_v27 = vld [vmem:[#allocation3 + $0x70] sm:$0x7]  ;;  %v530_v35 = vpack.c.bf16 %v522_v30, %v518_v28 }
  0xa9   :  { %v160_v31 = vrot.slane %v152_v26, 5  ;;  %v531_v34 = vpack.c.bf16 %v523_v27, %v519_v24  ;;  %v5455_v36 = vpop.permute.xlu1 %191 }
  0xaa   :  { %v190_v37 = vpop.permute.xlu0 %189  ;;  %v543_v41 = vand.u32 %v541_v25, %v530_v35 }
  0xab   :  { %168 = vst [vmem:[#allocation3] sm:$0x38] %v160_v31  ;;  %v199_v38 = vsel %vm197_vm7, %v190_v37, %v5455_v36  ;;  %v546_v39 = vand.u32 %v541_v25, %v531_v34 }
  0xac   :  { %v207_v44 = vsel %vm62_vm14, %v199_v38, 0.0  ;;  %v525_v46 = vld [vmem:[#allocation3 + $0x28] sm:$0x7]  ;;  %v524_v63 = vld [vmem:[#allocation3 + $0x78] sm:$0x7]  ;;  %vm44_vm14 = vcmp.ge.s32.totalorder %v5386_v33, 1 }
  0xad   :  { %v215_v47 = vrot.slane %v207_v44, 2  ;;  %566 = vmatprep.subr.bf16.mxu0 %v546_v39  ;;  %v533_v48 = vpack.c.bf16 %v525_v46, %v521_v45  ;;  %v532_v50 = vpack.c.bf16 %v524_v63, %v520_v42  ;;  %v251_v51 = vpop.permute.xlu1 %250  ;;  %vm64_vm12 = vmand %vm44_vm14, %vm5398_vm15  ;;  %v509_v33 = vld [vmem:[%s8576_s1] sm:$0xf] }
  0xae   :  { %567 = vmatpush1.bf16.msra.mxu0 %v543_v41  ;;  %v249_v52 = vpop.permute.xlu0 %248  ;;  %vm59_vm15 = vmand %vm43_vm8, %vm5382_vm13 }
  0xaf   :  { %223 = vst [vmem:[#allocation3 + $0x68] ss:$-100 sps:$4 sm:$0xc1] %v215_v47   ;;  %v258_v53 = vsel %vm256_vm3, %v249_v52, %v251_v51  ;;  %v552_v54 = vand.u32 %v541_v25, %v533_v48  ;;  %v549_v56 = vand.u32 %v541_v25, %v532_v50 }
  0xb0   :  { %v266_v57 = vsel %vm5337_vm6, %v258_v53, 0.0  ;;  %vm63_vm6 = vmand %vm43_vm8, %vm5377_vm11  ;;  %v5173_v53 = vld [vmem:[%s8576_s1 + $0x40] sm:$0xff]  }
  0xb1   :  { %v274_v59 = vrot.slane %v266_v57, 7  ;;  %607 = vmatprep.subr.bf16.mxu1 %v552_v54  ;;  %v188_v61 = vpop.permute.xlu1 %187  ;;  %vm57_vm11 = vmand %vm41_vm2, %vm5332_vm4  ;;  %v5174_v54 = vld [vmem:[%s8576_s1 + $0x78] sm:$0xff]  }
  0xb2   :  { %608 = vmatpush1.bf16.msra.mxu1 %v549_v56  ;;  %v133_v1 = vpop.permute.xlu0 %132  ;;  %v198_v2 = vsel %vm197_vm7, %v188_v61, %v190_v37 }
  0xb3   :  { %282 = vst [vmem:[#allocation3 + $0x68] sm:$0xe] %v274_v59  ;;  %v143_v4 = vsel %vm8582_vm0, %v133_v1, %v135_v22  ;;  %v206_v5 = vsel %vm61_vm9, %v198_v2, 0.0  ;;  %v5176_v2 = vld [vmem:[%s8576_s1 + $0x100] sm:$0xff]  }
  0xb4   :  { %v151_v58 = vsel %vm41_vm2, %v143_v4, 0.0  ;;  %v214_v6 = vrot.slane %v206_v5, 2  ;;  %v5175_v4 = vld [vmem:[%s8576_s1 + $0x38] sm:$0xff]   ;;  %v5177_v5 = vld [vmem:[%s8576_s1 + $0xc0] sm:$0xff]  }
  0xb5   :  { %v159_v7 = vrot.slane %v151_v58, 5  ;;  %v92_v9 = vpop.permute.xlu1 %91  ;;  %v5178_v58 = vld [vmem:[%s8576_s1 + $0x70] sm:$0xff]  }
  0xb6   :  { %v247_v8 = vpop.permute.xlu0 %246  ;;  %222 = vst [vmem:[#allocation3 + $0x50] ss:$-28 sps:$4 sm:$0xc1] %v214_v6   ;;  %v5180_v6 = vld [vmem:[%s8576_s1 + $0xf8] sm:$0xff]  }
  0xb7   :  { %167 = vst [vmem:[#allocation3 + $0x30] sm:$0x38] %v159_v7  ;;  %v257_v62 = vsel %vm256_vm3, %v247_v8, %v249_v52  ;;  %v5179_v7 = vld [vmem:[%s8576_s1 + $0x30] sm:$0xff]   ;;  %v5181_v8 = vld [vmem:[%s8576_s1 + $0xb8] sm:$0xff]  }
  0xb8   :  { %v265_v10 = vsel %vm5332_vm4, %v257_v62, 0.0  ;;  %vm60_vm4 = vmand %vm44_vm14, %vm5403_vm10  ;;  %v5184_v62 = vld [vmem:[%s8576_s1 + $0xf0] sm:$0xff]  }
  0xb9   :  { %v273_v11 = vrot.slane %v265_v10, 7  ;;  %v139_v13 = vpop.permute.xlu1 %138  ;;  %v5183_v10 = vld [vmem:[%s8576_s1 + $0x28] sm:$0xff]  }
  0xba   :  { %v94_v12 = vpop.permute.xlu0 %93  ;;  %v145_v15 = vsel %vm8582_vm0, %v5445_v21, %v139_v13  ;;  %v515_v35 = vld [vmem:[#allocation3 + $0x68] sm:$0xff] }
  0xbb   :  { %281 = vst [vmem:[#allocation3 + $0x50] sm:$0xe] %v273_v11  ;;  %v101_v14 = vsel %vm99_vm1, %v92_v9, %v94_v12  ;;  %v153_v18 = vsel %vm43_vm8, %v145_v15, 0.0  ;;  %v5185_v11 = vld [vmem:[%s8576_s1 + $0xb0] sm:$0xff]   ;;  %v5189_v15 = vld [vmem:[%s8576_s1 + $0xa8] sm:$0xff]   ;;  %vm1123_vm8 = vcmask 982016  }
  0xbc   :  { %v109_v16 = vsel %vm58_vm5, %v101_v14, 0.0  ;;  %v161_v19 = vrot.slane %v153_v18, 5  ;;  %v5187_v14 = vld [vmem:[%s8576_s1 + $0x20] sm:$0xff]  }
  0xbd   :  { %113 = vst [vmem:[#allocation3] sm:$0x7] %v109_v16  ;;  %v194_v3 = vpop.permute.xlu1 %193  ;;  %v5190_v16 = vld [vmem:[%s8576_s1 + $0x58] sm:$0xff]   ;;  %v5192_v18 = vld [vmem:[%s8576_s1 + $0xe0] sm:$0xff]  }
  0xbe   :  { %v141_v60 = vpop.permute.xlu0 %140  ;;  %169 = vst [vmem:[#allocation3 + $0x58] sm:$0x38] %v161_v19  ;;  %v200_v21 = vsel %vm197_vm7, %v5455_v36, %v194_v3  ;;  %v5191_v19 = vld [vmem:[%s8576_s1 + $0x18] sm:$0xff]  }
  0xbf   :  { %v146_v20 = vsel %vm8582_vm0, %v139_v13, %v141_v60  ;;  %v208_v23 = vsel %vm63_vm6, %v200_v21, 0.0  ;;  %v5188_v13 = vld [vmem:[%s8576_s1 + $0xe8] sm:$0xff]   ;;  %v5193_v60 = vld [vmem:[%s8576_s1 + $0xa0] sm:$0xff]   ;;  %v5195_v21 = vld [vmem:[%s8576_s1 + $0x10] sm:$0xff]  }
  0xc0   :  { %v154_v22 = vsel %vm44_vm14, %v146_v20, 0.0  ;;  %v216_v25 = vrot.slane %v208_v23, 2  ;;  %v5196_v20 = vld [vmem:[%s8576_s1 + $0xd8] sm:$0xff]   ;;  %v5198_v23 = vld [vmem:[%s8576_s1 + $0x48] sm:$0xff]   ;;  %vm1008_vm14 = vcmask 72704  }
  0xc1   :  { %v162_v24 = vrot.slane %v154_v22, 5  ;;  %v253_v26 = vpop.permute.xlu1 %252  ;;  %v5197_v22 = vld [vmem:[%s8576_s1 + $0x98] sm:$0xff]  }
  0xc2   :  { %v196_v29 = vpop.permute.xlu0 %195  ;;  %224 = vst [vmem:[#allocation3 + $0x8] ss:$84 sps:$4 sm:$0xc1] %v216_v25   ;;  %v259_v28 = vsel %vm256_vm3, %v251_v51, %v253_v26  ;;  %v514_v32 = vld [vmem:[#allocation3 + $0x50] sm:$0xff]  ;;  %v5200_v25 = vld [vmem:[%s8576_s1 + $0xd0] sm:$0xff]  }
  0xc3   :  { %170 = vst [vmem:[#allocation3 + $0x18] sm:$0x38] %v162_v24  ;;  %v201_v27 = vsel %vm197_vm7, %v194_v3, %v196_v29  ;;  %v267_v31 = vsel %vm5382_vm13, %v259_v28, 0.0  ;;  %vm534_vm13 = vcmask 220160   ;;  %v5194_v3 = vld [vmem:[%s8576_s1 + $0x50] sm:$0xff]   ;;  %v5199_v24 = vld [vmem:[%s8576_s1 + $0x8] sm:$0xff]  }
  0xc4   :  { %v209_v30 = vsel %vm64_vm12, %v201_v27, 0.0  ;;  %v511_v34 = vld [vmem:[#allocation3] sm:$0xff]  ;;  %v275_v37 = vrot.slane %v267_v31, 7  ;;  %v5201_v29 = vld [vmem:[%s8576_s1 + $0x90] sm:$0xff]   ;;  %v5202_v27 = vld [vmem:[%s8576_s1 + $0xc8] sm:$0xff]   ;;  %vm1025_vm7 = vcmask 64512  }
  0xc5   :  { %v217_v36 = vrot.slane %v209_v30, 2  ;;  %v527_v40 = vpack.c.bf16 %v515_v35, %v511_v34  ;;  %v90_v39 = vpop.permute.xlu1 %89  ;;  %v5203_v28 = vld [vmem:[%s8576_s1 + $0x88] sm:$0xff]   ;;  %v704_v30 = vld [vmem:[%s8577_s2] sm:$0xff]  ;;  %v1029_v35 = vld [vmem:[%s8577_s2 + $0x10] sm:$0xff]  ;;  %vm1105_vm12 = vcmask 990208  }
  0xc6   :  { %v255_v38 = vpop.permute.xlu0 %254  ;;  %283 = vst [vmem:[#allocation3 + $0x8] sm:$0xe] %v275_v37  ;;  %v100_v42 = vsel %vm99_vm1, %v90_v39, %v92_v9  ;;  %v5182_v9 = vld [vmem:[%s8576_s1 + $0x68] sm:$0xff]   ;;  %707 = vperm.xlu0 %4912, %v704_v30   ;;  %v1062_v34 = vld [vmem:[%s8577_s2 + $0x20] sm:$0xff]  ;;  %v1697_v30 = vld [vmem:[%s8577_s2 + $0x130] sm:$0xff] }
  0xc7   :  { %225 = vst [vmem:[#allocation3 + $0x48] ss:$-44 sps:$4 sm:$0xc1] %v217_v36   ;;  %v260_v41 = vsel %vm256_vm3, %v253_v26, %v255_v38  ;;  %568 = vmatprep.subr.bf16.mxu0 %v527_v40  ;;  %v108_v45 = vsel %vm57_vm11, %v100_v42, 0.0  ;;  %v5615_v26 = vld [vmem:[#allocation6] sm:$0xff]  ;;  %v1012_v31 = vld [vmem:[%s8577_s2 + $0x8] sm:$0xff] }
  0xc8   :  { %v268_v44 = vsel %vm5403_vm10, %v260_v41, 0.0  ;;  %112 = vst [vmem:[#allocation3 + $0x30] sm:$0x7] %v108_v45  ;;  %1015 = vperm.xlu1 %4913, %v1012_v31   ;;  %v1046_v36 = vld [vmem:[%s8577_s2 + $0x18] sm:$0xff]  ;;  %v1070_v37 = vld [vmem:[%s8577_s2 + $0x28] sm:$0xff]  ;;  %v1091_v38 = vld [vmem:[%s8577_s2 + $0x30] sm:$0xff] }
  0xc9   :  { %v276_v55 = vrot.slane %v268_v44, 7  ;;  %v98_v46 = vpop.permute.xlu1 %97  ;;  %v1109_v40 = vld [vmem:[%s8577_s2 + $0x38] sm:$0xff]  ;;  %v1127_v39 = vld [vmem:[%s8577_s2 + $0x40] sm:$0xff]  ;;  %v1145_v41 = vld [vmem:[%s8577_s2 + $0x48] sm:$0xff]  ;;  %vm8605_vm10 = vmmov 0  }
  0xca   :  { %v96_v0 = vpop.permute.xlu0 %95  ;;  %1065 = vperm.xlu0 %4912, %v1062_v34   ;;  %v1951_v31 = vld [vmem:[%s8577_s2 + $0x1d0] sm:$0xff]  ;;  %v1745_v34 = vld [vmem:[%s8577_s2 + $0x160] sm:$0xff] }
  0xcb   :  { %284 = vst [vmem:[#allocation3 + $0x48] sm:$0xe] %v276_v55  ;;  %v102_v63 = vsel %vm99_vm1, %v94_v12, %v96_v0  ;;  %v103_v47 = vsel %vm99_vm1, %v96_v0, %v98_v46  ;;  %v5186_v12 = vld [vmem:[%s8576_s1 + $0x60] sm:$0xff]   ;;  %vm1042_vm1 = vcmask 56320  }
  0xcc   :  { %v110_v48 = vsel %vm59_vm15, %v102_v63, 0.0  ;;  %v111_v50 = vsel %vm60_vm4, %v103_v47, 0.0  ;;  %1032 = vperm.xlu1 %4913, %v1029_v35   ;;  %v2041_v35 = vld [vmem:[%s8577_s2 + $0x200] sm:$0xff]  ;;  %vm8657_vm15 = vcmask 1039360  }
  0xcd   :  { %114 = vst [vmem:[#allocation3 + $0x58] sm:$0x7] %v110_v48  ;;  %115 = vst [vmem:[#allocation3 + $0x18] sm:$0x7] %v111_v50  ;;  %v516_v52 = vld [vmem:[#allocation3 + $0x8] sm:$0xff] }
  0xce   :  { %1049 = vperm.xlu0 %4912, %v1046_v36   ;;  %v2131_v36 = vld [vmem:[%s8577_s2 + $0x230] sm:$0xff] }
  0xcf   :  { %v510_v17 = vld [vmem:[#allocation3 + $0x30] sm:$0xff] }
  0xd0   :  { %v526_v51 = vpack.c.bf16 %v514_v32, %v510_v17  ;;  %1073 = vperm.xlu1 %4913, %v1070_v37  }
  0xd2   :  { %569 = vmatpush1.bf16.msra.mxu0 %v526_v51  ;;  %v517_v57 = vld [vmem:[#allocation3 + $0x48] sm:$0xff]  ;;  %1112 = vperm.xlu0 %4912, %v1109_v40  }
  0xd3   :  { %4693 = vmatprep.subr.bf16.mxu0 %v5172_v43 }
  0xd4   :  { %v513_v56 = vld [vmem:[#allocation3 + $0x18] sm:$0xff]  ;;  %1094 = vperm.xlu1 %4913, %v1091_v38   ;;  %v1446_v38 = vld [vmem:[%s8577_s2 + $0xa8] sm:$0xff] }
  0xd5   :  { %v512_v59 = vld [vmem:[#allocation3 + $0x58] sm:$0xff]  ;;  %v529_v61 = vpack.c.bf16 %v517_v57, %v513_v56  ;;  %4618 = vmatmul.mubr.msk.bf16.vlgmr.msra.gmra.mxu0 %vm534_vm13, %v509_v33 }
  0xd6   :  { %v528_v1 = vpack.c.bf16 %v516_v52, %v512_v59  ;;  %4694 = vmatpush3.bf16.msra.mxu0 %v5173_v53  ;;  %1004 = vrot.lane.b32.xlu0 %v5615_v26, %s5245_s9 }
  0xd7   :  { %609 = vmatprep.subr.bf16.mxu1 %v529_v61  ;;  %4695 = vmatprep.subr.bf16.mxu0 %v5174_v54 }
  0xd8   :  { %610 = vmatpush1.bf16.msra.mxu1 %v528_v1  ;;  %1130 = vperm.xlu1 %4913, %v1127_v39  }
  0xd9   :  { %4715 = vmatprep.subr.bf16.mxu1 %v5176_v2 }
  0xda   :  { %4696 = vmatpush3.bf16.msra.mxu0 %v5175_v4  ;;  %1021 = vrot.lane.b32.xlu0 %v5615_v26, %s5246_s10 }
  0xdb   :  { %4619 = vmatmul.mubr.msk.bf16.vlgmr.msra.gmra.mxu1 %vm534_vm13, %v509_v33  ;;  %4697 = vmatprep.subr.bf16.mxu0 %v5178_v58 }
  0xdc   :  { %4716 = vmatpush3.bf16.msra.mxu1 %v5177_v5  ;;  %1038 = vrot.lane.b32.xlu1 %v5615_v26, %s5249_s15 }
  0xdd   :  { %4717 = vmatprep.subr.bf16.mxu1 %v5180_v6  ;;  %v1166_v6 = vld [vmem:[%s8577_s2 + $0x58] sm:$0xff] }
  0xde   :  { %4698 = vmatpush3.bf16.msra.mxu0 %v5179_v7  ;;  %1055 = vrot.lane.b32.xlu0 %v5615_v26, %s5241_s24  ;;  %v1232_v7 = vld [vmem:[%s8577_s2 + $0x88] sm:$0xff] }
  0xdf   :  { %4699 = vmatprep.subr.bf16.mxu0 %v5182_v9  ;;  %v1228_v9 = vld [vmem:[%s8577_s2 + $0x68] sm:$0xff] }
  0xe0   :  { %4718 = vmatpush3.bf16.msra.mxu1 %v5181_v8  ;;  %v1230_v8 = vld [vmem:[%s8577_s2 + $0x78] sm:$0xff] }
  0xe1   :  { %4719 = vmatprep.subr.bf16.mxu1 %v5184_v62  ;;  %v1448_v62 = vld [vmem:[%s8577_s2 + $0xb8] sm:$0xff] }
  0xe2   :  { %4700 = vmatpush3.bf16.msra.mxu0 %v5183_v10  ;;  %1148 = vperm.xlu0 %4912, %v1145_v41   ;;  %v1532_v10 = vld [vmem:[%s8577_s2 + $0xe8] sm:$0xff]  ;;  %v1530_v41 = vld [vmem:[%s8577_s2 + $0xd8] sm:$0xff] }
  0xe3   :  { %4701 = vmatprep.subr.bf16.mxu0 %v5186_v12  ;;  %v1700_v12 = vld [vmem:[%s8577_s2 + $0x148] sm:$0xff] }
  0xe4   :  { %4720 = vmatpush3.bf16.msra.mxu1 %v5185_v11  ;;  %v1155_v11 = vld [vmem:[%s8577_s2 + $0x50] sm:$0xff] }
  0xe5   :  { %4721 = vmatprep.subr.bf16.mxu1 %v5188_v13  ;;  %v1231_v13 = vld [vmem:[%s8577_s2 + $0x80] sm:$0xff] }
  0xe6   :  { %4702 = vmatpush3.bf16.msra.mxu0 %v5187_v14  ;;  %1086 = vrot.lane.b32.xlu0 %v5615_v26, %s5236_s20  ;;  %v1748_v14 = vld [vmem:[%s8577_s2 + $0x178] sm:$0xff] }
  0xe7   :  { %4703 = vmatprep.subr.bf16.mxu0 %v5190_v16  ;;  %v1616_v16 = vld [vmem:[%s8577_s2 + $0x118] sm:$0xff] }
  0xe8   :  { %4722 = vmatpush3.bf16.msra.mxu1 %v5189_v15  ;;  %v1229_v15 = vld [vmem:[%s8577_s2 + $0x70] sm:$0xff] }
  0xe9   :  { %4723 = vmatprep.subr.bf16.mxu1 %v5192_v18  ;;  %v1227_v18 = vld [vmem:[%s8577_s2 + $0x60] sm:$0xff] }
  0xea   :  { %4704 = vmatpush3.bf16.msra.mxu0 %v5191_v19  ;;  %1103 = vrot.lane.b32.xlu0 %v5615_v26, %s5247_s13  ;;  %v1862_v19 = vld [vmem:[%s8577_s2 + $0x1a8] sm:$0xff] }
  0xeb   :  { %4705 = vmatprep.subr.bf16.mxu0 %v5194_v3  ;;  %v1952_v3 = vld [vmem:[%s8577_s2 + $0x1d8] sm:$0xff] }
  0xec   :  { %4724 = vmatpush3.bf16.msra.mxu1 %v5193_v60  ;;  %v1447_v60 = vld [vmem:[%s8577_s2 + $0xb0] sm:$0xff] }
  0xed   :  { %4725 = vmatprep.subr.bf16.mxu1 %v5196_v20  ;;  %v1531_v20 = vld [vmem:[%s8577_s2 + $0xe0] sm:$0xff] }
  0xee   :  { %4706 = vmatpush3.bf16.msra.mxu0 %v5195_v21  ;;  %1121 = vrot.lane.b32.xlu0 %v5615_v26, %s5248_s14  ;;  %v2042_v21 = vld [vmem:[%s8577_s2 + $0x208] sm:$0xff] }
  0xef   :  { %4707 = vmatprep.subr.bf16.mxu0 %v5198_v23  ;;  %v5752_v23 = vpack.i.bf16 %v5615_v26, %v5615_v26 }
  0xf0   :  { %4726 = vmatpush3.bf16.msra.mxu1 %v5197_v22  ;;  %v1699_v22 = vld [vmem:[%s8577_s2 + $0x140] sm:$0xff] }
  0xf1   :  { %4727 = vmatprep.subr.bf16.mxu1 %v5200_v25  ;;  %v1445_v25 = vld [vmem:[%s8577_s2 + $0xa0] sm:$0xff] }
  0xf2   :  { %4708 = vmatpush3.bf16.msra.mxu0 %v5199_v24  ;;  %v1747_v24 = vld [vmem:[%s8577_s2 + $0x170] sm:$0xff] }
  0xf3   :  { %4783 = vmatprep.subr.bf16.mxu0 %v5615_v26 }
  0xf4   :  { %4728 = vmatpush3.bf16.msra.mxu1 %v5201_v29  ;;  %v1615_v29 = vld [vmem:[%s8577_s2 + $0x110] sm:$0xff] }
  0xf5   :  { %4729 = vmatprep.subr.bf16.mxu1 %v5202_v27  ;;  %v1529_v27 = vld [vmem:[%s8577_s2 + $0xd0] sm:$0xff] }
  0xf8   :  { %4730 = vmatpush3.bf16.msra.mxu1 %v5203_v28  ;;  %v1861_v28 = vld [vmem:[%s8577_s2 + $0x1a0] sm:$0xff] }
  0xf9   :  { %4789 = vmatprep.subr.bf16.mxu1 %v5615_v26 }
 0x141   :  { %v708_v56 = vpop.permute.xlu0 %707 }
 0x143   :  { %v5799_v39 = vpop.permute.xlu1 %1015 }
 0x145   :  { %v5786_v37 = vpop.permute.xlu0 %1065 }
 0x149   :  { %v5790_v40 = vpop.permute.xlu0 %1049 }
 0x195   :  { %v588_v42 = vpop.f32.mrf.mxu0 }
 0x196   :  { %v636_v44 = vpack.c.bf16 %v588_v42, %v588_v42  ;;  %v5806_v42 = vpop.permute.xlu0 %1112 }
 0x197   :  { %v590_v45 = vpop.f32.mrf.mxu0 }
 0x198   :  { %v637_v55 = vpack.c.bf16 %v590_v45, %v590_v45  ;;  %v1613_v45 = vld [vmem:[%s8577_s2 + $0x100] sm:$0xff] }
 0x199   :  { %v592_v0 = vpop.f32.mrf.mxu0 }
 0x19a   :  { %934 = vmatprep.mubr.bf16.mxu0 %v637_v55  ;;  %v1698_v55 = vld [vmem:[%s8577_s2 + $0x138] sm:$0xff]  ;;  %v5818_v0 = vpop.permute.xlu0 %1004 }
 0x19b   :  { %v629_v46 = vpop.f32.mrf.mxu1  ;;  %v593_v63 = vpop.f32.mrf.mxu0  ;;  %935 = vmatmul.mubr.bf16.vlgmr.msra.gmra.mxu0 %v636_v44 }
 0x19c   :  { %v638_v50 = vpack.c.bf16 %v629_v46, %v629_v46  ;;  %4785 = vmatprep.mubr.msk.bf16.mxu0 %vm8605_vm10, %v5615_v26  ;;  %v5808_v44 = vpop.permute.xlu1 %1032  ;;  %v1859_v46 = vld [vmem:[%s8577_s2 + $0x190] sm:$0xff]  ;;  %v1746_v63 = vld [vmem:[%s8577_s2 + $0x168] sm:$0xff] }
 0x19d   :  { %v631_v47 = vpop.f32.mrf.mxu1 }
 0x19e   :  { %v639_v48 = vpack.c.bf16 %v631_v47, %v631_v47 }
 0x19f   :  { %v633_v17 = vpop.f32.mrf.mxu1 }
 0x1a0   :  { %974 = vmatprep.mubr.bf16.mxu1 %v639_v48  ;;  %v5826_v47 = vpop.permute.xlu1 %1073  ;;  %v1949_v48 = vld [vmem:[%s8577_s2 + $0x1c0] sm:$0xff]  ;;  %v1022_v17 = vpop.permute.xlu0 %1021 }
 0x1a1   :  { %v634_v32 = vpop.f32.mrf.mxu1  ;;  %975 = vmatmul.mubr.bf16.vlgmr.msra.gmra.mxu1 %v638_v50  ;;  %v2132_v50 = vld [vmem:[%s8577_s2 + $0x238] sm:$0xff] }
 0x1a2   :  { %4791 = vmatprep.mubr.msk.bf16.mxu1 %vm8605_vm10, %v5615_v26 }
 0x1a4   :  { %v5834_v32 = vpop.permute.xlu1 %1094 }
 0x25b   :  { %v4709_v43 = vpop.f32.mrf.mxu0 }
 0x25d   :  { %v4710_v51 = vpop.f32.mrf.mxu0 }
 0x25e   :  { %v4711_v33 = vadd.f32 %v4710_v51, %v4709_v43  ;;  %v2039_v43 = vld [vmem:[%s8577_s2 + $0x1f0] sm:$0xff]  ;;  %v1056_v51 = vpop.permute.xlu0 %1055 }
 0x25f   :  { %v4712_v52 = vpop.f32.mrf.mxu0 }
 0x260   :  { %v937_v59 = vadd.f32 %v4711_v33, %v708_v56  ;;  %v5839_v33 = vpop.permute.xlu1 %1130  ;;  %v1614_v52 = vld [vmem:[%s8577_s2 + $0x108] sm:$0xff] }
 0x261   :  { %v4731_v53 = vpop.f32.mrf.mxu1  ;;  %v4713_v54 = vpop.f32.mrf.mxu0 }
 0x262   :  { %v1860_v54 = vld [vmem:[%s8577_s2 + $0x198] sm:$0xff]  ;;  %v5851_v56 = vpop.permute.xlu0 %1148 }
 0x263   :  { %v4732_v57 = vpop.f32.mrf.mxu1 }
 0x264   :  { %v4733_v61 = vadd.f32 %v4732_v57, %v4731_v53  ;;  %v1039_v53 = vpop.permute.xlu1 %1038  ;;  %v1950_v57 = vld [vmem:[%s8577_s2 + $0x1c8] sm:$0xff] }
 0x265   :  { %v4734_v1 = vpop.f32.mrf.mxu1 }
 0x266   :  { %v977_v2 = vadd.f32 %v4733_v61, %v937_v59  ;;  %v1087_v59 = vpop.permute.xlu0 %1086  ;;  %v1443_v1 = vld [vmem:[%s8577_s2 + $0x90] sm:$0xff] }
 0x267   :  { %v4735_v4 = vpop.f32.mrf.mxu1 }
 0x268   :  { %v982_v5 = vmax.f32 %v977_v2, 0.0  ;;  %v2040_v2 = vld [vmem:[%s8577_s2 + $0x1f8] sm:$0xff] }
 0x26a   :  { %v5669_v58 = vmin.f32 %v982_v5, 6.0  ;;  %v1104_v5 = vpop.permute.xlu0 %1103 }
 0x26c   :  { %1040 = vrot.lane.b32.xlu0 %v5669_v58, %s5249_s15  ;;  %1006 = vrot.lane.b32.xlu1 %v5669_v58, %s5245_s9 }
 0x270   :  { %1139 = vrot.lane.b32.xlu0 %v5615_v26, %s5250_s16  ;;  %1023 = vrot.lane.b32.xlu1 %v5669_v58, %s5246_s10 }
 0x274   :  { %1169 = vperm.xlu0 %4912, %v1166_v6   ;;  %1057 = vrot.lane.b32.xlu1 %v5669_v58, %s5241_s24  ;;  %v1527_v6 = vld [vmem:[%s8577_s2 + $0xc0] sm:$0xff] }
 0x278   :  { %1260 = vperm.xlu0 %4912, %v1232_v7   ;;  %1084 = vrot.lane.b32.xlu1 %v5669_v58, %s5236_s20 }
 0x27c   :  { %1250 = vperm.xlu0 %4912, %v1230_v8   ;;  %1101 = vrot.lane.b32.xlu1 %v5669_v58, %s5247_s13  ;;  %v988_v8 = vshra.s32 %v5309_v49, 3 }
 0x280   :  { %1240 = vperm.xlu0 %4912, %v1228_v9   ;;  %1119 = vrot.lane.b32.xlu1 %v5669_v58, %s5248_s14  ;;  %v1695_v9 = vld [vmem:[%s8577_s2 + $0x120] sm:$0xff] }
 0x284   :  { %1476 = vperm.xlu0 %4912, %v1448_v62   ;;  %1137 = vrot.lane.b32.xlu1 %v5669_v58, %s5250_s16  ;;  %v1444_v62 = vld [vmem:[%s8577_s2 + $0x98] sm:$0xff] }
 0x288   :  { %1560 = vperm.xlu0 %4912, %v1532_v10   ;;  %1158 = vperm.xlu1 %4913, %v1155_v11   ;;  %v1122_v10 = vpop.permute.xlu0 %1121 }
 0x28c   :  { %1728 = vperm.xlu0 %4912, %v1700_v12   ;;  %1255 = vperm.xlu1 %4913, %v1231_v13   ;;  %v987_v12 = vand.u32 7, %v5309_v49  ;;  %v5879_v13 = vand.u32 7, %v988_v8 }
 0x28e   :  { %vm990_vm2 = vcmp.ge.s32.totalorder %v5879_v13, 1  ;;  %vm5888_vm9 = vcmp.le.s32.totalorder %v987_v12, 6  ;;  %vm5892_vm5 = vcmp.ge.s32.totalorder %v987_v12, 1  ;;  %vm991_vm6 = vcmp.le.s32.totalorder %v5879_v13, 6  ;;  %v1947_v12 = vld [vmem:[%s8577_s2 + $0x1b0] sm:$0xff] }
 0x28f   :  { %vm5908_vm11 = vmand %vm990_vm2, %vm5888_vm9 }
 0x290   :  { %1776 = vperm.xlu0 %4912, %v1748_v14   ;;  %1245 = vperm.xlu1 %4913, %v1229_v15   ;;  %v1743_v14 = vld [vmem:[%s8577_s2 + $0x150] sm:$0xff]  ;;  %v1528_v15 = vld [vmem:[%s8577_s2 + $0xc8] sm:$0xff]  ;;  %vm5919_vm4 = vmand %vm990_vm2, %vm5892_vm5 }
 0x291   :  { %vm5932_vm13 = vmand %vm991_vm6, %vm5892_vm5 }
 0x292   :  { %vm5947_vm0 = vmand %vm991_vm6, %vm5888_vm9 }
 0x294   :  { %1644 = vperm.xlu0 %4912, %v1616_v16   ;;  %1235 = vperm.xlu1 %4913, %v1227_v18   ;;  %v8649_v18 = vmov 0 }
 0x295   :  { %v8650_v18 = vsel %vm5888_vm9, 4294967295, %v8649_v18 }
 0x296   :  { %8651 = vst [vmem:[#allocation8_spill] sm:$0xff] %v8650_v18 }
 0x298   :  { %1890 = vperm.xlu0 %4912, %v1862_v19   ;;  %1471 = vperm.xlu1 %4913, %v1447_v60  }
 0x29c   :  { %1980 = vperm.xlu0 %4912, %v1952_v3   ;;  %1555 = vperm.xlu1 %4913, %v1531_v20   ;;  %v2129_v20 = vld [vmem:[%s8577_s2 + $0x220] sm:$0xff] }
 0x2a0   :  { %2070 = vperm.xlu0 %4912, %v2042_v21   ;;  %1723 = vperm.xlu1 %4913, %v1699_v22   ;;  %v1696_v21 = vld [vmem:[%s8577_s2 + $0x128] sm:$0xff]  ;;  %v8654_v22 = vmov 0 }
 0x2a1   :  { %v8655_v22 = vsel %vm5908_vm11, 4294967295, %v8654_v22 }
 0x2a2   :  { %8656 = vst [vmem:[#allocation9_spill] sm:$0xff] %v8655_v22 }
 0x2a4   :  { %4920 = vrot.lane.b32.xlu0 %v5752_v23, %s5246_s10  ;;  %1771 = vperm.xlu1 %4913, %v1747_v24  }
 0x2a8   :  { %1461 = vperm.xlu0 %4912, %v1445_v25   ;;  %1639 = vperm.xlu1 %4913, %v1615_v29  }
 0x2ac   :  { %1545 = vperm.xlu0 %4912, %v1529_v27   ;;  %1885 = vperm.xlu1 %4913, %v1861_v28  }
 0x2b0   :  { %1713 = vperm.xlu0 %4912, %v1697_v30   ;;  %1975 = vperm.xlu1 %4913, %v1951_v31  }
 0x2b4   :  { %1761 = vperm.xlu0 %4912, %v1745_v34   ;;  %2065 = vperm.xlu1 %4913, %v2041_v35   ;;  %v3026_v35 = vld [vmem:[%s8577_s2 + $0x378] sm:$0xff] }
 0x2b8   :  { %2155 = vperm.xlu0 %4912, %v2131_v36   ;;  %4915 = vrot.lane.b32.xlu1 %v5752_v23, %s5245_s9 }
 0x2bc   :  { %4930 = vrot.lane.b32.xlu0 %v5752_v23, %s5249_s15  ;;  %4925 = vrot.lane.b32.xlu1 %v5752_v23, %s5241_s24 }
 0x2c0   :  { %4935 = vrot.lane.b32.xlu0 %v5752_v23, %s5236_s20  ;;  %1466 = vperm.xlu1 %4913, %v1446_v38  }
 0x2c4   :  { %4945 = vrot.lane.b32.xlu0 %v5752_v23, %s5248_s14  ;;  %1550 = vperm.xlu1 %4913, %v1530_v41  }
 0x2c8   :  { %1629 = vperm.xlu0 %4912, %v1613_v45   ;;  %1718 = vperm.xlu1 %4913, %v1698_v55   ;;  %v8662_v55 = vmov 0 }
 0x2c9   :  { %v8663_v55 = vsel %vm5947_vm0, 4294967295, %v8662_v55 }
 0x2ca   :  { %8664 = vst [vmem:[#allocation10_spill] sm:$0xff] %v8663_v55  ;;  %v3030_v55 = vld [vmem:[%s8577_s2 + $0x398] sm:$0xff] }
 0x2cc   :  { %1875 = vperm.xlu0 %4912, %v1859_v46   ;;  %1766 = vperm.xlu1 %4913, %v1746_v63  }
 0x2d0   :  { %1965 = vperm.xlu0 %4912, %v1949_v48   ;;  %2160 = vperm.xlu1 %4913, %v2132_v50  }
 0x2d4   :  { %2055 = vperm.xlu0 %4912, %v2039_v43   ;;  %4940 = vrot.lane.b32.xlu1 %v5752_v23, %s5247_s13 }
 0x2d8   :  { %4950 = vrot.lane.b32.xlu0 %v5752_v23, %s5245_s9  ;;  %1634 = vperm.xlu1 %4913, %v1614_v52  }
 0x2dc   :  { %4960 = vrot.lane.b32.xlu0 %v5752_v23, %s5241_s24  ;;  %1880 = vperm.xlu1 %4913, %v1860_v54  }
 0x2de   :  { %v1007_v61 = vpop.permute.xlu1 %1006  ;;  %v1041_v19 = vpop.permute.xlu0 %1040 }
 0x2df   :  { %v1043_v27 = vsel %vm1042_vm1, %v1039_v53, %v1041_v19  ;;  %v1009_v34 = vsel %vm1008_vm14, %v5818_v0, %v1007_v61  ;;  %v1744_v0 = vld [vmem:[%s8577_s2 + $0x158] sm:$0xff]  ;;  %v2037_v19 = vld [vmem:[%s8577_s2 + $0x1e0] sm:$0xff] }
 0x2e0   :  { %4965 = vrot.lane.b32.xlu0 %v5752_v23, %s5250_s16  ;;  %1970 = vperm.xlu1 %4913, %v1950_v57   ;;  %v1045_v46 = vsel %vm5908_vm11, %v1043_v27, 0.0  ;;  %v1011_v43 = vsel %vm5919_vm4, %v1009_v34, 0.0 }
 0x2e1   :  { %v1018_v61 = vmul.f32 %v5799_v39, %v1011_v43 }
 0x2e2   :  { %v1024_v4 = vpop.permute.xlu1 %1023  ;;  %v1140_v48 = vpop.permute.xlu0 %1139 }
 0x2e3   :  { %v1026_v3 = vsel %vm1025_vm7, %v1022_v17, %v1024_v4  ;;  %v1076_v17 = vmul.f32 %v5826_v47, %v5669_v58  ;;  %v1052_v47 = vmul.f32 %v5790_v40, %v1045_v46  ;;  %v5204_v46 = vld [vmem:[%s8576_s1 + $0x110] sm:$0xff]  }
 0x2e4   :  { %1451 = vperm.xlu0 %4912, %v1443_v1   ;;  %2060 = vperm.xlu1 %4913, %v2040_v2   ;;  %v1028_v30 = vsel %vm990_vm2, %v1026_v3, 0.0  ;;  %v2038_v3 = vld [vmem:[%s8577_s2 + $0x1e8] sm:$0xff] }
 0x2e5   :  { %v1035_v63 = vmul.f32 %v5808_v44, %v1028_v30 }
 0x2e6   :  { %v1058_v7 = vpop.permute.xlu1 %1057 }
 0x2e7   :  { %v1059_v24 = vsel %vm256_vm3, %v1056_v51, %v1058_v7 }
 0x2e8   :  { %1535 = vperm.xlu0 %4912, %v1527_v6   ;;  %4955 = vrot.lane.b32.xlu1 %v5752_v23, %s5246_s10  ;;  %v1061_v38 = vsel %vm5892_vm5, %v1059_v24, 0.0  ;;  %v2192_v24 = vld [vmem:[%s8577_s2 + $0x268] sm:$0xff] }
 0x2e9   :  { %v1068_v53 = vmul.f32 %v5786_v37, %v1061_v38  ;;  %v1077_v37 = vadd.f32 %v1076_v17, %v1035_v63  ;;  %v5206_v63 = vld [vmem:[%s8576_s1 + $0x120] sm:$0xff]  }
 0x2ea   :  { %v1085_v11 = vpop.permute.xlu1 %1084 }
 0x2eb   :  { %v1088_v25 = vsel %vm8657_vm15, %v1085_v11, %v1087_v59  ;;  %vm8583_vm15 = vcmask 973824   ;;  %v2130_v59 = vld [vmem:[%s8577_s2 + $0x228] sm:$0xff]  ;;  %v1069_v1 = vadd.f32 %v1068_v53, %v1018_v61 }
 0x2ec   :  { %1703 = vperm.xlu0 %4912, %v1695_v9   ;;  %1456 = vperm.xlu1 %4913, %v1444_v62   ;;  %v1090_v41 = vsel %vm5888_vm9, %v1088_v25, 0.0  ;;  %v1857_v9 = vld [vmem:[%s8577_s2 + $0x180] sm:$0xff]  ;;  %v1858_v62 = vld [vmem:[%s8577_s2 + $0x188] sm:$0xff]  ;;  %v2128_v25 = vld [vmem:[%s8577_s2 + $0x218] sm:$0xff] }
 0x2ed   :  { %v1097_v54 = vmul.f32 %v5834_v32, %v1090_v41 }
 0x2ee   :  { %v1102_v16 = vpop.permute.xlu1 %1101 }
 0x2ef   :  { %v1106_v36 = vsel %vm1105_vm12, %v1102_v16, %v1104_v5  ;;  %v1098_v2 = vadd.f32 %v1097_v54, %v1052_v47  ;;  %v1170_v27 = vpop.permute.xlu0 %1169 }
 0x2f0   :  { %1751 = vperm.xlu0 %4912, %v1743_v14   ;;  %1540 = vperm.xlu1 %4913, %v1528_v15   ;;  %v1108_v51 = vsel %vm5932_vm13, %v1106_v36, 0.0  ;;  %v1948_v14 = vld [vmem:[%s8577_s2 + $0x1b8] sm:$0xff] }
 0x2f1   :  { %v1115_v32 = vmul.f32 %v5806_v42, %v1108_v51  ;;  %v1611_v42 = vld [vmem:[%s8577_s2 + $0xf0] sm:$0xff] }
 0x2f2   :  { %v1120_v29 = vpop.permute.xlu1 %1119 }
 0x2f3   :  { %v1124_v31 = vsel %vm1123_vm8, %v1120_v29, %v1122_v10  ;;  %v1116_v5 = vadd.f32 %v1115_v32, %v1069_v1  ;;  %v2127_v29 = vld [vmem:[%s8577_s2 + $0x210] sm:$0xff] }
 0x2f4   :  { %2145 = vperm.xlu0 %4912, %v2129_v20   ;;  %1708 = vperm.xlu1 %4913, %v1696_v21   ;;  %v1126_v45 = vsel %vm991_vm6, %v1124_v31, 0.0  ;;  %v1164_v20 = vld [vmem:[%s8576_s1 + $0x108] sm:$0xf]  ;;  %v2191_v21 = vld [vmem:[%s8577_s2 + $0x260] sm:$0xff] }
 0x2f5   :  { %v1133_v57 = vmul.f32 %v5839_v33, %v1126_v45 }
 0x2f6   :  { %v1138_v50 = vpop.permute.xlu1 %1137 }
 0x2f7   :  { %v1142_v52 = vsel %vm8583_vm15, %v1138_v50, %v1140_v48  ;;  %v1134_v4 = vadd.f32 %v1133_v57, %v1077_v37  ;;  %vm1175_vm15 = vcmask 1043456   ;;  %v6065_v48 = vpop.permute.xlu0 %1260 }
 0x2f8   :  { %v1144_v44 = vsel %vm5947_vm0, %v1142_v52, 0.0  ;;  %4970 = vrot.lane.b32.xlu0 %v5752_v23, %s5249_s15  ;;  %1756 = vperm.xlu1 %4913, %v1744_v0  }
 0x2f9   :  { %v1151_v33 = vmul.f32 %v5851_v56, %v1144_v44  ;;  %v1153_v39 = vadd.f32 %v1134_v4, %v1116_v5  ;;  %v1612_v56 = vld [vmem:[%s8577_s2 + $0xf8] sm:$0xff] }
 0x2fb   :  { %v1152_v40 = vadd.f32 %v1151_v33, %v1098_v2  ;;  %v6067_v50 = vpop.permute.xlu0 %1250 }
 0x2fc   :  { %4975 = vrot.lane.b32.xlu0 %v5752_v23, %s5236_s20  ;;  %2150 = vperm.xlu1 %4913, %v2130_v59  }
 0x2fd   :  { %v1154_v6 = vadd.f32 %v1153_v39, %v1152_v40 }
 0x2ff   :  { %v1241_v17 = vpop.permute.xlu0 %1240 }
 0x300   :  { %4985 = vrot.lane.b32.xlu0 %v5752_v23, %s5248_s14  ;;  %4980 = vrot.lane.b32.xlu1 %v5752_v23, %s5247_s13 }
 0x303   :  { %v1159_v7 = vpop.permute.xlu1 %1158  ;;  %v6069_v43 = vpop.permute.xlu0 %1476 }
 0x304   :  { %v1161_v8 = vadd.f32 %v1159_v7, %v1154_v6  ;;  %1619 = vperm.xlu0 %4912, %v1611_v42   ;;  %1624 = vperm.xlu1 %4913, %v1612_v56   ;;  %8665 = vst [vmem:[#allocation11_spill] sm:$0xff] %v6069_v43 }
 0x306   :  { %v1162_v10 = vmax.f32 %v1161_v8, 0.0 }
 0x307   :  { %v6071_v51 = vpop.permute.xlu0 %1560  ;;  %v6081_v44 = vpop.permute.xlu1 %1255 }
 0x308   :  { %v1163_v11 = vmin.f32 %v1162_v10, 6.0  ;;  %1865 = vperm.xlu0 %4912, %v1857_v9   ;;  %1870 = vperm.xlu1 %4913, %v1858_v62   ;;  %8666 = vst [vmem:[#allocation12_spill] sm:$0xff] %v6071_v51  ;;  %v2438_v51 = vld [vmem:[%s8577_s2 + $0x2d8] sm:$0xff] }
 0x30a   :  { %v1165_v15 = vpack.c.bf16 %v1163_v11, %v1163_v11 }
 0x30b   :  { %v6073_v52 = vpop.permute.xlu0 %1728  ;;  %v6085_v47 = vpop.permute.xlu1 %1245 }
 0x30c   :  { %1955 = vperm.xlu0 %4912, %v1947_v12   ;;  %1960 = vperm.xlu1 %4913, %v1948_v14   ;;  %v1177_v16 = vsel %vm1175_vm15, %v1165_v15, 0  ;;  %8667 = vst [vmem:[#allocation13_spill] sm:$0xff] %v6073_v52 }
 0x30d   :  { %4784 = vmatpush3.bf16.msra.mxu0 %v1177_v16 }
 0x30e   :  { %4803 = vmatprep.subr.bf16.mxu0 %v5615_v26 }
 0x30f   :  { %v6075_v53 = vpop.permute.xlu0 %1776  ;;  %v1236_v61 = vpop.permute.xlu1 %1235 }
 0x310   :  { %2045 = vperm.xlu0 %4912, %v2037_v19   ;;  %2050 = vperm.xlu1 %4913, %v2038_v3  }
 0x311   :  { %4786 = vmatmul.mubr.msk.bf16.vlgmr.msra.gmra.mxu0 %vm1025_vm7, %v1164_v20 }
 0x312   :  { %4809 = vmatprep.mubr.msk.bf16.mxu0 %vm8605_vm10, %v5615_v26 }
 0x313   :  { %v6077_v54 = vpop.permute.xlu0 %1644  ;;  %v6091_v32 = vpop.permute.xlu1 %1471 }
 0x314   :  { %2215 = vperm.xlu0 %4912, %v2191_v21   ;;  %2220 = vperm.xlu1 %4913, %v2192_v24   ;;  %8668 = vst [vmem:[#allocation14_spill] sm:$0xff] %v6077_v54  ;;  %8673 = vst [vmem:[#allocation19_spill] sm:$0xff] %v6091_v32 }
 0x317   :  { %v6079_v57 = vpop.permute.xlu0 %1890  ;;  %v6095_v1 = vpop.permute.xlu1 %1555 }
 0x318   :  { %4990 = vrot.lane.b32.xlu0 %v5752_v23, %s5245_s9  ;;  %4995 = vrot.lane.b32.xlu1 %v5752_v23, %s5246_s10  ;;  %8669 = vst [vmem:[#allocation15_spill] sm:$0xff] %v6079_v57  ;;  %8675 = vst [vmem:[#allocation21_spill] sm:$0xff] %v6095_v1 }
 0x31b   :  { %v6099_v4 = vpop.permute.xlu1 %1723 }
 0x31c   :  { %5000 = vrot.lane.b32.xlu0 %v5752_v23, %s5241_s24  ;;  %2140 = vperm.xlu1 %4913, %v2128_v25   ;;  %8676 = vst [vmem:[#allocation22_spill] sm:$0xff] %v6099_v4 }
 0x31f   :  { %v6103_v40 = vpop.permute.xlu1 %1771 }
 0x320   :  { %5005 = vrot.lane.b32.xlu0 %v5752_v23, %s5250_s16  ;;  %5020 = vrot.lane.b32.xlu1 %v5752_v23, %s5247_s13 }
 0x323   :  { %v6107_v42 = vpop.permute.xlu1 %1639 }
 0x324   :  { %2135 = vperm.xlu0 %4912, %v2127_v29   ;;  %8678 = vst [vmem:[#allocation24_spill] sm:$0xff] %v6107_v42 }
 0x327   :  { %v6111_v6 = vpop.permute.xlu1 %1885 }
 0x328   :  { %5010 = vrot.lane.b32.xlu0 %v5752_v23, %s5249_s15  ;;  %8680 = vst [vmem:[#allocation26_spill] sm:$0xff] %v6111_v6 }
 0x32b   :  { %v6115_v8 = vpop.permute.xlu1 %1975 }
 0x32c   :  { %5015 = vrot.lane.b32.xlu0 %v5752_v23, %s5236_s20  ;;  %8682 = vst [vmem:[#allocation28_spill] sm:$0xff] %v6115_v8  ;;  %v2430_v8 = vld [vmem:[%s8577_s2 + $0x298] sm:$0xff] }
 0x32f   :  { %v6119_v62 = vpop.permute.xlu1 %2065 }
 0x330   :  { %5025 = vrot.lane.b32.xlu0 %v5752_v23, %s5248_s14  ;;  %8683 = vst [vmem:[#allocation29_spill] sm:$0xff] %v6119_v62 }
 0x333   :  { %v6123_v11 = vpop.permute.xlu1 %4915 }
 0x337   :  { %v6127_v14 = vpop.permute.xlu1 %4925 }
 0x33b   :  { %v6131_v16 = vpop.permute.xlu1 %1466 }
 0x33c   :  { %8686 = vst [vmem:[#allocation32_spill] sm:$0xff] %v6131_v16 }
 0x33f   :  { %v6135_v3 = vpop.permute.xlu1 %1550 }
 0x340   :  { %8688 = vst [vmem:[#allocation34_spill] sm:$0xff] %v6135_v3 }
 0x343   :  { %v6139_v21 = vpop.permute.xlu1 %1718 }
 0x344   :  { %8690 = vst [vmem:[#allocation36_spill] sm:$0xff] %v6139_v21 }
 0x347   :  { %v6143_v25 = vpop.permute.xlu1 %1766 }
 0x3d1   :  { %v1213_v30 = vpop.f32.mrf.mxu0 }
 0x3d2   :  { %v1214_v31 = vadd.f32 %v1213_v30, %v1170_v27  ;;  %v6147_v27 = vpop.permute.xlu1 %2160 }
 0x3d3   :  { %v4787_v34 = vpop.f32.mrf.mxu0  ;;  %8691 = vst [vmem:[#allocation37_spill] sm:$0xff] %v6147_v27 }
 0x3d4   :  { %v1219_v36 = vadd.f32 %v1214_v31, %v5669_v58  ;;  %v5205_v58 = vld [vmem:[%s8576_s1 + $0x118] sm:$0xff]  }
 0x3d5   :  { %v1216_v38 = vpop.f32.mrf.mxu0 }
 0x3d6   :  { %v1226_v41 = vpack.c.bf16 %v1219_v36, %v1219_v36  ;;  %v6151_v38 = vpop.permute.xlu1 %4940 }
 0x3d7   :  { %v4788_v45 = vpop.f32.mrf.mxu0  ;;  %8693 = vst [vmem:[#allocation39_spill] sm:$0xff] %v6151_v38 }
 0x3d8   :  { %v1288_v0 = vsel %vm1175_vm15, %v1226_v41, 0  ;;  %vm8753_vm15 = vcmask 1039360  }
 0x3d9   :  { %4790 = vmatpush3.bf16.msra.mxu1 %v1288_v0 }
 0x3da   :  { %4813 = vmatprep.subr.bf16.mxu1 %v5615_v26  ;;  %v6161_v27 = vpop.permute.xlu1 %1634 }
 0x3db   :  { %8694 = vst [vmem:[#allocation40_spill] sm:$0xff] %v6161_v27 }
 0x3dc   :  { %4792 = vmatmul.mubr.msk.bf16.vlgmr.msra.gmra.mxu1 %vm1025_vm7, %v5204_v46 }
 0x3dd   :  { %4795 = vmatprep.mubr.msk.bf16.mxu1 %vm8605_vm10, %v5615_v26 }
 0x3e4   :  { %4796 = vmatmul.mubr.msk.bf16.gmra.mxu1 %vm1025_vm7, %v5205_v58 }
 0x3e5   :  { %4799 = vmatprep.mubr.msk.bf16.mxu1 %vm8605_vm10, %v5615_v26 }
 0x3ec   :  { %4800 = vmatmul.mubr.msk.bf16.gmra.mxu1 %vm1025_vm7, %v5206_v63 }
 0x3ed   :  { %4829 = vmatprep.mubr.msk.bf16.mxu1 %vm8605_vm10, %v5615_v26  ;;  %v6083_v26 = vpop.permute.xlu0 %1980  ;;  %vm8785_vm10 = vcmask 973824  }
 0x3ee   :  { %8670 = vst [vmem:[#allocation16_spill] sm:$0xff] %v6083_v26 }
 0x3f1   :  { %v6087_v59 = vpop.permute.xlu0 %2070 }
 0x3f2   :  { %8671 = vst [vmem:[#allocation17_spill] sm:$0xff] %v6087_v59 }
 0x3f5   :  { %v6089_v37 = vpop.permute.xlu0 %4920 }
 0x3f6   :  { %8672 = vst [vmem:[#allocation18_spill] sm:$0xff] %v6089_v37 }
 0x3f9   :  { %v6093_v33 = vpop.permute.xlu0 %1461 }
 0x3fa   :  { %8674 = vst [vmem:[#allocation20_spill] sm:$0xff] %v6093_v33  ;;  %v6452_v33 = vld [vmem:[#allocation6] sm:$0xff] }
 0x3fb   :  { %8728 = vst [vmem:[#allocation74_spill] sm:$0xff] %v6452_v33 }
 0x3fd   :  { %v6097_v2 = vpop.permute.xlu0 %1545 }
 0x401   :  { %v6101_v5 = vpop.permute.xlu0 %1713 }
 0x402   :  { %8677 = vst [vmem:[#allocation23_spill] sm:$0xff] %v6101_v5  ;;  %v3368_v5 = vld [vmem:[%s8577_s2 + $0x440] sm:$0xff] }
 0x405   :  { %v6105_v39 = vpop.permute.xlu0 %1761 }
 0x409   :  { %v6109_v56 = vpop.permute.xlu0 %2155 }
 0x40a   :  { %8679 = vst [vmem:[#allocation25_spill] sm:$0xff] %v6109_v56 }
 0x40d   :  { %v6113_v7 = vpop.permute.xlu0 %4930 }
 0x40e   :  { %8681 = vst [vmem:[#allocation27_spill] sm:$0xff] %v6113_v7 }
 0x411   :  { %v6117_v9 = vpop.permute.xlu0 %4935 }
 0x415   :  { %v6121_v10 = vpop.permute.xlu0 %4945 }
 0x419   :  { %v6125_v12 = vpop.permute.xlu0 %1629 }
 0x41a   :  { %8684 = vst [vmem:[#allocation30_spill] sm:$0xff] %v6125_v12  ;;  %v3467_v12 = vld [vmem:[%s8577_s2 + $0x4b8] sm:$0xff] }
 0x41d   :  { %v6129_v15 = vpop.permute.xlu0 %1875 }
 0x41e   :  { %8685 = vst [vmem:[#allocation31_spill] sm:$0xff] %v6129_v15  ;;  %v3201_v15 = vld [vmem:[%s8577_s2 + $0x3f8] sm:$0xff] }
 0x421   :  { %v6133_v19 = vpop.permute.xlu0 %1965 }
 0x422   :  { %8687 = vst [vmem:[#allocation33_spill] sm:$0xff] %v6133_v19 }
 0x425   :  { %v6137_v20 = vpop.permute.xlu0 %2055 }
 0x426   :  { %8689 = vst [vmem:[#allocation35_spill] sm:$0xff] %v6137_v20 }
 0x429   :  { %v6141_v24 = vpop.permute.xlu0 %4950 }
 0x42d   :  { %v6145_v29 = vpop.permute.xlu0 %4960 }
 0x431   :  { %v6149_v30 = vpop.permute.xlu0 %4965 }
 0x432   :  { %8692 = vst [vmem:[#allocation38_spill] sm:$0xff] %v6149_v30 }
 0x435   :  { %v6153_v41 = vpop.permute.xlu0 %1451 }
 0x49c   :  { %v1324_v31 = vpop.f32.mrf.mxu1 }
 0x49d   :  { %v1325_v34 = vadd.f32 %v1324_v31, %v1236_v61  ;;  %v6163_v61 = vpop.permute.xlu0 %1535 }
 0x49e   :  { %v4793_v36 = vpop.f32.mrf.mxu1 }
 0x49f   :  { %v1347_v45 = vmax.f32 %v1325_v34, 0.0 }
 0x4a0   :  { %v1327_v0 = vpop.f32.mrf.mxu1 }
 0x4a1   :  { %v6155_v46 = vmin.f32 %v1347_v45, 6.0  ;;  %v1328_v58 = vadd.f32 %v1327_v0, %v1241_v17  ;;  %v6171_v0 = vpop.permute.xlu1 %1880 }
 0x4a2   :  { %v4794_v63 = vpop.f32.mrf.mxu1  ;;  %8695 = vst [vmem:[#allocation41_spill] sm:$0xff] %v6171_v0 }
 0x4a3   :  { %1487 = vrot.lane.b32.xlu0 %v6155_v46, %s5246_s10  ;;  %1403 = vrot.lane.b32.xlu1 %v6155_v46, %s5245_s9  ;;  %v1348_v31 = vmax.f32 %v1328_v58, 0.0  ;;  %v6173_v63 = vpop.permute.xlu0 %1703 }
 0x4a4   :  { %v1332_v49 = vpop.f32.mrf.mxu1 }
 0x4a5   :  { %v6169_v34 = vmin.f32 %v1348_v31, 6.0  ;;  %v1333_v26 = vadd.f32 %v1332_v49, %v6085_v47 }
 0x4a6   :  { %v4797_v36 = vpop.f32.mrf.mxu1 }
 0x4a7   :  { %1905 = vrot.lane.b32.xlu0 %v6155_v46, %s5247_s13  ;;  %1655 = vrot.lane.b32.xlu1 %v6155_v46, %s5241_s24  ;;  %v6185_v0 = vpop.permute.xlu0 %1751 }
 0x4a8   :  { %v1335_v17 = vpop.f32.mrf.mxu1 }
 0x4a9   :  { %v1336_v49 = vadd.f32 %v1335_v17, %v6067_v50 }
 0x4aa   :  { %v4798_v45 = vpop.f32.mrf.mxu1 }
 0x4ab   :  { %1407 = vrot.lane.b32.xlu0 %v6169_v34, %s5245_s9  ;;  %1571 = vrot.lane.b32.xlu1 %v6155_v46, %s5249_s15  ;;  %v6183_v45 = vpop.permute.xlu1 %1970  ;;  %v6194_v59 = vpop.permute.xlu0 %2145  ;;  %v1350_v47 = vmax.f32 %v1336_v49, 0.0 }
 0x4ac   :  { %v1340_v58 = vpop.f32.mrf.mxu1  ;;  %8696 = vst [vmem:[#allocation42_spill] sm:$0xff] %v6183_v45  ;;  %8698 = vst [vmem:[#allocation44_spill] sm:$0xff] %v6194_v59 }
 0x4ae   :  { %v4801_v36 = vpop.f32.mrf.mxu1 }
 0x4af   :  { %1659 = vrot.lane.b32.xlu0 %v6169_v34, %s5241_s24  ;;  %1815 = vrot.lane.b32.xlu1 %v6155_v46, %s5236_s20  ;;  %v1349_v36 = vmax.f32 %v1333_v26, 0.0  ;;  %v6192_v3 = vpop.permute.xlu1 %2060  ;;  %v6209_v26 = vpop.permute.xlu0 %4970 }
 0x4b0   :  { %v1343_v31 = vpop.f32.mrf.mxu1  ;;  %8697 = vst [vmem:[#allocation43_spill] sm:$0xff] %v6192_v3 }
 0x4b1   :  { %v6200_v45 = vmin.f32 %v1349_v36, 6.0  ;;  %v6215_v36 = vmin.f32 %v1350_v47, 6.0 }
 0x4b2   :  { %v4802_v54 = vpop.f32.mrf.mxu1 }
 0x4b3   :  { %1575 = vrot.lane.b32.xlu0 %v6169_v34, %s5249_s15  ;;  %1995 = vrot.lane.b32.xlu1 %v6155_v46, %s5248_s14  ;;  %v6207_v54 = vpop.permute.xlu1 %4955  ;;  %v6219_v17 = vpop.permute.xlu0 %4975 }
 0x4b4   :  { %8699 = vst [vmem:[#allocation45_spill] sm:$0xff] %v6207_v54 }
 0x4b7   :  { %1909 = vrot.lane.b32.xlu0 %v6169_v34, %s5247_s13  ;;  %1491 = vrot.lane.b32.xlu1 %v6169_v34, %s5246_s10  ;;  %v6217_v50 = vpop.permute.xlu1 %1456  ;;  %v6231_v47 = vpop.permute.xlu0 %4985 }
 0x4b8   :  { %8700 = vst [vmem:[#allocation46_spill] sm:$0xff] %v6217_v50  ;;  %v1341_v50 = vadd.f32 %v1340_v58, %v6081_v44 }
 0x4ba   :  { %v1351_v3 = vmax.f32 %v1341_v50, 0.0  ;;  %v1344_v50 = vadd.f32 %v1343_v31, %v6065_v48 }
 0x4bb   :  { %1495 = vrot.lane.b32.xlu0 %v6200_v45, %s5246_s10  ;;  %1819 = vrot.lane.b32.xlu1 %v6169_v34, %s5236_s20  ;;  %v6229_v49 = vpop.permute.xlu1 %1540  ;;  %v6240_v57 = vpop.permute.xlu0 %1619 }
 0x4bc   :  { %8701 = vst [vmem:[#allocation47_spill] sm:$0xff] %v6229_v49  ;;  %8703 = vst [vmem:[#allocation49_spill] sm:$0xff] %v6240_v57  ;;  %v6246_v49 = vmin.f32 %v1351_v3, 6.0  ;;  %v1352_v3 = vmax.f32 %v1344_v50, 0.0 }
 0x4bf   :  { %1913 = vrot.lane.b32.xlu0 %v6200_v45, %s5247_s13  ;;  %1999 = vrot.lane.b32.xlu1 %v6169_v34, %s5248_s14  ;;  %v6238_v59 = vpop.permute.xlu1 %1708  ;;  %v6254_v58 = vpop.permute.xlu0 %1865 }
 0x4c0   :  { %8702 = vst [vmem:[#allocation48_spill] sm:$0xff] %v6238_v59  ;;  %8704 = vst [vmem:[#allocation50_spill] sm:$0xff] %v6254_v58  ;;  %v6269_v58 = vmin.f32 %v1352_v3, 6.0 }
 0x4c3   :  { %1415 = vrot.lane.b32.xlu0 %v6215_v36, %s5245_s9  ;;  %1411 = vrot.lane.b32.xlu1 %v6200_v45, %s5245_s9  ;;  %v6252_v44 = vpop.permute.xlu1 %1756  ;;  %v6263_v59 = vpop.permute.xlu0 %1955 }
 0x4c7   :  { %1667 = vrot.lane.b32.xlu0 %v6215_v36, %s5241_s24  ;;  %1663 = vrot.lane.b32.xlu1 %v6200_v45, %s5241_s24  ;;  %v6261_v57 = vpop.permute.xlu1 %2150  ;;  %v6277_v31 = vpop.permute.xlu0 %2045 }
 0x4c8   :  { %8705 = vst [vmem:[#allocation51_spill] sm:$0xff] %v6261_v57  ;;  %8706 = vst [vmem:[#allocation52_spill] sm:$0xff] %v6277_v31  ;;  %v2189_v31 = vld [vmem:[%s8577_s2 + $0x250] sm:$0xff] }
 0x4cb   :  { %1583 = vrot.lane.b32.xlu0 %v6215_v36, %s5249_s15  ;;  %1579 = vrot.lane.b32.xlu1 %v6200_v45, %s5249_s15  ;;  %v6275_v48 = vpop.permute.xlu1 %4980  ;;  %v6285_v3 = vpop.permute.xlu0 %2215 }
 0x4cc   :  { %8708 = vst [vmem:[#allocation54_spill] sm:$0xff] %v6285_v3 }
 0x4cf   :  { %1917 = vrot.lane.b32.xlu0 %v6215_v36, %s5247_s13  ;;  %1823 = vrot.lane.b32.xlu1 %v6200_v45, %s5236_s20  ;;  %v6283_v50 = vpop.permute.xlu1 %1624  ;;  %v6298_v43 = vpop.permute.xlu0 %4990 }
 0x4d0   :  { %8707 = vst [vmem:[#allocation53_spill] sm:$0xff] %v6283_v50 }
 0x4d3   :  { %1419 = vrot.lane.b32.xlu0 %v6246_v49, %s5245_s9  ;;  %2003 = vrot.lane.b32.xlu1 %v6200_v45, %s5248_s14  ;;  %v6296_v57 = vpop.permute.xlu1 %1870  ;;  %v6306_v3 = vpop.permute.xlu0 %5000 }
 0x4d4   :  { %8709 = vst [vmem:[#allocation55_spill] sm:$0xff] %v6296_v57  ;;  %8711 = vst [vmem:[#allocation57_spill] sm:$0xff] %v6306_v3  ;;  %v2314_v57 = vld [vmem:[%s8577_s2 + $0x278] sm:$0xff]  ;;  %v5002_v37 = vunpack.i.l.bf16 %v6306_v3 }
 0x4d7   :  { %1671 = vrot.lane.b32.xlu0 %v6246_v49, %s5241_s24  ;;  %2093 = vrot.lane.b32.xlu1 %v6200_v45, %s5250_s16  ;;  %v6304_v50 = vpop.permute.xlu1 %1960  ;;  %v6322_v52 = vpop.permute.xlu0 %5005 }
 0x4d8   :  { %8710 = vst [vmem:[#allocation56_spill] sm:$0xff] %v6304_v50 }
 0x4db   :  { %1921 = vrot.lane.b32.xlu0 %v6246_v49, %s5247_s13  ;;  %1499 = vrot.lane.b32.xlu1 %v6215_v36, %s5246_s10  ;;  %v6320_v50 = vpop.permute.xlu1 %2050  ;;  %v6331_v56 = vpop.permute.xlu0 %2135 }
 0x4dc   :  { %8712 = vst [vmem:[#allocation58_spill] sm:$0xff] %v6320_v50  ;;  %8714 = vst [vmem:[#allocation60_spill] sm:$0xff] %v6331_v56  ;;  %v2436_v50 = vld [vmem:[%s8577_s2 + $0x2c8] sm:$0xff] }
 0x4df   :  { %1507 = vrot.lane.b32.xlu0 %v6269_v58, %s5246_s10  ;;  %1827 = vrot.lane.b32.xlu1 %v6215_v36, %s5236_s20 }
 0x4e3   :  { %1591 = vrot.lane.b32.xlu0 %v6269_v58, %s5249_s15  ;;  %2007 = vrot.lane.b32.xlu1 %v6215_v36, %s5248_s14 }
 0x4e7   :  { %1925 = vrot.lane.b32.xlu0 %v6269_v58, %s5247_s13  ;;  %2097 = vrot.lane.b32.xlu1 %v6215_v36, %s5250_s16  ;;  %s5252_s13 = smov 4  }
 0x4eb   :  { %2205 = vperm.xlu0 %4912, %v2189_v31   ;;  %1503 = vrot.lane.b32.xlu1 %v6246_v49, %s5246_s10  ;;  %v2188_v31 = vld [vmem:[%s8577_s2 + $0x248] sm:$0xff] }
 0x4ef   :  { %2085 = vrot.lane.b32.xlu0 %v6155_v46, %s5250_s16  ;;  %1587 = vrot.lane.b32.xlu1 %v6246_v49, %s5249_s15 }
 0x4f3   :  { %2089 = vrot.lane.b32.xlu0 %v6169_v34, %s5250_s16  ;;  %1831 = vrot.lane.b32.xlu1 %v6246_v49, %s5236_s20 }
 0x4f7   :  { %2200 = vperm.xlu0 %4912, %v2188_v31   ;;  %2011 = vrot.lane.b32.xlu1 %v6246_v49, %s5248_s14  ;;  %v6329_v31 = vpop.permute.xlu1 %2220 }
 0x4f8   :  { %8713 = vst [vmem:[#allocation59_spill] sm:$0xff] %v6329_v31  ;;  %v2434_v31 = vld [vmem:[%s8577_s2 + $0x2b8] sm:$0xff] }
 0x4fb   :  { %2322 = vperm.xlu0 %4912, %v2314_v57   ;;  %2101 = vrot.lane.b32.xlu1 %v6246_v49, %s5250_s16  ;;  %v6340_v57 = vpop.permute.xlu0 %5010  ;;  %v6345_v42 = vpop.permute.xlu1 %4995 }
 0x4fc   :  { %8715 = vst [vmem:[#allocation61_spill] sm:$0xff] %v6340_v57  ;;  %8716 = vst [vmem:[#allocation62_spill] sm:$0xff] %v6345_v42 }
 0x4ff   :  { %2496 = vperm.xlu0 %4912, %v2438_v51   ;;  %1423 = vrot.lane.b32.xlu1 %v6269_v58, %s5245_s9  ;;  %v2432_v51 = vld [vmem:[%s8577_s2 + $0x2a8] sm:$0xff]  ;;  %v6354_v56 = vpop.permute.xlu1 %2140  ;;  %s5254_s9 = smov 5  }
 0x500   :  { %8717 = vst [vmem:[#allocation63_spill] sm:$0xff] %v6354_v56  ;;  %v2428_v56 = vld [vmem:[%s8577_s2 + $0x288] sm:$0xff] }
 0x503   :  { %2486 = vperm.xlu0 %4912, %v2436_v50   ;;  %1675 = vrot.lane.b32.xlu1 %v6269_v58, %s5241_s24  ;;  %v6352_v50 = vpop.permute.xlu0 %5015  ;;  %v6365_v62 = vpop.permute.xlu1 %5020 }
 0x507   :  { %2476 = vperm.xlu0 %4912, %v2434_v31   ;;  %1835 = vrot.lane.b32.xlu1 %v6269_v58, %s5236_s20  ;;  %v6363_v31 = vpop.permute.xlu0 %5025 }
 0x50b   :  { %2466 = vperm.xlu0 %4912, %v2432_v51   ;;  %2015 = vrot.lane.b32.xlu1 %v6269_v58, %s5248_s14  ;;  %v2190_v51 = vld [vmem:[%s8577_s2 + $0x258] sm:$0xff] }
 0x50f   :  { %2456 = vperm.xlu0 %4912, %v2430_v8   ;;  %2105 = vrot.lane.b32.xlu1 %v6269_v58, %s5250_s16  ;;  %v2859_v8 = vld [vmem:[%s8577_s2 + $0x338] sm:$0xff] }
 0x513   :  { %2446 = vperm.xlu0 %4912, %v2428_v56   ;;  %2210 = vperm.xlu1 %4913, %v2190_v51   ;;  %v2187_v56 = vld [vmem:[%s8577_s2 + $0x240] sm:$0xff] }
 0x515   :  { %v6376_v6 = vpop.permute.xlu0 %1487  ;;  %v6378_v1 = vpop.permute.xlu1 %1403 }
 0x517   :  { %2917 = vperm.xlu0 %4912, %v2859_v8   ;;  %5030 = vrot.lane.b32.xlu1 %v5752_v23, %s5250_s16  ;;  %v3371_v8 = vld [vmem:[%s8577_s2 + $0x458] sm:$0xff]  ;;  %v2313_v23 = vld [vmem:[%s8577_s2 + $0x270] sm:$0xff] }
 0x519   :  { %v6388_v51 = vpop.permute.xlu0 %1905  ;;  %v6390_v20 = vpop.permute.xlu1 %1655 }
 0x51a   :  { %v1677_v38 = vsel %vm256_vm3, %v5002_v37, %v6390_v20 }
 0x51b   :  { %3088 = vperm.xlu0 %4912, %v3030_v55   ;;  %2195 = vperm.xlu1 %4913, %v2187_v56   ;;  %v2437_v55 = vld [vmem:[%s8577_s2 + $0x2d0] sm:$0xff] }
 0x51d   :  { %v6398_v32 = vpop.permute.xlu0 %1407  ;;  %v6400_v4 = vpop.permute.xlu1 %1571 }
 0x51e   :  { %8718 = vst [vmem:[#allocation64_spill] sm:$0xff] %v6398_v32  ;;  %8719 = vst [vmem:[#allocation65_spill] sm:$0xff] %v6400_v4  ;;  %v3464_v4 = vld [vmem:[%s8577_s2 + $0x4a0] sm:$0xff] }
 0x51f   :  { %3429 = vperm.xlu0 %4912, %v3371_v8   ;;  %2317 = vperm.xlu1 %4913, %v2313_v23   ;;  %v2435_v8 = vld [vmem:[%s8577_s2 + $0x2c0] sm:$0xff] }
 0x521   :  { %v6408_v56 = vpop.permute.xlu0 %1659  ;;  %v6410_v27 = vpop.permute.xlu1 %1815 }
 0x522   :  { %8720 = vst [vmem:[#allocation66_spill] sm:$0xff] %v6408_v56  ;;  %8721 = vst [vmem:[#allocation67_spill] sm:$0xff] %v6410_v27  ;;  %v3613_v27 = vld [vmem:[%s8577_s2 + $0x518] sm:$0xff] }
 0x523   :  { %3525 = vperm.xlu0 %4912, %v3467_v12   ;;  %2491 = vperm.xlu1 %4913, %v2437_v55   ;;  %v2433_v12 = vld [vmem:[%s8577_s2 + $0x2b0] sm:$0xff] }
 0x525   :  { %v6418_v23 = vpop.permute.xlu0 %1575  ;;  %v6420_v21 = vpop.permute.xlu1 %1995 }
 0x526   :  { %8722 = vst [vmem:[#allocation68_spill] sm:$0xff] %v6418_v23  ;;  %8723 = vst [vmem:[#allocation69_spill] sm:$0xff] %v6420_v21  ;;  %v3759_v23 = vld [vmem:[%s8577_s2 + $0x578] sm:$0xff] }
 0x527   :  { %3259 = vperm.xlu0 %4912, %v3201_v15   ;;  %2481 = vperm.xlu1 %4913, %v2435_v8   ;;  %v2431_v15 = vld [vmem:[%s8577_s2 + $0x2a0] sm:$0xff] }
 0x529   :  { %v6428_v55 = vpop.permute.xlu0 %1909  ;;  %v6430_v56 = vpop.permute.xlu1 %1491 }
 0x52a   :  { %8724 = vst [vmem:[#allocation70_spill] sm:$0xff] %v6428_v55  ;;  %8725 = vst [vmem:[#allocation71_spill] sm:$0xff] %v6430_v56  ;;  %v3905_v55 = vld [vmem:[%s8577_s2 + $0x5d8] sm:$0xff] }
 0x52b   :  { %3671 = vperm.xlu0 %4912, %v3613_v27   ;;  %2471 = vperm.xlu1 %4913, %v2433_v12   ;;  %v2429_v27 = vld [vmem:[%s8577_s2 + $0x290] sm:$0xff] }
 0x52d   :  { %v6438_v8 = vpop.permute.xlu0 %1495  ;;  %v6440_v21 = vpop.permute.xlu1 %1819 }
 0x52e   :  { %8726 = vst [vmem:[#allocation72_spill] sm:$0xff] %v6440_v21 }
 0x52f   :  { %3817 = vperm.xlu0 %4912, %v3759_v23   ;;  %2461 = vperm.xlu1 %4913, %v2431_v15   ;;  %v6456_v23 = vpack.i.bf16 %v6452_v33, %v6452_v33  ;;  %v2427_v15 = vld [vmem:[%s8577_s2 + $0x280] sm:$0xff] }
 0x531   :  { %v6448_v12 = vpop.permute.xlu0 %1913  ;;  %v6450_v56 = vpop.permute.xlu1 %1999 }
 0x532   :  { %8727 = vst [vmem:[#allocation73_spill] sm:$0xff] %v6450_v56  ;;  %v3027_v56 = vld [vmem:[%s8577_s2 + $0x380] sm:$0xff] }
 0x533   :  { %3963 = vperm.xlu0 %4912, %v3905_v55   ;;  %2451 = vperm.xlu1 %4913, %v2429_v27   ;;  %v2856_v55 = vld [vmem:[%s8577_s2 + $0x320] sm:$0xff]  ;;  %v2858_v27 = vld [vmem:[%s8577_s2 + $0x330] sm:$0xff] }
 0x535   :  { %v6461_v21 = vpop.permute.xlu1 %1411  ;;  %v6463_v22 = vpop.permute.xlu0 %1415 }
 0x537   :  { %5040 = vrot.lane.b32.xlu0 %v6456_v23, %s5252_s13  ;;  %2441 = vperm.xlu1 %4913, %v2427_v15   ;;  %v3029_v15 = vld [vmem:[%s8577_s2 + $0x390] sm:$0xff] }
 0x539   :  { %v6473_v33 = vpop.permute.xlu1 %1663  ;;  %v6481_v16 = vpop.permute.xlu0 %1667 }
 0x53a   :  { %8729 = vst [vmem:[#allocation75_spill] sm:$0xff] %v6481_v16  ;;  %v4993_v16 = vunpack.i.h.bf16 %v6298_v43 }
 0x53b   :  { %2902 = vperm.xlu0 %4912, %v2856_v55   ;;  %2912 = vperm.xlu1 %4913, %v2858_v27   ;;  %v3370_v55 = vld [vmem:[%s8577_s2 + $0x450] sm:$0xff] }
 0x53d   :  { %v6483_v18 = vpop.permute.xlu1 %1579  ;;  %v6493_v19 = vpop.permute.xlu0 %1583 }
 0x53e   :  { %8730 = vst [vmem:[#allocation76_spill] sm:$0xff] %v6483_v18  ;;  %8732 = vst [vmem:[#allocation78_spill] sm:$0xff] %v6493_v19  ;;  %v4050_v18 = vld [vmem:[%s8577_s2 + $0x630] sm:$0xff] }
 0x53f   :  { %3073 = vperm.xlu0 %4912, %v3027_v56   ;;  %3083 = vperm.xlu1 %4913, %v3029_v15   ;;  %v3466_v56 = vld [vmem:[%s8577_s2 + $0x4b0] sm:$0xff] }
 0x541   :  { %v6491_v27 = vpop.permute.xlu1 %1823 }
 0x542   :  { %8731 = vst [vmem:[#allocation77_spill] sm:$0xff] %v6491_v27  ;;  %v3903_v27 = vld [vmem:[%s8577_s2 + $0x5c8] sm:$0xff] }
 0x543   :  { %3414 = vperm.xlu0 %4912, %v3368_v5   ;;  %3424 = vperm.xlu1 %4913, %v3370_v55   ;;  %v3200_v5 = vld [vmem:[%s8577_s2 + $0x3f0] sm:$0xff]  ;;  %v6509_v55 = vpop.permute.xlu0 %1917 }
 0x544   :  { %8734 = vst [vmem:[#allocation80_spill] sm:$0xff] %v6509_v55  ;;  %v3199_v55 = vld [vmem:[%s8577_s2 + $0x3e8] sm:$0xff] }
 0x545   :  { %v6501_v15 = vpop.permute.xlu1 %2003 }
 0x546   :  { %8733 = vst [vmem:[#allocation79_spill] sm:$0xff] %v6501_v15  ;;  %v3612_v15 = vld [vmem:[%s8577_s2 + $0x510] sm:$0xff] }
 0x547   :  { %3510 = vperm.xlu0 %4912, %v3464_v4   ;;  %3520 = vperm.xlu1 %4913, %v3466_v56   ;;  %v6518_v56 = vpop.permute.xlu0 %1419 }
 0x548   :  { %8737 = vst [vmem:[#allocation83_spill] sm:$0xff] %v6518_v56 }
 0x549   :  { %v6511_v19 = vpop.permute.xlu1 %2093 }
 0x54a   :  { %8735 = vst [vmem:[#allocation81_spill] sm:$0xff] %v6511_v19 }
 0x54b   :  { %4104 = vperm.xlu0 %4912, %v4050_v18   ;;  %3254 = vperm.xlu1 %4913, %v3200_v5   ;;  %v3758_v18 = vld [vmem:[%s8577_s2 + $0x570] sm:$0xff]  ;;  %v6536_v19 = vpop.permute.xlu0 %1671 }
 0x54c   :  { %8739 = vst [vmem:[#allocation85_spill] sm:$0xff] %v6536_v19 }
 0x54d   :  { %v6516_v4 = vpop.permute.xlu1 %1499 }
 0x54e   :  { %8736 = vst [vmem:[#allocation82_spill] sm:$0xff] %v6516_v4  ;;  %v3611_v4 = vld [vmem:[%s8577_s2 + $0x508] sm:$0xff] }
 0x54f   :  { %5050 = vrot.lane.b32.xlu0 %v6456_v23, %s5253_s0  ;;  %3666 = vperm.xlu1 %4913, %v3612_v15   ;;  %v3904_v15 = vld [vmem:[%s8577_s2 + $0x5d0] sm:$0xff]  ;;  %v6560_v7 = vpop.permute.xlu0 %1921 }
 0x550   :  { %8742 = vst [vmem:[#allocation88_spill] sm:$0xff] %v6560_v7  ;;  %v4992_v7 = vunpack.i.l.bf16 %v6298_v43 }
 0x551   :  { %v6528_v5 = vpop.permute.xlu1 %1827 }
 0x552   :  { %8738 = vst [vmem:[#allocation84_spill] sm:$0xff] %v6528_v5  ;;  %v4962_v5 = vunpack.i.l.bf16 %v6145_v29  ;;  %v1425_v20 = vsel %vm1008_vm14, %v4992_v7, %v6378_v1 }
 0x553   :  { %3249 = vperm.xlu0 %4912, %v3199_v55   ;;  %3812 = vperm.xlu1 %4913, %v3758_v18   ;;  %v3757_v18 = vld [vmem:[%s8577_s2 + $0x568] sm:$0xff] }
 0x555   :  { %v6538_v56 = vpop.permute.xlu1 %2007 }
 0x556   :  { %8740 = vst [vmem:[#allocation86_spill] sm:$0xff] %v6538_v56  ;;  %v4957_v56 = vunpack.i.l.bf16 %v6207_v54  ;;  %v6600_v54 = vpop.permute.xlu0 %1507 }
 0x557   :  { %3661 = vperm.xlu0 %4912, %v3611_v4   ;;  %3958 = vperm.xlu1 %4913, %v3904_v15   ;;  %v4997_v15 = vunpack.i.l.bf16 %v6345_v42  ;;  %v1689_v42 = vsel %vm5892_vm5, %v1677_v38, 0.0  ;;  %v3028_v38 = vld [vmem:[%s8577_s2 + $0x388] sm:$0xff] }
 0x558   :  { %v1511_v43 = vsel %vm1025_vm7, %v4957_v56, %v6438_v8  ;;  %v1779_v8 = vmul.f32 %v6185_v0, %v6155_v46  ;;  %v1731_v1 = vmul.f32 %v6173_v63, %v1689_v42  ;;  %v6659_v42 = vmul.f32 %v6103_v40, %v6246_v49  ;;  %v3025_v40 = vld [vmem:[%s8577_s2 + $0x370] sm:$0xff] }
 0x559   :  { %v6550_v4 = vpop.permute.xlu1 %2097  ;;  %v1509_v55 = vsel %vm1025_vm7, %v4997_v15, %v6376_v6  ;;  %v5022_v15 = vunpack.i.l.bf16 %v6365_v62  ;;  %v5007_v6 = vunpack.i.l.bf16 %v6322_v52  ;;  %v1523_v46 = vsel %vm990_vm2, %v1511_v43, 0.0 }
 0x55a   :  { %8741 = vst [vmem:[#allocation87_spill] sm:$0xff] %v6550_v4  ;;  %v4982_v4 = vunpack.i.l.bf16 %v6275_v48  ;;  %v1521_v37 = vsel %vm990_vm2, %v1509_v55, 0.0  ;;  %v5012_v55 = vunpack.i.l.bf16 %v6340_v57  ;;  %v6655_v43 = vpop.permute.xlu0 %1591  ;;  %v1565_v63 = vmul.f32 %v6097_v2, %v1523_v46 }
 0x55b   :  { %3807 = vperm.xlu0 %4912, %v3757_v18   ;;  %5035 = vrot.lane.b32.xlu1 %v6456_v23, %s5254_s9  ;;  %v2857_v18 = vld [vmem:[%s8577_s2 + $0x328] sm:$0xff]  ;;  %v1929_v3 = vsel %vm1105_vm12, %v6388_v51, %v5022_v15  ;;  %v2854_v51 = vld [vmem:[%s8577_s2 + $0x310] sm:$0xff]  ;;  %v1563_v56 = vmul.f32 %v6163_v61, %v1521_v37  ;;  %v6635_v15 = vmul.f32 %v6252_v44, %v6169_v34  ;;  %v8758_v46 = vunpack.i.l.bf16 %v6209_v26 }
 0x55c   :  { %v1781_v61 = vmul.f32 %v6105_v39, %v6200_v45  ;;  %v1931_v37 = vsel %vm1105_vm12, %v6448_v12, %v4982_v4  ;;  %v1679_v34 = vsel %vm256_vm3, %v4962_v5, %v6473_v33  ;;  %v6653_v44 = vmul.f32 %v6143_v25, %v6215_v36  ;;  %v3369_v36 = vld [vmem:[%s8577_s2 + $0x448] sm:$0xff]  ;;  %v8749_v12 = vld [vmem:[#allocation75_spill] sm:$0xff] }
 0x55d   :  { %v6575_v19 = vpop.permute.xlu1 %1503  ;;  %8743 = vst [vmem:[#allocation89_spill] sm:$0xff] %v6635_v15  ;;  %v8744_v45 = vunpack.i.h.bf16 %v6141_v24  ;;  %v6669_v25 = vmul.f32 %v6075_v53, %v6269_v58  ;;  %v8747_v53 = vunpack.i.l.bf16 %v6141_v24  ;;  %v8750_v5 = vunpack.i.h.bf16 %v6145_v29 }
 0x55e   :  { %v8756_v29 = vunpack.i.h.bf16 %v6209_v26  ;;  %v3366_v26 = vld [vmem:[%s8577_s2 + $0x430] sm:$0xff] }
 0x55f   :  { %3953 = vperm.xlu0 %4912, %v3903_v27   ;;  %5045 = vrot.lane.b32.xlu1 %v6456_v23, %s5241_s24  ;;  %v1941_v27 = vsel %vm5932_vm13, %v1929_v3, 0.0  ;;  %v1428_v33 = vsel %vm1008_vm14, %v8744_v45, %v6463_v22  ;;  %v1943_v22 = vsel %vm5932_vm13, %v1931_v37, 0.0  ;;  %v1427_v49 = vsel %vm1008_vm14, %v8747_v53, %v6461_v21  ;;  %v8760_v45 = vld [vmem:[#allocation33_spill] sm:$0xff] }
 0x560   :  { %v6680_v2 = vmul.f32 %v6263_v59, %v1941_v27  ;;  %v1680_v4 = vsel %vm256_vm3, %v8750_v5, %v8749_v12  ;;  %v1691_v59 = vsel %vm5892_vm5, %v1679_v34, 0.0  ;;  %v8751_v27 = vunpack.i.l.bf16 %v6219_v17  ;;  %v8759_v34 = vld [vmem:[#allocation65_spill] sm:$0xff] }
 0x561   :  { %v6602_v32 = vpop.permute.xlu1 %1587  ;;  %v1440_v21 = vsel %vm5919_vm4, %v1428_v33, 0.0  ;;  %v6721_v33 = vmul.f32 %v8760_v45, %v1943_v22  ;;  %v1439_v53 = vsel %vm5919_vm4, %v1427_v49, 0.0  ;;  %v8763_v12 = vld [vmem:[#allocation85_spill] sm:$0xff]  ;;  %v8764_v5 = vunpack.i.l.bf16 %v6127_v14  ;;  %v8769_v45 = vld [vmem:[#allocation20_spill] sm:$0xff] }
 0x562   :  { %8746 = vst [vmem:[#allocation91_spill] sm:$0xff] %v6680_v2 }
 0x563   :  { %5060 = vrot.lane.b32.xlu0 %v6456_v23, %s5252_s13  ;;  %2907 = vperm.xlu1 %4913, %v2857_v18   ;;  %v1437_v18 = vsel %vm5919_vm4, %v1425_v20, 0.0  ;;  %v1681_v49 = vsel %vm256_vm3, %v8764_v5, %v8763_v12  ;;  %v8770_v12 = vunpack.i.h.bf16 %v6275_v48  ;;  %v8771_v5 = vld [vmem:[#allocation80_spill] sm:$0xff]  ;;  %v8776_v48 = vld [vmem:[#allocation18_spill] sm:$0xff] }
 0x564   :  { %v1479_v39 = vmul.f32 %v6153_v41, %v1437_v18  ;;  %v6677_v41 = vadd.f32 %v1779_v8, %v1563_v56  ;;  %v8752_v8 = vld [vmem:[#allocation77_spill] sm:$0xff]  ;;  %v8757_v18 = vld [vmem:[#allocation76_spill] sm:$0xff] }
 0x565   :  { %v6639_v0 = vpop.permute.xlu1 %1831  ;;  %v1595_v37 = vsel %vm1042_vm1, %v8758_v46, %v8757_v18  ;;  %v8774_v20 = vld [vmem:[#allocation36_spill] sm:$0xff] }
 0x566   :  { %8745 = vst [vmem:[#allocation90_spill] sm:$0xff] %v6677_v41  ;;  %v6688_v3 = vadd.f32 %v1731_v1, %v1479_v39  ;;  %v8755_v1 = vld [vmem:[#allocation78_spill] sm:$0xff]  ;;  %v6716_v39 = vsel %vm1042_vm1, %v5012_v55, %v8759_v34  ;;  %v1692_v55 = vsel %vm5892_vm5, %v1680_v4, 0.0  ;;  %v1607_v4 = vsel %vm5908_vm11, %v1595_v37, 0.0 }
 0x567   :  { %2892 = vperm.xlu0 %4912, %v2854_v51   ;;  %3078 = vperm.xlu1 %4913, %v3028_v38   ;;  %v1841_v51 = vsel %vm8753_vm15, %v8752_v8, %v8751_v27  ;;  %v8754_v38 = vld [vmem:[#allocation64_spill] sm:$0xff]  ;;  %v1596_v56 = vsel %vm1042_vm1, %v8756_v29, %v8755_v1  ;;  %v6740_v27 = vpop.permute.xlu0 %1925  ;;  %v6766_v7 = vmul.f32 %v8774_v20, %v1692_v55 }
 0x568   :  { %8748 = vst [vmem:[#allocation92_spill] sm:$0xff] %v6688_v3  ;;  %v6702_v24 = vsel %vm1008_vm14, %v4993_v16, %v8754_v38  ;;  %v6718_v16 = vadd.f32 %v1781_v61, %v1565_v63  ;;  %v1853_v22 = vsel %vm5888_vm9, %v1841_v51, 0.0  ;;  %v8765_v38 = vld [vmem:[#allocation32_spill] sm:$0xff]  ;;  %v1608_v18 = vsel %vm5908_vm11, %v1596_v56, 0.0 }
 0x569   :  { %v2012_v58 = vpop.permute.xlu1 %2011  ;;  %v6743_v1 = vmul.f32 %v8765_v38, %v1440_v21  ;;  %v8768_v51 = vunpack.i.l.bf16 %v6123_v11  ;;  %v6759_v21 = vsel %vm1105_vm12, %v8771_v5, %v8770_v12  ;;  %v8772_v56 = vunpack.i.l.bf16 %v6231_v47  ;;  %v8773_v38 = vld [vmem:[#allocation79_spill] sm:$0xff]  ;;  %v3462_v5 = vld [vmem:[%s8577_s2 + $0x490] sm:$0xff] }
 0x56b   :  { %3063 = vperm.xlu0 %4912, %v3025_v40   ;;  %3419 = vperm.xlu1 %4913, %v3369_v36   ;;  %v3465_v40 = vld [vmem:[%s8577_s2 + $0x4a8] sm:$0xff]  ;;  %v8761_v36 = vld [vmem:[#allocation23_spill] sm:$0xff]  ;;  %v2021_v37 = vsel %vm1123_vm8, %v8773_v38, %v8772_v56  ;;  %v6789_v38 = vpop.permute.xlu0 %2205 }
 0x56c   :  { %v1733_v61 = vmul.f32 %v8761_v36, %v1691_v59  ;;  %v8767_v59 = vld [vmem:[#allocation83_spill] sm:$0xff]  ;;  %v1481_v36 = vmul.f32 %v8769_v45, %v1439_v53  ;;  %v1693_v53 = vsel %vm5892_vm5, %v1681_v49, 0.0  ;;  %v8777_v45 = vunpack.i.l.bf16 %v8776_v48  ;;  %8780 = vst [vmem:[#allocation75_spill] sm:$0xff] %v6789_v38 }
 0x56d   :  { %v2102_v8 = vpop.permute.xlu1 %2101  ;;  %v1429_v46 = vsel %vm1008_vm14, %v8768_v51, %v8767_v59  ;;  %v8775_v59 = vld [vmem:[#allocation31_spill] sm:$0xff] }
 0x56e   :  { %v1895_v51 = vmul.f32 %v8775_v59, %v1853_v22  ;;  %v1513_v12 = vsel %vm1025_vm7, %v8777_v45, %v6575_v19  ;;  %v6781_v20 = vadd.f32 %v1733_v61, %v1481_v36  ;;  %v8779_v22 = vld [vmem:[#allocation30_spill] sm:$0xff]  ;;  %v1441_v56 = vsel %vm5919_vm4, %v1429_v46, 0.0  ;;  %v8786_v59 = vld [vmem:[#allocation39_spill] sm:$0xff] }
 0x56f   :  { %3404 = vperm.xlu0 %4912, %v3366_v26   ;;  %3515 = vperm.xlu1 %4913, %v3465_v40   ;;  %v4051_v26 = vld [vmem:[%s8577_s2 + $0x638] sm:$0xff]  ;;  %v8778_v40 = vld [vmem:[#allocation40_spill] sm:$0xff]  ;;  %v1649_v49 = vmul.f32 %v8779_v22, %v1607_v4  ;;  %v2033_v45 = vsel %vm991_vm6, %v2021_v37, 0.0  ;;  %v8781_v61 = vunpack.i.l.bf16 %v6117_v9  ;;  %v8782_v4 = vunpack.i.l.bf16 %v6121_v10  ;;  %v8783_v46 = vld [vmem:[#allocation22_spill] sm:$0xff]  ;;  %v6858_v38 = vpop.permute.xlu0 %2085 }
 0x570   :  { %v6784_v55 = vmul.f32 %v8778_v40, %v1608_v18  ;;  %v1735_v40 = vmul.f32 %v8783_v46, %v1693_v53  ;;  %v8784_v22 = vld [vmem:[#allocation81_spill] sm:$0xff]  ;;  %v8787_v30 = vunpack.i.l.bf16 %v8786_v59  ;;  %v8788_v37 = vld [vmem:[#allocation88_spill] sm:$0xff] }
 0x571   :  { %v1424_v19 = vpop.permute.xlu1 %1423  ;;  %v1843_v18 = vsel %vm8753_vm15, %v6639_v0, %v8781_v61  ;;  %v2023_v36 = vsel %vm1123_vm8, %v2012_v58, %v8782_v4  ;;  %v6808_v34 = vsel %vm8785_vm10, %v8784_v22, %v5007_v6  ;;  %v1525_v0 = vsel %vm990_vm2, %v1513_v12, 0.0  ;;  %v8789_v58 = vld [vmem:[#allocation19_spill] sm:$0xff]  ;;  %v8792_v22 = vld [vmem:[#allocation38_spill] sm:$0xff] }
 0x572   :  { %v1933_v2 = vsel %vm1105_vm12, %v8788_v37, %v8787_v30  ;;  %v6816_v61 = vadd.f32 %v1895_v51, %v1649_v49  ;;  %v1483_v53 = vmul.f32 %v8789_v58, %v1441_v56  ;;  %v8790_v4 = vld [vmem:[#allocation27_spill] sm:$0xff]  ;;  %v8793_v3 = vunpack.i.l.bf16 %v8792_v22  ;;  %v4048_v30 = vld [vmem:[%s8577_s2 + $0x620] sm:$0xff]  ;;  %v8797_v58 = vld [vmem:[#allocation21_spill] sm:$0xff] }
 0x573   :  { %3500 = vperm.xlu0 %4912, %v3462_v5   ;;  %4109 = vperm.xlu1 %4913, %v4051_v26   ;;  %v8791_v46 = vunpack.i.l.bf16 %v8790_v4  ;;  %v3198_v51 = vld [vmem:[%s8577_s2 + $0x3e0] sm:$0xff]  ;;  %v8794_v12 = vld [vmem:[#allocation35_spill] sm:$0xff]  ;;  %v8795_v26 = vunpack.i.h.bf16 %v8776_v48  ;;  %v1855_v49 = vsel %vm5888_vm9, %v1843_v18, 0.0  ;;  %v2123_v37 = vsel %vm5947_vm0, %v6808_v34, 0.0  ;;  %v8800_v18 = vld [vmem:[#allocation45_spill] sm:$0xff] }
 0x574   :  { %v2113_v41 = vsel %vm8785_vm10, %v2102_v8, %v8793_v3  ;;  %v6833_v5 = vmul.f32 %v8794_v12, %v2033_v45  ;;  %v2035_v3 = vsel %vm991_vm6, %v2023_v36, 0.0  ;;  %v1945_v45 = vsel %vm5932_vm13, %v1933_v2, 0.0  ;;  %v8802_v34 = vld [vmem:[#allocation26_spill] sm:$0xff] }
 0x575   :  { %v1597_v6 = vsel %vm1042_vm1, %v8791_v46, %v6602_v32  ;;  %v1514_v32 = vsel %vm1025_vm7, %v8795_v26, %v6600_v54  ;;  %v1676_v8 = vpop.permute.xlu1 %1675  ;;  %v1567_v46 = vmul.f32 %v8797_v58, %v1525_v0  ;;  %v8798_v48 = vunpack.i.h.bf16 %v6127_v14  ;;  %v8799_v26 = vld [vmem:[#allocation82_spill] sm:$0xff]  ;;  %v8803_v0 = vld [vmem:[#allocation29_spill] sm:$0xff]  ;;  %v8805_v58 = vld [vmem:[#allocation28_spill] sm:$0xff] }
 0x576   :  { %v1741_v12 = vadd.f32 %v1735_v40, %v1483_v53  ;;  %v8801_v15 = vunpack.i.h.bf16 %v8800_v18  ;;  %v1609_v57 = vsel %vm5908_vm11, %v1597_v6, 0.0  ;;  %v2125_v2 = vsel %vm5947_vm0, %v2113_v41, 0.0  ;;  %v3610_v6 = vld [vmem:[%s8577_s2 + $0x500] sm:$0xff] }
 0x577   :  { %v1682_v54 = vsel %vm256_vm3, %v8798_v48, %v1676_v8  ;;  %4094 = vperm.xlu0 %4912, %v4048_v30   ;;  %3244 = vperm.xlu1 %4913, %v3198_v51   ;;  %v1526_v14 = vsel %vm990_vm2, %v1514_v32, 0.0  ;;  %v1897_v40 = vmul.f32 %v8802_v34, %v1855_v49  ;;  %v2077_v53 = vmul.f32 %v8803_v0, %v2035_v3  ;;  %v8807_v30 = vld [vmem:[#allocation84_spill] sm:$0xff]  ;;  %v8810_v34 = vld [vmem:[#allocation25_spill] sm:$0xff] }
 0x578   :  { %v1512_v36 = vsel %vm1025_vm7, %v8801_v15, %v8799_v26  ;;  %v8804_v8 = vunpack.i.h.bf16 %v6123_v11  ;;  %v1987_v48 = vmul.f32 %v8805_v58, %v1945_v45  ;;  %v8806_v41 = vunpack.i.h.bf16 %v6219_v17  ;;  %v8809_v26 = vld [vmem:[#allocation24_spill] sm:$0xff] }
 0x579   :  { %v8808_v32 = vunpack.i.h.bf16 %v8790_v4  ;;  %v1694_v11 = vsel %vm5892_vm5, %v1682_v54, 0.0  ;;  %v1789_v3 = vadd.f32 %v6659_v42, %v1567_v46  ;;  %v1651_v18 = vmul.f32 %v8809_v26, %v1609_v57  ;;  %v8813_v4 = vld [vmem:[#allocation12_spill] sm:$0xff]  ;;  %v8820_v26 = vld [vmem:[#allocation11_spill] sm:$0xff] }
 0x57a   :  { %v1430_v15 = vsel %vm1008_vm14, %v8804_v8, %v1424_v19  ;;  %v1842_v51 = vsel %vm8753_vm15, %v8807_v30, %v8806_v41  ;;  %v1836_v19 = vpop.permute.xlu1 %1835  ;;  %v2167_v45 = vmul.f32 %v8810_v34, %v2125_v2  ;;  %v8811_v17 = vunpack.i.h.bf16 %v6117_v9  ;;  %vm8812_vm14 = vmmov %vm8753_vm15  ;;  %v8815_v41 = vld [vmem:[#allocation86_spill] sm:$0xff]  ;;  %v8817_v2 = vld [vmem:[#allocation13_spill] sm:$0xff] }
 0x57b   :  { %v1598_v49 = vsel %vm1042_vm1, %v8808_v32, %v6655_v43  ;;  %v1524_v8 = vsel %vm990_vm2, %v1512_v36, 0.0  ;;  %v1568_v58 = vmul.f32 %v8813_v4, %v1526_v14  ;;  %v8814_v43 = vunpack.i.h.bf16 %v6231_v47  ;;  %5070 = vrot.lane.b32.xlu0 %v6456_v23, %s5253_s0  ;;  %3656 = vperm.xlu1 %4913, %v3610_v6   ;;  %v3197_v47 = vld [vmem:[%s8577_s2 + $0x3d8] sm:$0xff]  ;;  %vm8829_vm15 = vmmov %vm8785_vm10 }
 0x57c   :  { %v1844_v0 = vsel %vm8812_vm14, %v1836_v19, %v8811_v17  ;;  %v1442_v42 = vsel %vm5919_vm4, %v1430_v15, 0.0  ;;  %v8816_v9 = vunpack.i.h.bf16 %v8786_v59  ;;  %v1903_v46 = vadd.f32 %v1897_v40, %v1651_v18  ;;  %v3756_v15 = vld [vmem:[%s8577_s2 + $0x560] sm:$0xff] }
 0x57d   :  { %v2022_v54 = vsel %vm1123_vm8, %v8815_v41, %v8814_v43  ;;  %v2083_v36 = vadd.f32 %v2077_v53, %v1789_v3  ;;  %v1736_v14 = vmul.f32 %v8817_v2, %v1694_v11  ;;  %v1993_v30 = vadd.f32 %v1987_v48, %v1741_v12  ;;  %v8819_v11 = vld [vmem:[#allocation87_spill] sm:$0xff]  ;;  %v8824_v41 = vld [vmem:[#allocation44_spill] sm:$0xff] }
 0x57e   :  { %v1934_v57 = vsel %vm1105_vm12, %v6740_v27, %v8816_v9  ;;  %v1854_v6 = vsel %vm5888_vm9, %v1842_v51, 0.0  ;;  %v1610_v59 = vsel %vm5908_vm11, %v1598_v49, 0.0  ;;  %v6915_v27 = vpop.permute.xlu0 %2089  ;;  %v1856_v40 = vsel %vm5888_vm9, %v1844_v0, 0.0  ;;  %v2016_v53 = vpop.permute.xlu1 %2015  ;;  %v8822_v0 = vld [vmem:[#allocation15_spill] sm:$0xff] }
 0x57f   :  { %v8818_v32 = vunpack.i.h.bf16 %v6322_v52  ;;  %v2173_v3 = vadd.f32 %v2167_v45, %v1903_v46  ;;  %v1484_v12 = vmul.f32 %v8820_v26, %v1442_v42  ;;  %v8821_v48 = vunpack.i.h.bf16 %v6121_v10  ;;  %3239 = vperm.xlu0 %4912, %v3197_v47   ;;  %3802 = vperm.xlu1 %4913, %v3756_v15   ;;  %v8823_v10 = vld [vmem:[#allocation17_spill] sm:$0xff]  ;;  %v8825_v42 = vld [vmem:[#allocation34_spill] sm:$0xff] }
 0x580   :  { %v1790_v49 = vadd.f32 %v6669_v25, %v1568_v58  ;;  %v2034_v18 = vsel %vm991_vm6, %v2022_v54, 0.0  ;;  %v1946_v34 = vsel %vm5932_vm13, %v1934_v57, 0.0  ;;  %v2179_v45 = vadd.f32 %v2083_v36, %v1993_v30  ;;  %v3609_v25 = vld [vmem:[%s8577_s2 + $0x4f8] sm:$0xff]  ;;  %v3902_v58 = vld [vmem:[%s8577_s2 + $0x5c0] sm:$0xff]  ;;  %v8826_v57 = vld [vmem:[#allocation14_spill] sm:$0xff] }
 0x581   :  { %v2112_v19 = vsel %vm8785_vm10, %v8819_v11, %v8818_v32  ;;  %v2024_v51 = vsel %vm1123_vm8, %v2016_v53, %v8821_v48  ;;  %v1742_v17 = vadd.f32 %v1736_v14, %v1484_v12  ;;  %v1898_v4 = vmul.f32 %v8822_v0, %v1856_v40  ;;  %v8827_v14 = vld [vmem:[#allocation16_spill] sm:$0xff]  ;;  %v8832_v48 = vld [vmem:[#allocation37_spill] sm:$0xff] }
 0x582   :  { %v2036_v52 = vsel %vm991_vm6, %v2024_v51, 0.0  ;;  %v2165_v54 = vmul.f32 %v8824_v41, %v2123_v37  ;;  %v1566_v9 = vmul.f32 %v8825_v42, %v1524_v8  ;;  %v1652_v46 = vmul.f32 %v8826_v57, %v1610_v59  ;;  %v2106_v2 = vpop.permute.xlu1 %2105  ;;  %v8830_v37 = vld [vmem:[#allocation41_spill] sm:$0xff]  ;;  %v8831_v8 = vld [vmem:[#allocation43_spill] sm:$0xff]  ;;  %v6955_v59 = vpop.permute.xlu0 %2200 }
 0x583   :  { %v2078_v43 = vmul.f32 %v8823_v10, %v2036_v52  ;;  %v2124_v36 = vsel %vm5947_vm0, %v2112_v19, 0.0  ;;  %v1988_v47 = vmul.f32 %v8827_v14, %v1946_v34  ;;  %v2185_v15 = vadd.f32 %v2179_v45, %v2173_v3  ;;  %3651 = vperm.xlu0 %4912, %v3609_v25   ;;  %3948 = vperm.xlu1 %4913, %v3902_v58   ;;  %v8835_v34 = vld [vmem:[#allocation51_spill] sm:$0xff]  ;;  %v8836_v45 = vld [vmem:[#allocation54_spill] sm:$0xff]  ;;  %v8841_v42 = vld [vmem:[#allocation57_spill] sm:$0xff] }
 0x584   :  { %v8828_v40 = vunpack.i.h.bf16 %v8792_v22  ;;  %v2081_v32 = vadd.f32 %v6833_v5, %v6718_v16  ;;  %v1896_v11 = vmul.f32 %v8830_v37, %v1854_v6  ;;  %v2076_v26 = vmul.f32 %v8831_v8, %v2034_v18  ;;  %v3755_v16 = vld [vmem:[%s8577_s2 + $0x558] sm:$0xff]  ;;  %v8834_v6 = vld [vmem:[#allocation42_spill] sm:$0xff]  ;;  %v8850_v8 = vld [vmem:[#allocation73_spill] sm:$0xff] }
 0x585   :  { %v2084_v30 = vadd.f32 %v2078_v43, %v1790_v49  ;;  %v1991_v3 = vadd.f32 %v6721_v33, %v6781_v20  ;;  %v1994_v22 = vadd.f32 %v1988_v47, %v1742_v17  ;;  %v1904_v12 = vadd.f32 %v1898_v4, %v1652_v46  ;;  %v3901_v41 = vld [vmem:[%s8577_s2 + $0x5b8] sm:$0xff] }
 0x586   :  { %v2114_v53 = vsel %vm8829_vm15, %v2106_v2, %v8828_v40  ;;  %v8833_v5 = vsel %vm5932_vm13, %v6759_v21, 0.0  ;;  %v1788_v18 = vadd.f32 %v6653_v44, %v1566_v9  ;;  %v2166_v52 = vmul.f32 %v8835_v34, %v2124_v36  ;;  %v6997_v46 = vpop.permute.xlu0 %2322  ;;  %v8844_v2 = vld [vmem:[#allocation67_spill] sm:$0xff]  ;;  %v8856_v34 = vld [vmem:[#allocation68_spill] sm:$0xff] }
 0x587   :  { %v2126_v19 = vsel %vm5947_vm0, %v2114_v53, 0.0  ;;  %v1986_v49 = vmul.f32 %v8834_v6, %v8833_v5  ;;  %v2171_v33 = vadd.f32 %v2165_v54, %v6816_v61  ;;  %v1740_v20 = vadd.f32 %v6766_v7, %v6743_v1  ;;  %3797 = vperm.xlu0 %4912, %v3755_v16   ;;  %5055 = vrot.lane.b32.xlu1 %v6456_v23, %s5254_s9  ;;  %v8837_v1 = vld [vmem:[#allocation71_spill] sm:$0xff]  ;;  %v8838_v61 = vld [vmem:[#allocation62_spill] sm:$0xff]  ;;  %v8854_v5 = vld [vmem:[#allocation72_spill] sm:$0xff] }
 0x588   :  { %v2168_v51 = vmul.f32 %v8832_v48, %v2126_v19  ;;  %v2227_v17 = vadd.f32 %v8836_v45, %v2185_v15  ;;  %v2180_v0 = vadd.f32 %v2084_v30, %v1994_v22  ;;  %v5023_v10 = vunpack.i.h.bf16 %v6365_v62  ;;  %v8840_v54 = vld [vmem:[#allocation66_spill] sm:$0xff]  ;;  %v8847_v15 = vld [vmem:[#allocation69_spill] sm:$0xff]  ;;  %v8848_v40 = vld [vmem:[#allocation59_spill] sm:$0xff] }
 0x589   :  { %v1902_v43 = vadd.f32 %v1896_v11, %v6784_v55  ;;  %v2082_v21 = vadd.f32 %v2076_v26, %v1788_v18  ;;  %v2177_v25 = vadd.f32 %v2081_v32, %v1991_v3  ;;  %v1438_v44 = vsel %vm5919_vm4, %v6702_v24, 0.0  ;;  %vm8845_vm4 = vmmov %vm8812_vm14  ;;  %v8851_v19 = vld [vmem:[#allocation75_spill] sm:$0xff]  ;;  %v8852_v48 = vld [vmem:[#allocation70_spill] sm:$0xff] }
 0x58a   :  { %v2174_v4 = vadd.f32 %v2168_v51, %v1904_v12  ;;  %v1605_v7 = vsel %vm5908_vm11, %v6716_v39, 0.0  ;;  %v8839_v58 = vunpack.i.h.bf16 %v8838_v61  ;;  %v8842_v9 = vunpack.i.h.bf16 %v8841_v42  ;;  %v4171_v6 = vld [vmem:[%s8577_s2 + $0x698] sm:$0xff]  ;;  %v8862_v42 = vld [vmem:[#allocation52_spill] sm:$0xff] }
 0x58b   :  { %v1992_v24 = vadd.f32 %v1986_v49, %v1740_v20  ;;  %v2183_v57 = vadd.f32 %v2177_v25, %v2171_v33  ;;  %v2172_v39 = vadd.f32 %v2166_v52, %v1902_v43  ;;  %v8843_v36 = vunpack.i.l.bf16 %v6352_v50  ;;  %3943 = vperm.xlu0 %4912, %v3901_v41   ;;  %5065 = vrot.lane.b32.xlu1 %v6456_v23, %s5241_s24  ;;  %v2855_v49 = vld [vmem:[%s8577_s2 + $0x318] sm:$0xff]  ;;  %v8857_v52 = vld [vmem:[#allocation61_spill] sm:$0xff] }
 0x58c   :  { %v1510_v62 = vsel %vm1025_vm7, %v8839_v58, %v8837_v1  ;;  %v2186_v55 = vadd.f32 %v2180_v0, %v2174_v4  ;;  %v1678_v28 = vsel %vm256_vm3, %v8842_v9, %v8840_v54  ;;  %v8846_v47 = vunpack.i.l.bf16 %v6363_v31  ;;  %vm8855_vm7 = vmmov %vm8845_vm4  ;;  %v7046_v58 = vpop.permute.xlu0 %2496  ;;  %v8861_v54 = vld [vmem:[#allocation48_spill] sm:$0xff] }
 0x58d   :  { %v1839_v14 = vsel %vm8845_vm4, %v8844_v2, %v8843_v36  ;;  %v2233_v32 = vmax.f32 %v2227_v17, 0.0  ;;  %v1522_v37 = vsel %vm990_vm2, %v1510_v62, 0.0  ;;  %v8849_v11 = vunpack.i.h.bf16 %v6363_v31  ;;  %v8859_v17 = vld [vmem:[#allocation47_spill] sm:$0xff]  ;;  %vm8874_vm2 = vmmov %vm8785_vm10 }
 0x58e   :  { %v2019_v30 = vsel %vm1123_vm8, %v8847_v15, %v8846_v47  ;;  %v2228_v53 = vadd.f32 %v8848_v40, %v2186_v55  ;;  %v2225_v3 = vadd.f32 %v8851_v19, %v2183_v57  ;;  %v2178_v22 = vadd.f32 %v2082_v21, %v1992_v24  ;;  %v8860_v55 = vld [vmem:[#allocation46_spill] sm:$0xff]  ;;  %v8863_v24 = vld [vmem:[#allocation49_spill] sm:$0xff] }
 0x58f   :  { %v2020_v26 = vsel %vm1123_vm8, %v8850_v8, %v8849_v11  ;;  %v1690_v12 = vsel %vm5892_vm5, %v1678_v28, 0.0  ;;  %v1930_v51 = vsel %vm1105_vm12, %v8852_v48, %v5023_v10  ;;  %v8853_v16 = vunpack.i.h.bf16 %v6352_v50  ;;  %v2211_v10 = vpop.permute.xlu1 %2210  ;;  %4229 = vperm.xlu0 %4912, %v4171_v6   ;;  %2897 = vperm.xlu1 %4913, %v2855_v49   ;;  %v8869_v19 = vld [vmem:[#allocation53_spill] sm:$0xff]  ;;  %v8871_v48 = vld [vmem:[#allocation92_spill] sm:$0xff]  ;;  %v3367_v6 = vld [vmem:[%s8577_s2 + $0x438] sm:$0xff] }
 0x590   :  { %v2234_v18 = vmax.f32 %v2228_v53, 0.0  ;;  %v1851_v60 = vsel %vm5888_vm9, %v1839_v14, 0.0  ;;  %v8858_v33 = vunpack.i.h.bf16 %v8857_v52  ;;  %v2031_v20 = vsel %vm991_vm6, %v2019_v30, 0.0  ;;  %v8865_v14 = vld [vmem:[#allocation50_spill] sm:$0xff]  ;;  %v8867_v30 = vld [vmem:[#allocation89_spill] sm:$0xff]  ;;  %v8868_v53 = vld [vmem:[#allocation55_spill] sm:$0xff] }
 0x591   :  { %v1840_v31 = vsel %vm8855_vm7, %v8854_v5, %v8853_v16  ;;  %v2184_v45 = vadd.f32 %v2178_v22, %v2172_v39  ;;  %v1564_v0 = vmul.f32 %v8859_v17, %v1522_v37  ;;  %v2032_v4 = vsel %vm991_vm6, %v2020_v26, 0.0  ;;  %v8864_v39 = vld [vmem:[#allocation58_spill] sm:$0xff] }
 0x592   :  { %v1594_v50 = vsel %vm1042_vm1, %v8858_v33, %v8856_v34  ;;  %v2239_v43 = vmin.f32 %v2233_v32, 6.0  ;;  %v2240_v21 = vmin.f32 %v2234_v18, 6.0  ;;  %v1942_v25 = vsel %vm5932_vm13, %v1930_v51, 0.0  ;;  %v8870_v22 = vld [vmem:[#allocation90_spill] sm:$0xff]  ;;  %v8872_v51 = vld [vmem:[#allocation91_spill] sm:$0xff]  ;;  %v7075_v18 = vpop.permute.xlu0 %2486 }
 0x593   :  { %v1852_v1 = vsel %vm5888_vm9, %v1840_v31, 0.0  ;;  %v2231_v61 = vmax.f32 %v2225_v3, 0.0  ;;  %v2226_v62 = vadd.f32 %v2211_v10, %v2184_v45  ;;  %v1480_v41 = vmul.f32 %v8860_v55, %v1438_v44  ;;  %v8866_v44 = vld [vmem:[#allocation56_spill] sm:$0xff]  ;;  %v5031_v37 = vpop.permute.xlu1 %5030  ;;  %5080 = vrot.lane.b32.xlu0 %v6456_v23, %s5252_s13  ;;  %3068 = vperm.xlu1 %4913, %v3026_v35   ;;  %v8873_v5 = vld [vmem:[#allocation74_spill] sm:$0xff]  ;;  %vm8875_vm9 = vmmov %vm8874_vm2 }
 0x594   :  { %v1732_v13 = vmul.f32 %v8861_v54, %v1690_v12  ;;  %v2073_v9 = vmul.f32 %v8862_v42, %v2031_v20  ;;  %v2245_v28 = vpack.c.bf16 %v2240_v21, %v2239_v43  ;;  %v1647_v63 = vmul.f32 %v8863_v24, %v1605_v7  ;;  %v2852_v31 = vld [vmem:[%s8577_s2 + $0x300] sm:$0xff] }
 0x595   :  { %v1606_v57 = vsel %vm5908_vm11, %v1594_v50, 0.0  ;;  %v2074_v36 = vmul.f32 %v8864_v39, %v2032_v4  ;;  %v2232_v2 = vmax.f32 %v2226_v62, 0.0  ;;  %v1893_v47 = vmul.f32 %v8865_v14, %v1851_v60  ;;  %v8877_v10 = vld [vmem:[#allocation60_spill] sm:$0xff]  ;;  %v3608_v14 = vld [vmem:[%s8577_s2 + $0x4f0] sm:$0xff] }
 0x596   :  { %v1984_v15 = vmul.f32 %v8866_v44, %v1942_v25  ;;  %v1786_v40 = vadd.f32 %v8867_v30, %v1564_v0  ;;  %v1894_v32 = vmul.f32 %v8868_v53, %v1852_v1  ;;  %4804 = vmatpush3.bf16.msra.mxu0 %v2245_v28  ;;  %v2237_v11 = vmin.f32 %v2231_v61, 6.0  ;;  %v8876_v0 = vld [vmem:[#allocation63_spill] sm:$0xff]  ;;  %v7094_v61 = vpop.permute.xlu0 %2476  ;;  %v3364_v54 = vld [vmem:[%s8577_s2 + $0x420] sm:$0xff]  ;;  %v3195_v30 = vld [vmem:[%s8577_s2 + $0x3c8] sm:$0xff] }
 0x597   :  { %v2238_v8 = vmin.f32 %v2232_v2, 6.0  ;;  %v5033_v26 = vunpack.i.h.bf16 %v5031_v37  ;;  %v5032_v7 = vunpack.i.l.bf16 %v5031_v37  ;;  %v1738_v29 = vadd.f32 %v1732_v13, %v1480_v41  ;;  %4805 = vmatprep.subr.bf16.mxu0 %v8873_v5  ;;  %2882 = vperm.xlu0 %4912, %v2852_v31   ;;  %v2196_v41 = vpop.permute.xlu1 %2195  ;;  %v4049_v13 = vld [vmem:[%s8577_s2 + $0x628] sm:$0xff]  ;;  %v3460_v24 = vld [vmem:[%s8577_s2 + $0x480] sm:$0xff]  ;;  %v2850_v31 = vld [vmem:[%s8577_s2 + $0x2f0] sm:$0xff] }
 0x598   :  { %v1648_v3 = vmul.f32 %v8869_v19, %v1606_v57  ;;  %v2079_v12 = vadd.f32 %v2073_v9, %v8870_v22  ;;  %v1989_v16 = vadd.f32 %v8872_v51, %v8871_v48  ;;  %v2080_v49 = vadd.f32 %v2074_v36, %v1786_v40  ;;  %3409 = vperm.xlu1 %4913, %v3367_v6   ;;  %v3900_v40 = vld [vmem:[%s8577_s2 + $0x5b0] sm:$0xff]  ;;  %v3607_v37 = vld [vmem:[%s8577_s2 + $0x4e8] sm:$0xff] }
 0x599   :  { %v2244_v60 = vpack.c.bf16 %v2238_v8, %v2237_v11  ;;  %v2110_v34 = vsel %vm8874_vm2, %v6915_v27, %v5033_v26  ;;  %v2109_v52 = vsel %vm8875_vm9, %v6858_v38, %v5032_v7  ;;  %v1899_v33 = vadd.f32 %v1893_v47, %v1647_v63  ;;  %v3023_v38 = vld [vmem:[%s8577_s2 + $0x360] sm:$0xff]  ;;  %v3463_v27 = vld [vmem:[%s8577_s2 + $0x498] sm:$0xff]  ;;  %v3196_v63 = vld [vmem:[%s8577_s2 + $0x3d0] sm:$0xff] }
 0x59a   :  { %v1990_v50 = vadd.f32 %v1984_v15, %v1738_v29  ;;  %v2122_v20 = vsel %vm5947_vm0, %v2110_v34, 0.0  ;;  %v2121_v45 = vsel %vm5947_vm0, %v2109_v52, 0.0  ;;  %v1900_v17 = vadd.f32 %v1894_v32, %v1648_v3  ;;  %v7109_v57 = vpop.permute.xlu0 %2466  ;;  %v5207_v47 = vld [vmem:[%s8576_s1 + $0x128] sm:$0xff]   ;;  %v3754_v15 = vld [vmem:[%s8577_s2 + $0x550] sm:$0xff] }
 0x59b   :  { %v2164_v4 = vmul.f32 %v8876_v0, %v2122_v20  ;;  %v2163_v43 = vmul.f32 %v8877_v10, %v2121_v45  ;;  %4806 = vmatpush3.bf16.msra.mxu0 %v2244_v60  ;;  %v2175_v1 = vadd.f32 %v2079_v12, %v1989_v16  ;;  %3053 = vperm.xlu0 %4912, %v3023_v38   ;;  %vm2251_vm0 = vcmask 392192   ;;  %v7135_v32 = vpop.permute.xlu1 %2317  ;;  %v4170_v11 = vld [vmem:[%s8577_s2 + $0x690] sm:$0xff]  ;;  %v3753_v7 = vld [vmem:[%s8577_s2 + $0x548] sm:$0xff]  ;;  %v4047_v45 = vld [vmem:[%s8577_s2 + $0x618] sm:$0xff] }
 0x59c   :  { %v2176_v21 = vadd.f32 %v2080_v49, %v1990_v50  ;;  %4807 = vmatprep.subr.bf16.mxu0 %v8873_v5  ;;  %3505 = vperm.xlu1 %4913, %v3463_v27   ;;  %v3899_v29 = vld [vmem:[%s8577_s2 + $0x5a8] sm:$0xff]  ;;  %v3021_v34 = vld [vmem:[%s8577_s2 + $0x350] sm:$0xff]  ;;  %v5209_v38 = vld [vmem:[%s8576_s1 + $0x160] sm:$0xff]   ;;  %vm8919_vm1 = vcmask 130048   ;;  %vm8927_vm13 = vmmov 0   ;;  %vm2664_vm14 = vcmask 1047808  }
 0x59d   :  { %v2169_v25 = vadd.f32 %v2163_v43, %v1899_v33  ;;  %v2170_v56 = vadd.f32 %v2164_v4, %v1900_v17  ;;  %v4169_v22 = vld [vmem:[%s8577_s2 + $0x688] sm:$0xff]  ;;  %v3362_v20 = vld [vmem:[%s8577_s2 + $0x410] sm:$0xff]  ;;  %v3194_v4 = vld [vmem:[%s8577_s2 + $0x3c0] sm:$0xff]  ;;  %vm2666_vm10 = vcmask 261120   ;;  %vm2982_vm15 = vcmask 31744  }
 0x59e   :  { %v7120_v44 = vpop.permute.xlu0 %2456  ;;  %v2853_v12 = vld [vmem:[%s8577_s2 + $0x308] sm:$0xff]  ;;  %v3458_v0 = vld [vmem:[%s8577_s2 + $0x470] sm:$0xff]  ;;  %v4044_v27 = vld [vmem:[%s8577_s2 + $0x600] sm:$0xff]  ;;  %vm3153_vm2 = vcmask 23552  }
 0x59f   :  { %v2181_v62 = vadd.f32 %v2175_v1, %v2169_v25  ;;  %v2182_v55 = vadd.f32 %v2176_v21, %v2170_v56  ;;  %3394 = vperm.xlu0 %4912, %v3364_v54   ;;  %v7145_v26 = vpop.permute.xlu1 %2491  ;;  %v3024_v16 = vld [vmem:[%s8577_s2 + $0x368] sm:$0xff]  ;;  %v3606_v21 = vld [vmem:[%s8577_s2 + $0x4e0] sm:$0xff]  ;;  %v5210_v1 = vld [vmem:[%s8576_s1 + $0x158] sm:$0xff]  }
 0x5a0   :  { %4099 = vperm.xlu1 %4913, %v4049_v13   ;;  %v3365_v6 = vld [vmem:[%s8577_s2 + $0x428] sm:$0xff]  ;;  %v3898_v54 = vld [vmem:[%s8577_s2 + $0x5a0] sm:$0xff]  ;;  %vm8922_vm5 = vmmov %vm8919_vm1 }
 0x5a1   :  { %v2223_v42 = vadd.f32 %v2196_v41, %v2181_v62  ;;  %v2224_v9 = vadd.f32 %v6955_v59, %v2182_v55  ;;  %v4046_v59 = vld [vmem:[%s8577_s2 + $0x610] sm:$0xff]  ;;  %v3461_v52 = vld [vmem:[%s8577_s2 + $0x488] sm:$0xff]  ;;  %v3752_v62 = vld [vmem:[%s8577_s2 + $0x540] sm:$0xff] }
 0x5a2   :  { %v7133_v53 = vpop.permute.xlu0 %2446  ;;  %v5208_v17 = vld [vmem:[%s8576_s1 + $0x168] sm:$0xff]   ;;  %v5211_v55 = vld [vmem:[%s8576_s1 + $0x150] sm:$0xff]   ;;  %v3193_v41 = vld [vmem:[%s8577_s2 + $0x3b8] sm:$0xff] }
 0x5a3   :  { %v2229_v28 = vmax.f32 %v2223_v42, 0.0  ;;  %v2230_v35 = vmax.f32 %v2224_v9, 0.0  ;;  %3490 = vperm.xlu0 %4912, %v3460_v24   ;;  %v7157_v3 = vpop.permute.xlu1 %2481  ;;  %4814 = vmatpush3.bf16.msra.mxu1 %v5208_v17  ;;  %v5212_v9 = vld [vmem:[%s8576_s1 + $0x148] sm:$0xff]   ;;  %v7262_v24 = vld [vmem:[#allocation6] sm:$0xff]  ;;  %v3456_v17 = vld [vmem:[%s8577_s2 + $0x460] sm:$0xff] }
 0x5a4   :  { %3234 = vperm.xlu1 %4913, %v3196_v63   ;;  %4815 = vmatprep.subr.bf16.mxu1 %v8873_v5  ;;  %vm8923_vm8 = vmmov %vm8919_vm1  ;;  %2670 = vst.msk [vmem:[#allocation6 + $0x38] sm:$0xff] %vm2664_vm14, %v7262_v24 }
 0x5a5   :  { %v2235_v39 = vmin.f32 %v2229_v28, 6.0  ;;  %v2236_v36 = vmin.f32 %v2230_v35, 6.0  ;;  %v3605_v28 = vld [vmem:[%s8577_s2 + $0x4d8] sm:$0xff]  ;;  %v4168_v35 = vld [vmem:[%s8577_s2 + $0x680] sm:$0xff]  ;;  %vm8924_vm6 = vmmov %vm8919_vm1  ;;  %2665 = vst.msk [vmem:[#allocation6 + $0x8] sm:$0xff] %vm2664_vm14, %v7262_v24 }
 0x5a6   :  { %v7143_v8 = vpop.permute.xlu0 %2917  ;;  %vm8925_vm12 = vmmov %vm8919_vm1  ;;  %2668 = vst.msk [vmem:[#allocation6 + $0x20] sm:$0xff] %vm2664_vm14, %v7262_v24 }
 0x5a7   :  { %v2243_v2 = vpack.c.bf16 %v2236_v36, %v2235_v39  ;;  %4084 = vperm.xlu0 %4912, %v4046_v59   ;;  %8878 = vst [vmem:[#allocation77_spill] sm:$0xff] %v7143_v8  ;;  %v7169_v51 = vpop.permute.xlu1 %2471  ;;  %4816 = vmatpush3.bf16.msra.mxu1 %v5209_v38  ;;  %v5213_v39 = vld [vmem:[%s8576_s1 + $0x140] sm:$0xff]   ;;  %v3751_v36 = vld [vmem:[%s8577_s2 + $0x538] sm:$0xff]  ;;  %vm8926_vm11 = vmmov %vm8919_vm1 }
 0x5a8   :  { %3646 = vperm.xlu1 %4913, %v3608_v14   ;;  %4817 = vmatprep.subr.bf16.mxu1 %v8873_v5  ;;  %v3897_v59 = vld [vmem:[%s8577_s2 + $0x598] sm:$0xff]  ;;  %2672 = vst.msk [vmem:[#allocation6 + $0x50] sm:$0xff] %vm2664_vm14, %v7262_v24  ;;  %2674 = vst.msk [vmem:[#allocation6 + $0x68] sm:$0xff] %vm2664_vm14, %v7262_v24 }
 0x5a9   :  { %4808 = vmatpush3.bf16.msra.mxu0 %v2243_v2  ;;  %v5214_v2 = vld [vmem:[%s8576_s1 + $0x138] sm:$0xff]   ;;  %2676 = vst.msk [vmem:[#allocation6 + $0x80] sm:$0xff] %vm2664_vm14, %v7262_v24  ;;  %2678 = vst.msk [vmem:[#allocation6 + $0x98] sm:$0xff] %vm2664_vm14, %v7262_v24 }
 0x5aa   :  { %v7155_v19 = vpop.permute.xlu0 %3088  ;;  %2680 = vst.msk [vmem:[#allocation6 + $0xb0] sm:$0xff] %vm2664_vm14, %v7262_v24  ;;  %2682 = vst.msk [vmem:[#allocation6 + $0xc8] sm:$0xff] %vm2664_vm14, %v7262_v24 }
 0x5ab   :  { %5090 = vrot.lane.b32.xlu0 %v6456_v23, %s5253_s0  ;;  %8879 = vst [vmem:[#allocation64_spill] sm:$0xff] %v7155_v19  ;;  %v7184_v60 = vpop.permute.xlu1 %2461  ;;  %4818 = vmatpush3.bf16.msra.mxu1 %v5210_v1  ;;  %2684 = vst.msk [vmem:[#allocation6 + $0xe0] sm:$0xff] %vm2664_vm14, %v7262_v24 }
 0x5ac   :  { %4810 = vmatmul.mubr.msk.bf16.vlgmr.msra.gmra.mxu0 %vm2251_vm0, %v5207_v47  ;;  %3792 = vperm.xlu1 %4913, %v3754_v15   ;;  %v5215_v15 = vld [vmem:[%s8576_s1 + $0x130] sm:$0xff]   ;;  %2686 = vst.msk [vmem:[#allocation6 + $0xf8] sm:$0xff] %vm2664_vm14, %v7262_v24  ;;  %2688 = vst.msk [vmem:[#allocation6 + $0x110] sm:$0xff] %vm2664_vm14, %v7262_v24  ;;  %vm4612_vm14 = vcmask 9216  }
 0x5ad   :  { %4819 = vmatprep.subr.bf16.mxu1 %v8873_v5 }
 0x5ae   :  { %v7167_v48 = vpop.permute.xlu0 %3429 }
 0x5af   :  { %3229 = vperm.xlu0 %4912, %v3195_v30   ;;  %8880 = vst [vmem:[#allocation78_spill] sm:$0xff] %v7167_v48  ;;  %v7194_v50 = vpop.permute.xlu1 %2451  ;;  %4820 = vmatpush3.bf16.msra.mxu1 %v5211_v55  ;;  %v4167_v30 = vld [vmem:[%s8577_s2 + $0x678] sm:$0xff]  ;;  %v3750_v55 = vld [vmem:[%s8577_s2 + $0x530] sm:$0xff] }
 0x5b0   :  { %3938 = vperm.xlu1 %4913, %v3900_v40   ;;  %4821 = vmatprep.subr.bf16.mxu1 %v8873_v5  ;;  %v2851_v40 = vld [vmem:[%s8577_s2 + $0x2f8] sm:$0xff] }
 0x5b2   :  { %v7182_v49 = vpop.permute.xlu0 %3525 }
 0x5b3   :  { %3641 = vperm.xlu0 %4912, %v3607_v37   ;;  %8881 = vst [vmem:[#allocation76_spill] sm:$0xff] %v7182_v49  ;;  %v7213_v43 = vpop.permute.xlu1 %2441  ;;  %4822 = vmatpush3.bf16.msra.mxu1 %v5212_v9 }
 0x5b4   :  { %4224 = vperm.xlu1 %4913, %v4170_v11   ;;  %4823 = vmatprep.subr.bf16.mxu1 %v7262_v24 }
 0x5b6   :  { %v7192_v33 = vpop.permute.xlu0 %3259 }
 0x5b7   :  { %3787 = vperm.xlu0 %4912, %v3753_v7   ;;  %8882 = vst [vmem:[#allocation65_spill] sm:$0xff] %v7192_v33  ;;  %v7228_v56 = vpop.permute.xlu1 %2912  ;;  %4824 = vmatpush3.bf16.msra.mxu1 %v5213_v39  ;;  %v3022_v7 = vld [vmem:[%s8577_s2 + $0x358] sm:$0xff] }
 0x5b8   :  { %5075 = vrot.lane.b32.xlu1 %v6456_v23, %s5254_s9  ;;  %8885 = vst [vmem:[#allocation8_spill] sm:$0xff] %v7228_v56  ;;  %4825 = vmatprep.subr.bf16.mxu1 %v7262_v24 }
 0x5ba   :  { %v7211_v10 = vpop.permute.xlu0 %3671 }
 0x5bb   :  { %3933 = vperm.xlu0 %4912, %v3899_v29   ;;  %8883 = vst [vmem:[#allocation33_spill] sm:$0xff] %v7211_v10  ;;  %v7250_v42 = vpop.permute.xlu1 %3083  ;;  %4826 = vmatpush3.bf16.msra.mxu1 %v5214_v2  ;;  %v2848_v29 = vld [vmem:[%s8577_s2 + $0x2e0] sm:$0xff]  ;;  %v5114_v2 = vpack.i.bf16 %v7262_v24, %v7262_v24 }
 0x5bc   :  { %5085 = vrot.lane.b32.xlu1 %v6456_v23, %s5241_s24  ;;  %8887 = vst [vmem:[#allocation32_spill] sm:$0xff] %v7250_v42  ;;  %4827 = vmatprep.subr.bf16.mxu1 %v7262_v24 }
 0x5be   :  { %v7226_v25 = vpop.permute.xlu0 %3817 }
 0x5bf   :  { %4219 = vperm.xlu0 %4912, %v4169_v22   ;;  %8884 = vst [vmem:[#allocation23_spill] sm:$0xff] %v7226_v25  ;;  %v7267_v63 = vpop.permute.xlu1 %3424  ;;  %4828 = vmatpush3.bf16.msra.mxu1 %v5215_v15  ;;  %v3363_v22 = vld [vmem:[%s8577_s2 + $0x418] sm:$0xff]  ;;  %v3895_v15 = vld [vmem:[%s8577_s2 + $0x588] sm:$0xff] }
 0x5c0   :  { %2887 = vperm.xlu1 %4913, %v2853_v12   ;;  %8889 = vst [vmem:[#allocation83_spill] sm:$0xff] %v7267_v63 }
 0x5c2   :  { %v7248_v13 = vpop.permute.xlu0 %3963 }
 0x5c3   :  { %5100 = vrot.lane.b32.xlu0 %v6456_v23, %s5252_s13  ;;  %8886 = vst [vmem:[#allocation85_spill] sm:$0xff] %v7248_v13  ;;  %v7286_v47 = vpop.permute.xlu1 %3520 }
 0x5c4   :  { %3058 = vperm.xlu1 %4913, %v3024_v16   ;;  %8891 = vst [vmem:[#allocation80_spill] sm:$0xff] %v7286_v47 }
 0x5c6   :  { %v7265_v5 = vpop.permute.xlu0 %5040 }
 0x5c7   :  { %2872 = vperm.xlu0 %4912, %v2850_v31   ;;  %8888 = vst [vmem:[#allocation9_spill] sm:$0xff] %v7265_v5  ;;  %v7302_v11 = vpop.permute.xlu1 %3254  ;;  %v3019_v31 = vld [vmem:[%s8577_s2 + $0x340] sm:$0xff] }
 0x5c8   :  { %3399 = vperm.xlu1 %4913, %v3365_v6   ;;  %8893 = vst [vmem:[#allocation36_spill] sm:$0xff] %v7302_v11  ;;  %v3459_v6 = vld [vmem:[%s8577_s2 + $0x478] sm:$0xff] }
 0x5ca   :  { %v7284_v14 = vpop.permute.xlu0 %2902 }
 0x5cb   :  { %3043 = vperm.xlu0 %4912, %v3021_v34   ;;  %8890 = vst [vmem:[#allocation20_spill] sm:$0xff] %v7284_v14  ;;  %v7317_v16 = vpop.permute.xlu1 %3666 }
 0x5cc   :  { %3495 = vperm.xlu1 %4913, %v3461_v52   ;;  %8895 = vst [vmem:[#allocation18_spill] sm:$0xff] %v7317_v16 }
 0x5ce   :  { %v7300_v37 = vpop.permute.xlu0 %3073 }
 0x5cf   :  { %3384 = vperm.xlu0 %4912, %v3362_v20   ;;  %8892 = vst [vmem:[#allocation79_spill] sm:$0xff] %v7300_v37  ;;  %v7327_v52 = vpop.permute.xlu1 %3812  ;;  %v3360_v20 = vld [vmem:[%s8577_s2 + $0x400] sm:$0xff] }
 0x5d0   :  { %4089 = vperm.xlu1 %4913, %v4047_v45   ;;  %8897 = vst [vmem:[#allocation30_spill] sm:$0xff] %v7327_v52  ;;  %v4045_v45 = vld [vmem:[%s8577_s2 + $0x608] sm:$0xff] }
 0x5d2   :  { %v7315_v12 = vpop.permute.xlu0 %3414 }
 0x5d3   :  { %3480 = vperm.xlu0 %4912, %v3458_v0   ;;  %8894 = vst [vmem:[#allocation31_spill] sm:$0xff] %v7315_v12  ;;  %v3192_v0 = vld [vmem:[%s8577_s2 + $0x3b0] sm:$0xff]  ;;  %v7343_v38 = vpop.permute.xlu1 %3958 }
 0x5d4   :  { %3224 = vperm.xlu1 %4913, %v3194_v4   ;;  %8899 = vst [vmem:[#allocation81_spill] sm:$0xff] %v7343_v38 }
 0x5d6   :  { %v7325_v34 = vpop.permute.xlu0 %3510 }
 0x5d7   :  { %4074 = vperm.xlu0 %4912, %v4044_v27   ;;  %8896 = vst [vmem:[#allocation40_spill] sm:$0xff] %v7325_v34  ;;  %v4042_v27 = vld [vmem:[%s8577_s2 + $0x5f0] sm:$0xff] }
 0x5d8   :  { %3636 = vperm.xlu1 %4913, %v3606_v21   ;;  %v3604_v21 = vld [vmem:[%s8577_s2 + $0x4d0] sm:$0xff] }
 0x5da   :  { %v7341_v4 = vpop.permute.xlu0 %4104 }
 0x5db   :  { %5110 = vrot.lane.b32.xlu0 %v6456_v23, %s5253_s0  ;;  %8898 = vst [vmem:[#allocation22_spill] sm:$0xff] %v7341_v4 }
 0x5dc   :  { %3782 = vperm.xlu1 %4913, %v3752_v62   ;;  %v7353_v62 = vpop.permute.xlu1 %5035 }
 0x5dd   :  { %8901 = vst [vmem:[#allocation88_spill] sm:$0xff] %v7353_v62 }
 0x5de   :  { %v7351_v1 = vpop.permute.xlu0 %5050 }
 0x5df   :  { %3219 = vperm.xlu0 %4912, %v3193_v41   ;;  %8900 = vst [vmem:[#allocation39_spill] sm:$0xff] %v7351_v1  ;;  %v3191_v41 = vld [vmem:[%s8577_s2 + $0x3a8] sm:$0xff] }
 0x5e0   :  { %3928 = vperm.xlu1 %4913, %v3898_v54   ;;  %v3896_v54 = vld [vmem:[%s8577_s2 + $0x590] sm:$0xff] }
 0x5e2   :  { %v7366_v9 = vpop.permute.xlu0 %3249 }
 0x5e3   :  { %3631 = vperm.xlu0 %4912, %v3605_v28   ;;  %8902 = vst [vmem:[#allocation19_spill] sm:$0xff] %v7366_v9  ;;  %v7368_v28 = vpop.permute.xlu1 %5045 }
 0x5e4   :  { %4214 = vperm.xlu1 %4913, %v4168_v35   ;;  %8903 = vst [vmem:[#allocation27_spill] sm:$0xff] %v7368_v28  ;;  %v3603_v35 = vld [vmem:[%s8577_s2 + $0x4c8] sm:$0xff] }
 0x5e6   :  { %v7376_v39 = vpop.permute.xlu0 %3661 }
 0x5e7   :  { %3777 = vperm.xlu0 %4912, %v3751_v36   ;;  %8904 = vst [vmem:[#allocation38_spill] sm:$0xff] %v7376_v39  ;;  %v7378_v36 = vpop.permute.xlu1 %2907 }
 0x5e8   :  { %5095 = vrot.lane.b32.xlu1 %v6456_v23, %s5254_s9  ;;  %8905 = vst [vmem:[#allocation35_spill] sm:$0xff] %v7378_v36 }
 0x5eb   :  { %3923 = vperm.xlu0 %4912, %v3897_v59   ;;  %v3749_v59 = vld [vmem:[%s8577_s2 + $0x528] sm:$0xff] }
 0x5ec   :  { %5105 = vrot.lane.b32.xlu1 %v6456_v23, %s5241_s24 }
 0x5ef   :  { %4209 = vperm.xlu0 %4912, %v4167_v30   ;;  %v7389_v30 = vpop.permute.xlu0 %3807 }
 0x5f0   :  { %2877 = vperm.xlu1 %4913, %v2851_v40   ;;  %8906 = vst [vmem:[#allocation10_spill] sm:$0xff] %v7389_v30  ;;  %v7391_v40 = vpop.permute.xlu1 %3078 }
 0x5f1   :  { %8907 = vst [vmem:[#allocation21_spill] sm:$0xff] %v7391_v40 }
 0x5f3   :  { %5120 = vrot.lane.b32.xlu0 %v6456_v23, %s5252_s13 }
 0x5f4   :  { %3048 = vperm.xlu1 %4913, %v3022_v7   ;;  %v4165_v7 = vld [vmem:[%s8577_s2 + $0x668] sm:$0xff] }
 0x5f7   :  { %2862 = vperm.xlu0 %4912, %v2848_v29   ;;  %v2849_v29 = vld [vmem:[%s8577_s2 + $0x2e8] sm:$0xff] }
 0x5f8   :  { %3389 = vperm.xlu1 %4913, %v3363_v22   ;;  %v7400_v22 = vpop.permute.xlu0 %3953 }
 0x5f9   :  { %8908 = vst [vmem:[#allocation82_spill] sm:$0xff] %v7400_v22 }
 0x5fb   :  { %3033 = vperm.xlu0 %4912, %v3019_v31   ;;  %v7402_v31 = vpop.permute.xlu1 %3419 }
 0x5fc   :  { %3485 = vperm.xlu1 %4913, %v3459_v6   ;;  %8909 = vst [vmem:[#allocation45_spill] sm:$0xff] %v7402_v31  ;;  %v3020_v6 = vld [vmem:[%s8577_s2 + $0x348] sm:$0xff] }
 0x5ff   :  { %3374 = vperm.xlu0 %4912, %v3360_v20   ;;  %v4040_v20 = vld [vmem:[%s8577_s2 + $0x5e0] sm:$0xff] }
 0x600   :  { %4079 = vperm.xlu1 %4913, %v4045_v45   ;;  %v3361_v45 = vld [vmem:[%s8577_s2 + $0x408] sm:$0xff] }
 0x603   :  { %3470 = vperm.xlu0 %4912, %v3456_v17   ;;  %v7414_v17 = vpop.permute.xlu0 %5060 }
 0x604   :  { %3214 = vperm.xlu1 %4913, %v3192_v0   ;;  %8910 = vst [vmem:[#allocation26_spill] sm:$0xff] %v7414_v17  ;;  %v7416_v0 = vpop.permute.xlu1 %3515 }
 0x605   :  { %8911 = vst [vmem:[#allocation29_spill] sm:$0xff] %v7416_v0 }
 0x607   :  { %4064 = vperm.xlu0 %4912, %v4042_v27   ;;  %v3457_v27 = vld [vmem:[%s8577_s2 + $0x468] sm:$0xff] }
 0x608   :  { %3626 = vperm.xlu1 %4913, %v3604_v21   ;;  %v7421_v21 = vpop.permute.xlu0 %2892 }
 0x60b   :  { %5130 = vrot.lane.b32.xlu0 %v6456_v23, %s5253_s0  ;;  %v4166_v23 = vld [vmem:[%s8577_s2 + $0x670] sm:$0xff] }
 0x60c   :  { %3772 = vperm.xlu1 %4913, %v3750_v55   ;;  %v7423_v55 = vpop.permute.xlu1 %4109 }
 0x60d   :  { %8912 = vst [vmem:[#allocation28_spill] sm:$0xff] %v7423_v55 }
 0x60f   :  { %3209 = vperm.xlu0 %4912, %v3191_v41   ;;  %v4043_v41 = vld [vmem:[%s8577_s2 + $0x5f8] sm:$0xff] }
 0x610   :  { %3918 = vperm.xlu1 %4913, %v3896_v54   ;;  %v3190_v54 = vld [vmem:[%s8577_s2 + $0x3a0] sm:$0xff] }
 0x613   :  { %3621 = vperm.xlu0 %4912, %v3603_v35   ;;  %v7432_v35 = vpop.permute.xlu1 %3244 }
 0x614   :  { %4204 = vperm.xlu1 %4913, %v4166_v23   ;;  %8913 = vst [vmem:[#allocation84_spill] sm:$0xff] %v7432_v35  ;;  %v3602_v23 = vld [vmem:[%s8577_s2 + $0x4c0] sm:$0xff] }
 0x617   :  { %3767 = vperm.xlu0 %4912, %v3749_v59   ;;  %v7437_v59 = vpop.permute.xlu1 %3656 }
 0x618   :  { %5115 = vrot.lane.b32.xlu1 %v5114_v2, %s5254_s9  ;;  %8914 = vst [vmem:[#allocation24_spill] sm:$0xff] %v7437_v59 }
 0x61b   :  { %3913 = vperm.xlu0 %4912, %v3895_v15   ;;  %v3748_v15 = vld [vmem:[%s8577_s2 + $0x520] sm:$0xff] }
 0x61c   :  { %5125 = vrot.lane.b32.xlu1 %v5114_v2, %s5241_s24 }
 0x61f   :  { %4199 = vperm.xlu0 %4912, %v4165_v7   ;;  %v3894_v7 = vld [vmem:[%s8577_s2 + $0x580] sm:$0xff] }
 0x620   :  { %2867 = vperm.xlu1 %4913, %v2849_v29   ;;  %v7445_v29 = vpop.permute.xlu1 %3802 }
 0x621   :  { %8915 = vst [vmem:[#allocation25_spill] sm:$0xff] %v7445_v29 }
 0x623   :  { %5140 = vrot.lane.b32.xlu0 %v5114_v2, %s5252_s13 }
 0x624   :  { %3038 = vperm.xlu1 %4913, %v3020_v6   ;;  %v4164_v6 = vld [vmem:[%s8577_s2 + $0x660] sm:$0xff] }
 0x627   :  { %4054 = vperm.xlu0 %4912, %v4040_v20   ;;  %v7450_v20 = vpop.permute.xlu1 %3948 }
 0x628   :  { %3379 = vperm.xlu1 %4913, %v3361_v45   ;;  %8916 = vst [vmem:[#allocation12_spill] sm:$0xff] %v7450_v20 }
 0x62b   :  { %5150 = vrot.lane.b32.xlu0 %v5114_v2, %s5253_s0  ;;  %v7453_v45 = vpop.permute.xlu1 %5055 }
 0x62c   :  { %3475 = vperm.xlu1 %4913, %v3457_v27   ;;  %8917 = vst [vmem:[#allocation86_spill] sm:$0xff] %v7453_v45  ;;  %v4041_v27 = vld [vmem:[%s8577_s2 + $0x5e8] sm:$0xff] }
 0x630   :  { %4069 = vperm.xlu1 %4913, %v4043_v41   ;;  %v7459_v41 = vpop.permute.xlu1 %5065 }
 0x631   :  { %8918 = vst [vmem:[#allocation13_spill] sm:$0xff] %v7459_v41 }
 0x634   :  { %3204 = vperm.xlu1 %4913, %v3190_v54  }
 0x638   :  { %3616 = vperm.xlu1 %4913, %v3602_v23  }
 0x63c   :  { %3762 = vperm.xlu1 %4913, %v3748_v15  }
 0x640   :  { %3908 = vperm.xlu1 %4913, %v3894_v7  }
 0x644   :  { %4194 = vperm.xlu1 %4913, %v4164_v6   ;;  %v5216_v6 = vld [vmem:[%s8576_s1 + $0x170] sm:$0xff]  }
 0x645   :  { %4835 = vmatprep.mubr.msk.bf16.mxu0 %vm8919_vm1, %v5216_v6  ;;  %vm2811_vm1 = vcmask 39936  }
 0x648   :  { %5135 = vrot.lane.b32.xlu1 %v5114_v2, %s5254_s9 }
 0x64c   :  { %5145 = vrot.lane.b32.xlu1 %v5114_v2, %s5241_s24 }
 0x650   :  { %4059 = vperm.xlu1 %4913, %v4041_v27  }
 0x66c   :  { %v2289_v54 = vpop.f32.mrf.mxu0 }
 0x66e   :  { %v4811_v23 = vpop.f32.mrf.mxu0 }
 0x670   :  { %v2292_v15 = vpop.f32.mrf.mxu0 }
 0x671   :  { %v2296_v7 = vpack.c.bf16 %v2292_v15, %v2289_v54  ;;  %v5217_v54 = vld [vmem:[%s8576_s1 + $0x178] sm:$0xff]   ;;  %v7496_v15 = vpop.permute.xlu0 %3063 }
 0x672   :  { %v4812_v22 = vpop.f32.mrf.mxu0 }
 0x673   :  { %4830 = vmatmul.mubr.bf16.vlgmr.msra.gmra.mxu1 %v2296_v7  ;;  %v7498_v7 = vpop.permute.xlu1 %2897 }
 0x674   :  { %8928 = vst [vmem:[#allocation15_spill] sm:$0xff] %v7498_v7 }
 0x675   :  { %v7500_v6 = vpop.permute.xlu0 %3404 }
 0x733   :  { %v2407_v2 = vpop.f32.mrf.mxu1 }
 0x734   :  { %v7466_v39 = vadd.f32 %v2407_v2, %v7135_v32  ;;  %v5220_v32 = vld [vmem:[%s8576_s1 + $0x190] sm:$0xff]   ;;  %v7502_v2 = vpop.permute.xlu1 %3068 }
 0x735   :  { %v4831_v9 = vpop.f32.mrf.mxu1  ;;  %8929 = vst [vmem:[#allocation17_spill] sm:$0xff] %v7502_v2 }
 0x736   :  { %8920 = vst [vmem:[#allocation87_spill] sm:$0xff] %v7466_v39  ;;  %v5218_v9 = vld [vmem:[%s8576_s1 + $0x180] sm:$0xff]  }
 0x737   :  { %v2410_v30 = vpop.f32.mrf.mxu1 }
 0x738   :  { %v7469_v27 = vadd.f32 %v2410_v30, %v6997_v46  ;;  %v5219_v46 = vld [vmem:[%s8576_s1 + $0x188] sm:$0xff]   ;;  %v5221_v30 = vld [vmem:[%s8576_s1 + $0x198] sm:$0xff]  }
 0x739   :  { %v4832_v23 = vpop.f32.mrf.mxu1 }
 0x73a   :  { %8921 = vst [vmem:[#allocation11_spill] sm:$0xff] %v7469_v27  ;;  %v2426_v22 = vpack.c.bf16 %v7469_v27, %v7466_v39  ;;  %v7504_v23 = vpop.permute.xlu0 %3500 }
 0x73c   :  { %4833 = vmatprep.subr.bf16.mxu0 %v2426_v22 }
 0x73d   :  { %4834 = vmatpush3.bf16.msra.mxu0 %v2426_v22  ;;  %v7506_v22 = vpop.permute.xlu1 %3409 }
 0x73e   :  { %4847 = vmatprep.subr.bf16.mxu0 %v7262_v24  ;;  %8930 = vst [vmem:[#allocation44_spill] sm:$0xff] %v7506_v22 }
 0x740   :  { %4836 = vmatmul.mubr.msk.bf16.vlgmr.msra.gmra.mxu0 %vm8922_vm5, %v5217_v54  ;;  %v7508_v54 = vpop.permute.xlu0 %4094 }
 0x741   :  { %4839 = vmatprep.mubr.msk.bf16.mxu0 %vm8923_vm8, %v5218_v9  ;;  %8931 = vst [vmem:[#allocation34_spill] sm:$0xff] %v7508_v54  ;;  %v7510_v9 = vpop.permute.xlu1 %3505 }
 0x742   :  { %8932 = vst [vmem:[#allocation14_spill] sm:$0xff] %v7510_v9 }
 0x748   :  { %4840 = vmatmul.mubr.msk.bf16.gmra.mxu0 %vm8924_vm6, %v5219_v46  ;;  %v7512_v46 = vpop.permute.xlu0 %5070 }
 0x749   :  { %4843 = vmatprep.mubr.msk.bf16.mxu0 %vm8925_vm12, %v5220_v32  ;;  %8933 = vst [vmem:[#allocation16_spill] sm:$0xff] %v7512_v46  ;;  %v7514_v32 = vpop.permute.xlu1 %4099 }
 0x74a   :  { %8934 = vst [vmem:[#allocation41_spill] sm:$0xff] %v7514_v32 }
 0x74d   :  { %v7518_v27 = vpop.permute.xlu1 %3234 }
 0x750   :  { %4844 = vmatmul.mubr.msk.bf16.gmra.mxu0 %vm8926_vm11, %v5221_v30  ;;  %v7516_v30 = vpop.permute.xlu0 %3239 }
 0x751   :  { %4859 = vmatprep.mubr.msk.bf16.mxu0 %vm8927_vm13, %v7262_v24  ;;  %v7522_v31 = vpop.permute.xlu1 %3646  ;;  %vm9139_vm13 = vmmov %vm8926_vm11 }
 0x754   :  { %v7520_v39 = vpop.permute.xlu0 %3651 }
 0x755   :  { %8935 = vst [vmem:[#allocation43_spill] sm:$0xff] %v7520_v39  ;;  %v7538_v36 = vpop.permute.xlu1 %3792 }
 0x758   :  { %v7536_v32 = vpop.permute.xlu0 %3797 }
 0x759   :  { %8936 = vst [vmem:[#allocation37_spill] sm:$0xff] %v7536_v32  ;;  %v7542_v54 = vpop.permute.xlu1 %3938 }
 0x75c   :  { %v7540_v40 = vpop.permute.xlu0 %3943 }
 0x75d   :  { %8937 = vst [vmem:[#allocation42_spill] sm:$0xff] %v7540_v40  ;;  %v7546_v35 = vpop.permute.xlu1 %4224 }
 0x75e   :  { %8939 = vst [vmem:[#allocation54_spill] sm:$0xff] %v7546_v35 }
 0x760   :  { %v7544_v0 = vpop.permute.xlu0 %4229 }
 0x761   :  { %8938 = vst [vmem:[#allocation51_spill] sm:$0xff] %v7544_v0  ;;  %v7550_v29 = vpop.permute.xlu1 %5075 }
 0x764   :  { %v7548_v55 = vpop.permute.xlu0 %5080 }
 0x765   :  { %v7554_v25 = vpop.permute.xlu1 %5085 }
 0x768   :  { %v7552_v59 = vpop.permute.xlu0 %2882 }
 0x769   :  { %v7558_v20 = vpop.permute.xlu1 %2887 }
 0x76a   :  { %8940 = vst [vmem:[#allocation71_spill] sm:$0xff] %v7558_v20 }
 0x76c   :  { %v7556_v24 = vpop.permute.xlu0 %3053 }
 0x76d   :  { %v7562_v48 = vpop.permute.xlu1 %3058 }
 0x76e   :  { %8941 = vst [vmem:[#allocation62_spill] sm:$0xff] %v7562_v48 }
 0x770   :  { %v7560_v33 = vpop.permute.xlu0 %3394 }
 0x771   :  { %v7566_v0 = vpop.permute.xlu1 %3399 }
 0x772   :  { %8943 = vst [vmem:[#allocation57_spill] sm:$0xff] %v7566_v0 }
 0x774   :  { %v7564_v13 = vpop.permute.xlu0 %3490 }
 0x775   :  { %8942 = vst [vmem:[#allocation66_spill] sm:$0xff] %v7564_v13  ;;  %v7570_v8 = vpop.permute.xlu1 %3495 }
 0x776   :  { %8944 = vst [vmem:[#allocation67_spill] sm:$0xff] %v7570_v8 }
 0x778   :  { %v7568_v35 = vpop.permute.xlu0 %4084 }
 0x779   :  { %v7574_v19 = vpop.permute.xlu1 %4089 }
 0x77a   :  { %8945 = vst [vmem:[#allocation69_spill] sm:$0xff] %v7574_v19 }
 0x77c   :  { %v7572_v10 = vpop.permute.xlu0 %5090 }
 0x77d   :  { %v7578_v12 = vpop.permute.xlu1 %3224 }
 0x780   :  { %v7576_v37 = vpop.permute.xlu0 %3229 }
 0x781   :  { %8946 = vst [vmem:[#allocation59_spill] sm:$0xff] %v7576_v37  ;;  %v7582_v49 = vpop.permute.xlu1 %3636 }
 0x784   :  { %v7580_v14 = vpop.permute.xlu0 %3641 }
 0x785   :  { %8947 = vst [vmem:[#allocation73_spill] sm:$0xff] %v7580_v14  ;;  %v7586_v34 = vpop.permute.xlu1 %3782 }
 0x786   :  { %8949 = vst [vmem:[#allocation70_spill] sm:$0xff] %v7586_v34 }
 0x788   :  { %v7584_v4 = vpop.permute.xlu0 %3787 }
 0x789   :  { %8948 = vst [vmem:[#allocation75_spill] sm:$0xff] %v7584_v4  ;;  %v7590_v41 = vpop.permute.xlu1 %3928 }
 0x78a   :  { %8951 = vst [vmem:[#allocation68_spill] sm:$0xff] %v7590_v41 }
 0x78c   :  { %v7588_v11 = vpop.permute.xlu0 %3933 }
 0x78d   :  { %8950 = vst [vmem:[#allocation72_spill] sm:$0xff] %v7588_v11  ;;  %v7594_v16 = vpop.permute.xlu1 %4214 }
 0x78e   :  { %8953 = vst [vmem:[#allocation47_spill] sm:$0xff] %v7594_v16 }
 0x790   :  { %v7592_v52 = vpop.permute.xlu0 %4219 }
 0x791   :  { %8952 = vst [vmem:[#allocation61_spill] sm:$0xff] %v7592_v52  ;;  %v7598_v45 = vpop.permute.xlu1 %5095 }
 0x794   :  { %v7596_v56 = vpop.permute.xlu0 %5100 }
 0x795   :  { %v7602_v38 = vpop.permute.xlu1 %5105 }
 0x798   :  { %v7600_v46 = vpop.permute.xlu0 %2872 }
 0x799   :  { %8954 = vst [vmem:[#allocation46_spill] sm:$0xff] %v7600_v46  ;;  %v7606_v63 = vpop.permute.xlu1 %2877 }
 0x79c   :  { %v7604_v47 = vpop.permute.xlu0 %3043 }
 0x79d   :  { %8955 = vst [vmem:[#allocation48_spill] sm:$0xff] %v7604_v47  ;;  %v7610_v42 = vpop.permute.xlu1 %3048 }
 0x7a0   :  { %v7608_v17 = vpop.permute.xlu0 %3384 }
 0x7a1   :  { %8956 = vst [vmem:[#allocation52_spill] sm:$0xff] %v7608_v17  ;;  %v7614_v52 = vpop.permute.xlu1 %3389 }
 0x7a4   :  { %v7612_v1 = vpop.permute.xlu0 %3480 }
 0x7a5   :  { %8957 = vst [vmem:[#allocation49_spill] sm:$0xff] %v7612_v1  ;;  %v7618_v62 = vpop.permute.xlu1 %3485 }
 0x7a8   :  { %v7616_v16 = vpop.permute.xlu0 %4074 }
 0x7a9   :  { %v7624_v17 = vpop.permute.xlu1 %4079 }
 0x7aa   :  { %8958 = vst [vmem:[#allocation58_spill] sm:$0xff] %v7624_v17 }
 0x7ac   :  { %v7622_v4 = vpop.permute.xlu0 %5110 }
 0x7b0   :  { %v7631_v17 = vpop.permute.xlu0 %3219 }
 0x800   :  { %v4837_v28 = vpop.f32.mrf.mxu0 }
 0x801   :  { %v2590_v46 = vadd.f32 %v4837_v28, %v7194_v50 }
 0x802   :  { %v2581_v5 = vpop.f32.mrf.mxu0 }
 0x803   :  { %v2630_v11 = vmax.f32 %v2590_v46, 0.0  ;;  %v2582_v47 = vadd.f32 %v2581_v5, %v7213_v43 }
 0x804   :  { %v4838_v8 = vpop.f32.mrf.mxu0 }
 0x805   :  { %v2642_v0 = vmin.f32 %v2630_v11, 6.0  ;;  %v2628_v1 = vmax.f32 %v2582_v47, 0.0  ;;  %v2593_v20 = vadd.f32 %v4838_v8, %v7120_v44  ;;  %v7633_v47 = vpop.permute.xlu1 %3214 }
 0x806   :  { %v2584_v48 = vpop.f32.mrf.mxu0  ;;  %8959 = vst [vmem:[#allocation50_spill] sm:$0xff] %v7633_v47 }
 0x807   :  { %2692 = vst.msk [vmem:[#allocation6 + $0x38] sm:$0xff] %vm2666_vm10, %v2642_v0  ;;  %v2640_v14 = vmin.f32 %v2628_v1, 6.0  ;;  %v2631_v37 = vmax.f32 %v2593_v20, 0.0  ;;  %v2585_v50 = vadd.f32 %v2584_v48, %v7133_v53 }
 0x808   :  { %v4841_v28 = vpop.f32.mrf.mxu0 }
 0x809   :  { %2690 = vst.msk [vmem:[#allocation6 + $0x8] sm:$0xff] %vm2666_vm10, %v2640_v14  ;;  %v2643_v43 = vmin.f32 %v2631_v37, 6.0  ;;  %v2629_v5 = vmax.f32 %v2585_v50, 0.0  ;;  %v2606_v46 = vadd.f32 %v4841_v28, %v7169_v51  ;;  %v7645_v28 = vpop.permute.xlu1 %3626 }
 0x80a   :  { %v2597_v19 = vpop.f32.mrf.mxu0  ;;  %8960 = vst [vmem:[#allocation56_spill] sm:$0xff] %v7645_v28 }
 0x80b   :  { %2693 = vst.msk [vmem:[#allocation6 + $0x50] sm:$0xff] %vm2666_vm10, %v2643_v43  ;;  %v2641_v44 = vmin.f32 %v2629_v5, 6.0  ;;  %v2634_v8 = vmax.f32 %v2606_v46, 0.0  ;;  %v2598_v11 = vadd.f32 %v2597_v19, %v7184_v60  ;;  %v7643_v60 = vpop.permute.xlu0 %3631 }
 0x80c   :  { %v4842_v1 = vpop.f32.mrf.mxu0 }
 0x80d   :  { %2691 = vst.msk [vmem:[#allocation6 + $0x20] sm:$0xff] %vm2666_vm10, %v2641_v44  ;;  %v2646_v53 = vmin.f32 %v2634_v8, 6.0  ;;  %v2632_v48 = vmax.f32 %v2598_v11, 0.0  ;;  %v2609_v14 = vadd.f32 %v4842_v1, %v7094_v61 }
 0x80e   :  { %v2600_v37 = vpop.f32.mrf.mxu0  ;;  %v2718_v51 = vld [vmem:[#allocation6 + $0x38] sm:$0xff] }
 0x80f   :  { %2696 = vst.msk [vmem:[#allocation6 + $0x98] sm:$0xff] %vm2666_vm10, %v2646_v53  ;;  %v2644_v0 = vmin.f32 %v2632_v48, 6.0  ;;  %v2635_v20 = vmax.f32 %v2609_v14, 0.0  ;;  %v2601_v50 = vadd.f32 %v2600_v37, %v7109_v57  ;;  %2944 = vrot.lane.b32.xlu1 %v2718_v51, %s5252_s13  ;;  %2773 = vrot.lane.b32.xlu0 %v2718_v51, %s5254_s9  ;;  %v7657_v37 = vpop.permute.xlu1 %3772 }
 0x810   :  { %v4845_v19 = vpop.f32.mrf.mxu0  ;;  %8961 = vst [vmem:[#allocation89_spill] sm:$0xff] %v7657_v37 }
 0x811   :  { %2694 = vst.msk [vmem:[#allocation6 + $0x68] sm:$0xff] %vm2666_vm10, %v2644_v0  ;;  %v2647_v61 = vmin.f32 %v2635_v20, 6.0  ;;  %v2633_v43 = vmax.f32 %v2601_v50, 0.0  ;;  %v2622_v5 = vadd.f32 %v4845_v19, %v7145_v26  ;;  %v7655_v26 = vpop.permute.xlu0 %3777  ;;  %v7664_v19 = vld [vmem:[#allocation6 + $0x8] sm:$0xff] }
 0x812   :  { %v2613_v46 = vpop.f32.mrf.mxu0 }
 0x813   :  { %2697 = vst.msk [vmem:[#allocation6 + $0xb0] sm:$0xff] %vm2666_vm10, %v2647_v61  ;;  %v2645_v44 = vmin.f32 %v2633_v43, 6.0  ;;  %v2638_v57 = vmax.f32 %v2622_v5, 0.0  ;;  %v2614_v8 = vadd.f32 %v2613_v46, %v7157_v3  ;;  %3115 = vrot.lane.b32.xlu1 %v2718_v51, %s5253_s0  ;;  %3286 = vrot.lane.b32.xlu0 %v2718_v51, %s5241_s24  ;;  %v7672_v43 = vpop.permute.xlu1 %3918  ;;  %v7678_v5 = vld [vmem:[#allocation6 + $0x50] sm:$0xff] }
 0x814   :  { %v4846_v11 = vpop.f32.mrf.mxu0  ;;  %8962 = vst [vmem:[#allocation55_spill] sm:$0xff] %v7672_v43 }
 0x815   :  { %2695 = vst.msk [vmem:[#allocation6 + $0x80] sm:$0xff] %vm2666_vm10, %v2645_v44  ;;  %v2650_v1 = vmin.f32 %v2638_v57, 6.0  ;;  %v2636_v53 = vmax.f32 %v2614_v8, 0.0  ;;  %v2625_v48 = vadd.f32 %v4846_v11, %v7046_v58 }
 0x816   :  { %v2616_v14 = vpop.f32.mrf.mxu0 }
 0x817   :  { %2700 = vst.msk [vmem:[#allocation6 + $0xf8] sm:$0xff] %vm2666_vm10, %v2650_v1  ;;  %v2648_v0 = vmin.f32 %v2636_v53, 6.0  ;;  %v2639_v3 = vmax.f32 %v2625_v48, 0.0  ;;  %v2617_v20 = vadd.f32 %v2616_v14, %v7075_v18  ;;  %3558 = vrot.lane.b32.xlu1 %v2718_v51, %s5236_s20  ;;  %3996 = vrot.lane.b32.xlu0 %v2718_v51, %s5255_s23  ;;  %v7670_v18 = vpop.permute.xlu0 %3923  ;;  %v7682_v44 = vpop.permute.xlu1 %4204  ;;  %v7716_v48 = vld [vmem:[#allocation6 + $0x20] sm:$0xff] }
 0x818   :  { %8964 = vst [vmem:[#allocation90_spill] sm:$0xff] %v7682_v44 }
 0x819   :  { %2698 = vst.msk [vmem:[#allocation6 + $0xc8] sm:$0xff] %vm2666_vm10, %v2648_v0  ;;  %v2651_v50 = vmin.f32 %v2639_v3, 6.0  ;;  %v2637_v58 = vmax.f32 %v2617_v20, 0.0 }
 0x81a   :  { %v7782_v28 = vld [vmem:[#allocation6 + $0xb0] sm:$0xff] }
 0x81b   :  { %2701 = vst.msk [vmem:[#allocation6 + $0x110] sm:$0xff] %vm2666_vm10, %v2651_v50  ;;  %v2649_v61 = vmin.f32 %v2637_v58, 6.0  ;;  %3704 = vrot.lane.b32.xlu1 %v2718_v51, %s5256_s25  ;;  %2765 = vrot.lane.b32.xlu0 %v7664_v19, %s5254_s9  ;;  %v7680_v46 = vpop.permute.xlu0 %4209  ;;  %v7694_v57 = vpop.permute.xlu1 %5115  ;;  %v7738_v50 = vld [vmem:[#allocation6 + $0x98] sm:$0xff]  ;;  %8975 = vst [vmem:[#allocation98_spill] sm:$0xff] %v7782_v28 }
 0x81c   :  { %8963 = vst [vmem:[#allocation53_spill] sm:$0xff] %v7680_v46  ;;  %v7816_v44 = vld [vmem:[#allocation6 + $0x80] sm:$0xff] }
 0x81d   :  { %2699 = vst.msk [vmem:[#allocation6 + $0xe0] sm:$0xff] %vm2666_vm10, %v2649_v61  ;;  %8982 = vst [vmem:[#allocation105_spill] sm:$0xff] %v7816_v44 }
 0x81e   :  { %v7854_v7 = vld [vmem:[#allocation6 + $0xf8] sm:$0xff] }
 0x81f   :  { %3850 = vrot.lane.b32.xlu1 %v2718_v51, %s5257_s26  ;;  %3278 = vrot.lane.b32.xlu0 %v7664_v19, %s5241_s24  ;;  %v7692_v51 = vpop.permute.xlu0 %5120  ;;  %v7702_v11 = vpop.permute.xlu1 %5125  ;;  %8988 = vst [vmem:[#allocation111_spill] sm:$0xff] %v7854_v7 }
 0x820   :  { %8965 = vst [vmem:[#allocation92_spill] sm:$0xff] %v7692_v51 }
 0x822   :  { %v7928_v39 = vld [vmem:[#allocation6 + $0x110] sm:$0xff] }
 0x823   :  { %2936 = vrot.lane.b32.xlu1 %v7664_v19, %s5252_s13  ;;  %2948 = vrot.lane.b32.xlu0 %v7678_v5, %s5252_s13  ;;  %v7700_v8 = vpop.permute.xlu0 %2862  ;;  %v7714_v53 = vpop.permute.xlu1 %2867 }
 0x824   :  { %8966 = vst [vmem:[#allocation91_spill] sm:$0xff] %v7700_v8 }
 0x827   :  { %3107 = vrot.lane.b32.xlu1 %v7664_v19, %s5253_s0  ;;  %3119 = vrot.lane.b32.xlu0 %v7678_v5, %s5253_s0  ;;  %v7712_v1 = vpop.permute.xlu0 %3033  ;;  %v7724_v0 = vpop.permute.xlu1 %3038 }
 0x828   :  { %8967 = vst [vmem:[#allocation74_spill] sm:$0xff] %v7712_v1  ;;  %8969 = vst [vmem:[#allocation60_spill] sm:$0xff] %v7724_v0 }
 0x82b   :  { %3554 = vrot.lane.b32.xlu1 %v7664_v19, %s5236_s20  ;;  %3560 = vrot.lane.b32.xlu0 %v7678_v5, %s5236_s20  ;;  %v7722_v14 = vpop.permute.xlu0 %3374  ;;  %v7736_v20 = vpop.permute.xlu1 %3379 }
 0x82c   :  { %8968 = vst [vmem:[#allocation63_spill] sm:$0xff] %v7722_v14  ;;  %v7760_v14 = vld [vmem:[#allocation6 + $0x68] sm:$0xff] }
 0x82d   :  { %8974 = vst [vmem:[#allocation97_spill] sm:$0xff] %v7760_v14 }
 0x82f   :  { %2777 = vrot.lane.b32.xlu1 %v7678_v5, %s5254_s9  ;;  %3706 = vrot.lane.b32.xlu0 %v7678_v5, %s5256_s25  ;;  %v7734_v3 = vpop.permute.xlu0 %3470  ;;  %v7746_v61 = vpop.permute.xlu1 %3475 }
 0x830   :  { %8970 = vst [vmem:[#allocation93_spill] sm:$0xff] %v7734_v3  ;;  %8972 = vst [vmem:[#allocation95_spill] sm:$0xff] %v7746_v61 }
 0x833   :  { %3290 = vrot.lane.b32.xlu1 %v7678_v5, %s5241_s24  ;;  %3852 = vrot.lane.b32.xlu0 %v7678_v5, %s5257_s26  ;;  %v7744_v58 = vpop.permute.xlu0 %4064  ;;  %v7758_v3 = vpop.permute.xlu1 %4069 }
 0x834   :  { %8971 = vst [vmem:[#allocation94_spill] sm:$0xff] %v7744_v58 }
 0x837   :  { %3998 = vrot.lane.b32.xlu1 %v7678_v5, %s5255_s23  ;;  %2940 = vrot.lane.b32.xlu0 %v7716_v48, %s5252_s13  ;;  %v7756_v8 = vpop.permute.xlu0 %5130  ;;  %v7768_v58 = vpop.permute.xlu1 %3204 }
 0x838   :  { %8973 = vst [vmem:[#allocation96_spill] sm:$0xff] %v7756_v8 }
 0x83b   :  { %2769 = vrot.lane.b32.xlu1 %v7716_v48, %s5254_s9  ;;  %3111 = vrot.lane.b32.xlu0 %v7716_v48, %s5253_s0  ;;  %v7766_v1 = vpop.permute.xlu0 %3209  ;;  %v7780_v37 = vpop.permute.xlu1 %3616 }
 0x83f   :  { %3282 = vrot.lane.b32.xlu1 %v7716_v48, %s5241_s24  ;;  %3556 = vrot.lane.b32.xlu0 %v7716_v48, %s5236_s20  ;;  %v7778_v47 = vpop.permute.xlu0 %3621  ;;  %v7790_v61 = vpop.permute.xlu1 %3762 }
 0x840   :  { %8977 = vst [vmem:[#allocation100_spill] sm:$0xff] %v7790_v61 }
 0x843   :  { %2960 = vrot.lane.b32.xlu1 %v7738_v50, %s5252_s13  ;;  %2789 = vrot.lane.b32.xlu0 %v7738_v50, %s5254_s9  ;;  %v7788_v43 = vpop.permute.xlu0 %3767  ;;  %v7802_v46 = vpop.permute.xlu1 %3908 }
 0x844   :  { %8976 = vst [vmem:[#allocation99_spill] sm:$0xff] %v7788_v43  ;;  %8979 = vst [vmem:[#allocation102_spill] sm:$0xff] %v7802_v46 }
 0x847   :  { %3131 = vrot.lane.b32.xlu1 %v7738_v50, %s5253_s0  ;;  %3302 = vrot.lane.b32.xlu0 %v7738_v50, %s5241_s24  ;;  %v7800_v0 = vpop.permute.xlu0 %3913  ;;  %v7810_v43 = vpop.permute.xlu1 %4194 }
 0x848   :  { %8978 = vst [vmem:[#allocation101_spill] sm:$0xff] %v7800_v0  ;;  %8981 = vst [vmem:[#allocation104_spill] sm:$0xff] %v7810_v43 }
 0x84b   :  { %3566 = vrot.lane.b32.xlu1 %v7738_v50, %s5236_s20  ;;  %4004 = vrot.lane.b32.xlu0 %v7738_v50, %s5255_s23  ;;  %v7808_v61 = vpop.permute.xlu0 %4199  ;;  %v7824_v0 = vpop.permute.xlu1 %5135 }
 0x84c   :  { %8980 = vst [vmem:[#allocation103_spill] sm:$0xff] %v7808_v61 }
 0x84f   :  { %3712 = vrot.lane.b32.xlu1 %v7738_v50, %s5256_s25  ;;  %2781 = vrot.lane.b32.xlu0 %v7760_v14, %s5254_s9  ;;  %v7822_v46 = vpop.permute.xlu0 %5140  ;;  %v7832_v43 = vpop.permute.xlu1 %5145 }
 0x850   :  { %8983 = vst [vmem:[#allocation106_spill] sm:$0xff] %v7822_v46 }
 0x853   :  { %3858 = vrot.lane.b32.xlu1 %v7738_v50, %s5257_s26  ;;  %3294 = vrot.lane.b32.xlu0 %v7760_v14, %s5241_s24  ;;  %v7830_v61 = vpop.permute.xlu0 %4054  ;;  %v7844_v32 = vpop.permute.xlu1 %4059 }
 0x854   :  { %8984 = vst [vmem:[#allocation107_spill] sm:$0xff] %v7830_v61  ;;  %8985 = vst [vmem:[#allocation108_spill] sm:$0xff] %v7844_v32 }
 0x857   :  { %2952 = vrot.lane.b32.xlu1 %v7760_v14, %s5252_s13  ;;  %4000 = vrot.lane.b32.xlu0 %v7760_v14, %s5255_s23  ;;  %v7842_v46 = vpop.permute.xlu0 %5150 }
 0x85b   :  { %3123 = vrot.lane.b32.xlu1 %v7760_v14, %s5253_s0  ;;  %2964 = vrot.lane.b32.xlu0 %v7782_v28, %s5252_s13 }
 0x85f   :  { %3562 = vrot.lane.b32.xlu1 %v7760_v14, %s5236_s20  ;;  %3135 = vrot.lane.b32.xlu0 %v7782_v28, %s5253_s0 }
 0x863   :  { %3708 = vrot.lane.b32.xlu1 %v7760_v14, %s5256_s25  ;;  %3568 = vrot.lane.b32.xlu0 %v7782_v28, %s5236_s20 }
 0x867   :  { %3854 = vrot.lane.b32.xlu1 %v7760_v14, %s5257_s26  ;;  %3714 = vrot.lane.b32.xlu0 %v7782_v28, %s5256_s25 }
 0x86b   :  { %2793 = vrot.lane.b32.xlu1 %v7782_v28, %s5254_s9  ;;  %3860 = vrot.lane.b32.xlu0 %v7782_v28, %s5257_s26 }
 0x86f   :  { %3306 = vrot.lane.b32.xlu1 %v7782_v28, %s5241_s24  ;;  %2956 = vrot.lane.b32.xlu0 %v7816_v44, %s5252_s13 }
 0x873   :  { %4006 = vrot.lane.b32.xlu1 %v7782_v28, %s5255_s23  ;;  %3127 = vrot.lane.b32.xlu0 %v7816_v44, %s5253_s0  ;;  %v7881_v28 = vld [vmem:[#allocation6 + $0xc8] sm:$0xff] }
 0x877   :  { %2785 = vrot.lane.b32.xlu1 %v7816_v44, %s5254_s9  ;;  %3564 = vrot.lane.b32.xlu0 %v7816_v44, %s5236_s20 }
 0x87b   :  { %3298 = vrot.lane.b32.xlu1 %v7816_v44, %s5241_s24  ;;  %3710 = vrot.lane.b32.xlu0 %v7816_v44, %s5256_s25 }
 0x87f   :  { %4002 = vrot.lane.b32.xlu1 %v7816_v44, %s5255_s23  ;;  %3856 = vrot.lane.b32.xlu0 %v7816_v44, %s5257_s26 }
 0x881   :  { %v7850_v61 = vpop.permute.xlu1 %2944  ;;  %v7852_v22 = vpop.permute.xlu0 %2773 }
 0x882   :  { %8986 = vst [vmem:[#allocation109_spill] sm:$0xff] %v7850_v61  ;;  %8987 = vst [vmem:[#allocation110_spill] sm:$0xff] %v7852_v22 }
 0x883   :  { %2976 = vrot.lane.b32.xlu1 %v7854_v7, %s5252_s13  ;;  %2805 = vrot.lane.b32.xlu0 %v7854_v7, %s5254_s9 }
 0x885   :  { %v7860_v40 = vpop.permute.xlu1 %3115  ;;  %v7862_v32 = vpop.permute.xlu0 %3286 }
 0x886   :  { %8989 = vst [vmem:[#allocation112_spill] sm:$0xff] %v7860_v40  ;;  %8990 = vst [vmem:[#allocation113_spill] sm:$0xff] %v7862_v32  ;;  %v8995_v32 = vld [vmem:[#allocation7_spill] sm:$0xff] }
 0x887   :  { %3147 = vrot.lane.b32.xlu1 %v7854_v7, %s5253_s0  ;;  %3318 = vrot.lane.b32.xlu0 %v7854_v7, %s5241_s24  ;;  %v2703_v9 = vshra.s32 %v8995_v32, 2 }
 0x889   :  { %v7868_v61 = vpop.permute.xlu1 %3558  ;;  %v7870_v22 = vpop.permute.xlu0 %3996  ;;  %v7891_v41 = vand.u32 3, %v2703_v9  ;;  %v8473_v9 = vld [vmem:[#allocation6] sm:$0xff] }
 0x88a   :  { %8991 = vst [vmem:[#allocation114_spill] sm:$0xff] %v7868_v61  ;;  %8992 = vst [vmem:[#allocation115_spill] sm:$0xff] %v7870_v22 }
 0x88b   :  { %3574 = vrot.lane.b32.xlu1 %v7854_v7, %s5236_s20  ;;  %4012 = vrot.lane.b32.xlu0 %v7854_v7, %s5255_s23  ;;  %vm2705_vm4 = vcmp.ge.s32.totalorder %v7891_v41, 1  ;;  %vm2706_vm8 = vcmp.le.s32.totalorder %v7891_v41, 2  ;;  %v9126_v41 = vld [vmem:[#allocation102_spill] sm:$0xff] }
 0x88d   :  { %v7876_v44 = vpop.permute.xlu1 %3704  ;;  %v7878_v40 = vpop.permute.xlu0 %2765 }
 0x88e   :  { %8993 = vst [vmem:[#allocation116_spill] sm:$0xff] %v7876_v44  ;;  %8994 = vst [vmem:[#allocation117_spill] sm:$0xff] %v7878_v40  ;;  %v5123_v40 = vunpack.i.h.bf16 %v7692_v51  ;;  %v2702_v44 = vand.u32 3, %v8995_v32  ;;  %v5133_v32 = vunpack.i.h.bf16 %v7756_v8 }
 0x88f   :  { %3720 = vrot.lane.b32.xlu1 %v7854_v7, %s5256_s25  ;;  %2797 = vrot.lane.b32.xlu0 %v7881_v28, %s5254_s9 }
 0x890   :  { %vm7903_vm7 = vcmp.le.s32.totalorder %v2702_v44, 2  ;;  %vm7951_vm0 = vcmp.ge.s32.totalorder %v2702_v44, 1 }
 0x891   :  { %v7887_v22 = vpop.permute.xlu1 %3850  ;;  %v7889_v61 = vpop.permute.xlu0 %3278  ;;  %vm7922_vm9 = vmand %vm2705_vm4, %vm7903_vm7 }
 0x892   :  { %8996 = vst [vmem:[#allocation7_spill] sm:$0xff] %v7887_v22  ;;  %8997 = vst [vmem:[#allocation118_spill] sm:$0xff] %v7889_v61 }
 0x893   :  { %3866 = vrot.lane.b32.xlu1 %v7854_v7, %s5257_s26  ;;  %3310 = vrot.lane.b32.xlu0 %v7881_v28, %s5241_s24  ;;  %vm7967_vm5 = vmand %vm2705_vm4, %vm7951_vm0 }
 0x894   :  { %vm7978_vm6 = vmand %vm2706_vm8, %vm7951_vm0 }
 0x895   :  { %v7899_v2 = vpop.permute.xlu1 %2936  ;;  %v2949_v13 = vpop.permute.xlu0 %2948  ;;  %vm8000_vm12 = vmand %vm2706_vm8, %vm7903_vm7 }
 0x896   :  { %8998 = vst [vmem:[#allocation119_spill] sm:$0xff] %v7899_v2  ;;  %v2986_v61 = vsel %vm2982_vm15, %v5123_v40, %v2949_v13  ;;  %v5152_v2 = vunpack.i.l.bf16 %v7842_v46  ;;  %v3531_v13 = vmul.f32 %v7618_v62, %v7678_v5 }
 0x897   :  { %v3010_v22 = vsel %vm2705_vm4, %v2986_v61, 0.0  ;;  %2968 = vrot.lane.b32.xlu1 %v7881_v28, %s5252_s13  ;;  %4008 = vrot.lane.b32.xlu0 %v7881_v28, %s5255_s23  ;;  %v9116_v61 = vld [vmem:[#allocation101_spill] sm:$0xff] }
 0x898   :  { %v3094_v51 = vmul.f32 %v7610_v42, %v3010_v22 }
 0x899   :  { %v3108_v40 = vpop.permute.xlu1 %3107  ;;  %v3120_v7 = vpop.permute.xlu0 %3119 }
 0x89a   :  { %v3154_v8 = vsel %vm3153_vm2, %v5152_v2, %v3108_v40  ;;  %v3157_v14 = vsel %vm3153_vm2, %v5133_v32, %v3120_v7  ;;  %v3543_v42 = vadd.f32 %v3531_v13, %v3094_v51 }
 0x89b   :  { %v3178_v62 = vsel %vm7922_vm9, %v3154_v8, 0.0  ;;  %3139 = vrot.lane.b32.xlu1 %v7881_v28, %s5253_s0  ;;  %2980 = vrot.lane.b32.xlu0 %v7928_v39, %s5252_s13  ;;  %v3181_v22 = vsel %vm7922_vm9, %v3157_v14, 0.0  ;;  %v5118_v14 = vunpack.i.h.bf16 %v7694_v57 }
 0x89c   :  { %v3262_v2 = vmul.f32 %v7768_v58, %v3178_v62  ;;  %v3265_v8 = vmul.f32 %v7631_v17, %v3181_v22  ;;  %v5128_v62 = vunpack.i.h.bf16 %v7702_v11  ;;  %v5233_v58 = vld [vmem:[#allocation6 + $0x8] sm:$0xff] }
 0x89d   :  { %v3555_v5 = vpop.permute.xlu1 %3554  ;;  %v3561_v34 = vpop.permute.xlu0 %3560 }
 0x89e   :  { %v3590_v7 = vsel %vm7903_vm7, %v3555_v5, 0.0  ;;  %v3593_v51 = vsel %vm7903_vm7, %v3561_v34, 0.0 }
 0x89f   :  { %v3674_v32 = vmul.f32 %v7780_v37, %v3590_v7  ;;  %v3677_v13 = vmul.f32 %v7643_v60, %v3593_v51  ;;  %3570 = vrot.lane.b32.xlu1 %v7881_v28, %s5236_s20  ;;  %3151 = vrot.lane.b32.xlu0 %v7928_v39, %s5253_s0 }
 0x8a1   :  { %v7955_v34 = vadd.f32 %v3674_v32, %v3262_v2  ;;  %v3689_v17 = vadd.f32 %v3677_v13, %v3265_v8  ;;  %v2778_v40 = vpop.permute.xlu1 %2777  ;;  %v3707_v37 = vpop.permute.xlu0 %3706 }
 0x8a2   :  { %v2815_v60 = vsel %vm2811_vm1, %v5118_v14, %v2778_v40  ;;  %v3739_v32 = vsel %vm7978_vm6, %v3707_v37, 0.0 }
 0x8a3   :  { %9005 = vst [vmem:[#allocation120_spill] sm:$0xff] %v7955_v34  ;;  %3716 = vrot.lane.b32.xlu1 %v7881_v28, %s5256_s25  ;;  %3576 = vrot.lane.b32.xlu0 %v7928_v39, %s5236_s20  ;;  %v2839_v22 = vsel %vm7967_vm5, %v2815_v60, 0.0 }
 0x8a4   :  { %v2923_v40 = vmul.f32 %v7606_v63, %v2839_v22  ;;  %v5138_v22 = vunpack.i.h.bf16 %v7824_v0 }
 0x8a5   :  { %v3291_v5 = vpop.permute.xlu1 %3290  ;;  %v3853_v2 = vpop.permute.xlu0 %3852 }
 0x8a6   :  { %v3327_v51 = vsel %vm256_vm3, %v5128_v62, %v3291_v5  ;;  %v3885_v8 = vsel %vm2706_vm8, %v3853_v2, 0.0  ;;  %v3823_v2 = vmul.f32 %v7655_v26, %v3739_v32 }
 0x8a7   :  { %v3351_v13 = vsel %vm7951_vm0, %v3327_v51, 0.0  ;;  %v3969_v14 = vmul.f32 %v7670_v18, %v3885_v8  ;;  %3862 = vrot.lane.b32.xlu1 %v7881_v28, %s5257_s26  ;;  %3722 = vrot.lane.b32.xlu0 %v7928_v39, %s5256_s25 }
 0x8a8   :  { %v3435_v60 = vmul.f32 %v7614_v52, %v3351_v13 }
 0x8a9   :  { %v3981_v62 = vadd.f32 %v3969_v14, %v3543_v42  ;;  %v3999_v18 = vpop.permute.xlu1 %3998  ;;  %v8004_v5 = vpop.permute.xlu0 %2940  ;;  %v5153_v42 = vunpack.i.h.bf16 %v7842_v46 }
 0x8aa   :  { %v3447_v51 = vadd.f32 %v3435_v60, %v2923_v40  ;;  %v4031_v63 = vsel %vm8000_vm12, %v3999_v18, 0.0  ;;  %v8018_v60 = vld [vmem:[#allocation6 + $0xe0] sm:$0xff]  ;;  %v5148_v18 = vunpack.i.h.bf16 %v7832_v43 }
 0x8ab   :  { %v4115_v52 = vmul.f32 %v7758_v3, %v4031_v63  ;;  %2809 = vrot.lane.b32.xlu1 %v7928_v39, %s5254_s9  ;;  %3868 = vrot.lane.b32.xlu0 %v7928_v39, %s5257_s26 }
 0x8ac   :  { %v3835_v8 = vadd.f32 %v3823_v2, %v3447_v51 }
 0x8ad   :  { %v4127_v13 = vadd.f32 %v4115_v52, %v3689_v17  ;;  %v2770_v14 = vpop.permute.xlu1 %2769  ;;  %v3112_v26 = vpop.permute.xlu0 %3111 }
 0x8ae   :  { %v2813_v32 = vsel %vm2811_vm1, %v5138_v22, %v2770_v14  ;;  %v3155_v40 = vsel %vm3153_vm2, %v5153_v42, %v3112_v26  ;;  %v4139_v3 = vadd.f32 %v3981_v62, %v3835_v8  ;;  %v5077_v14 = vunpack.i.l.bf16 %v7550_v29 }
 0x8af   :  { %3322 = vrot.lane.b32.xlu1 %v7928_v39, %s5241_s24  ;;  %2972 = vrot.lane.b32.xlu0 %v8018_v60, %s5252_s13  ;;  %v3179_v46 = vsel %vm7922_vm9, %v3155_v40, 0.0  ;;  %v2837_v2 = vsel %vm7967_vm5, %v2813_v32, 0.0 }
 0x8b0   :  { %v8027_v17 = vadd.f32 %v4139_v3, %v4127_v13  ;;  %v3263_v22 = vmul.f32 %v7766_v1, %v3179_v46  ;;  %v5082_v13 = vunpack.i.l.bf16 %v7548_v55  ;;  %v2921_v26 = vmul.f32 %v7714_v53, %v2837_v2 }
 0x8b1   :  { %v3283_v51 = vpop.permute.xlu1 %3282  ;;  %v3557_v63 = vpop.permute.xlu0 %3556  ;;  %v5092_v53 = vunpack.i.l.bf16 %v7572_v10 }
 0x8b2   :  { %v3325_v62 = vsel %vm256_vm3, %v5148_v18, %v3283_v51  ;;  %v3591_v52 = vsel %vm7903_vm7, %v3557_v63, 0.0  ;;  %v3534_v63 = vmul.f32 %v7504_v23, %v7738_v50 }
 0x8b3   :  { %v3349_v42 = vsel %vm7951_vm0, %v3325_v62, 0.0  ;;  %v3675_v8 = vmul.f32 %v7778_v47, %v3591_v52  ;;  %4014 = vrot.lane.b32.xlu1 %v7928_v39, %s5255_s23  ;;  %3143 = vrot.lane.b32.xlu0 %v8018_v60, %s5253_s0 }
 0x8b4   :  { %v3433_v32 = vmul.f32 %v7736_v20, %v3349_v42  ;;  %v5087_v20 = vunpack.i.l.bf16 %v7554_v25 }
 0x8b5   :  { %v8046_v1 = vadd.f32 %v3675_v8, %v3263_v22  ;;  %v2961_v40 = vpop.permute.xlu1 %2960  ;;  %v2790_v3 = vpop.permute.xlu0 %2789 }
 0x8b6   :  { %v2989_v47 = vsel %vm2982_vm15, %v5082_v13, %v2961_v40  ;;  %v2818_v18 = vsel %vm2811_vm1, %v5077_v14, %v2790_v3  ;;  %v8050_v46 = vadd.f32 %v3433_v32, %v2921_v26 }
 0x8b7   :  { %9012 = vst [vmem:[#allocation121_spill] sm:$0xff] %v8046_v1  ;;  %v3013_v51 = vsel %vm2705_vm4, %v2989_v47, 0.0  ;;  %2801 = vrot.lane.b32.xlu1 %v8018_v60, %s5254_s9  ;;  %3572 = vrot.lane.b32.xlu0 %v8018_v60, %s5236_s20  ;;  %v2842_v62 = vsel %vm7967_vm5, %v2818_v18, 0.0  ;;  %v9058_v1 = vld [vmem:[#allocation36_spill] sm:$0xff] }
 0x8b8   :  { %v3097_v2 = vmul.f32 %v7496_v15, %v3013_v51  ;;  %v2926_v15 = vmul.f32 %v7421_v21, %v2842_v62  ;;  %v5097_v21 = vunpack.i.l.bf16 %v7598_v45 }
 0x8b9   :  { %v3132_v52 = vpop.permute.xlu1 %3131  ;;  %v3303_v22 = vpop.permute.xlu0 %3302 }
 0x8ba   :  { %v3160_v42 = vsel %vm3153_vm2, %v5092_v53, %v3132_v52  ;;  %v3330_v8 = vsel %vm256_vm3, %v5087_v20, %v3303_v22  ;;  %v3546_v13 = vadd.f32 %v3534_v63, %v3097_v2  ;;  %v5107_v52 = vunpack.i.l.bf16 %v7602_v38 }
 0x8bb   :  { %v3354_v14 = vsel %vm7951_vm0, %v3330_v8, 0.0  ;;  %3314 = vrot.lane.b32.xlu1 %v8018_v60, %s5241_s24  ;;  %3718 = vrot.lane.b32.xlu0 %v8018_v60, %s5256_s25  ;;  %v3184_v23 = vsel %vm7922_vm9, %v3160_v42, 0.0 }
 0x8bc   :  { %v3438_v50 = vmul.f32 %v7500_v6, %v3354_v14  ;;  %v3268_v18 = vmul.f32 %v7518_v27, %v3184_v23 }
 0x8bd   :  { %v3567_v26 = vpop.permute.xlu1 %3566  ;;  %v4005_v32 = vpop.permute.xlu0 %4004 }
 0x8be   :  { %v3596_v40 = vsel %vm7903_vm7, %v3567_v26, 0.0  ;;  %v4034_v3 = vsel %vm8000_vm12, %v4005_v32, 0.0  ;;  %v3450_v47 = vadd.f32 %v3438_v50, %v2926_v15  ;;  %v4162_v32 = vld [vmem:[%s8577_s2 + $0x650] sm:$0xff] }
 0x8bf   :  { %v3680_v51 = vmul.f32 %v7522_v31, %v3596_v40  ;;  %4010 = vrot.lane.b32.xlu1 %v8018_v60, %s5255_s23  ;;  %3864 = vrot.lane.b32.xlu0 %v8018_v60, %s5257_s26  ;;  %v4118_v53 = vmul.f32 %v7568_v35, %v4034_v3 }
 0x8c1   :  { %v3692_v6 = vadd.f32 %v3680_v51, %v3268_v18  ;;  %v3713_v20 = vpop.permute.xlu1 %3712  ;;  %v2782_v2 = vpop.permute.xlu0 %2781 }
 0x8c2   :  { %v3742_v63 = vsel %vm7978_vm6, %v3713_v20, 0.0  ;;  %v2816_v27 = vsel %vm2811_vm1, %v5097_v21, %v2782_v2  ;;  %v5112_v21 = vunpack.i.l.bf16 %v7622_v4 }
 0x8c3   :  { %v4130_v62 = vadd.f32 %v4118_v53, %v3692_v6  ;;  %v3826_v31 = vmul.f32 %v7538_v36, %v3742_v63  ;;  %3700 = vrot.lane.b32.xlu1 %v7664_v19, %s5256_s25  ;;  %3702 = vrot.lane.b32.xlu0 %v7716_v48, %s5256_s25  ;;  %v2840_v35 = vsel %vm7967_vm5, %v2816_v27, 0.0  ;;  %v5102_v53 = vunpack.i.l.bf16 %v7596_v56  ;;  %v4160_v27 = vld [vmem:[%s8577_s2 + $0x640] sm:$0xff] }
 0x8c4   :  { %v2924_v50 = vmul.f32 %v7552_v59, %v2840_v35 }
 0x8c5   :  { %v3838_v22 = vadd.f32 %v3826_v31, %v3450_v47  ;;  %v3859_v42 = vpop.permute.xlu1 %3858  ;;  %v3295_v8 = vpop.permute.xlu0 %3294 }
 0x8c6   :  { %v3888_v14 = vsel %vm2706_vm8, %v3859_v42, 0.0  ;;  %v3328_v15 = vsel %vm256_vm3, %v5107_v52, %v3295_v8  ;;  %v5083_v52 = vunpack.i.h.bf16 %v7548_v55  ;;  %v4276_v55 = vld [vmem:[%s8577_s2 + $0x6a0] sm:$0xff] }
 0x8c7   :  { %v3972_v36 = vmul.f32 %v7542_v54, %v3888_v14  ;;  %v3352_v23 = vsel %vm7951_vm0, %v3328_v15, 0.0  ;;  %3846 = vrot.lane.b32.xlu1 %v7664_v19, %s5257_s26  ;;  %3848 = vrot.lane.b32.xlu0 %v7716_v48, %s5257_s26  ;;  %v4163_v54 = vld [vmem:[%s8577_s2 + $0x658] sm:$0xff]  ;;  %v4277_v15 = vld [vmem:[%s8577_s2 + $0x6a8] sm:$0xff] }
 0x8c8   :  { %v3436_v26 = vmul.f32 %v7560_v33, %v3352_v23 }
 0x8c9   :  { %v3984_v40 = vadd.f32 %v3972_v36, %v3546_v13  ;;  %v2953_v3 = vpop.permute.xlu1 %2952  ;;  %v4001_v47 = vpop.permute.xlu0 %4000  ;;  %v5093_v13 = vunpack.i.h.bf16 %v7572_v10 }
 0x8ca   :  { %v3448_v18 = vadd.f32 %v3436_v26, %v2924_v50  ;;  %v2987_v2 = vsel %vm2982_vm15, %v5102_v53, %v2953_v3  ;;  %v4032_v10 = vsel %vm8000_vm12, %v4001_v47, 0.0  ;;  %v9013_v47 = vld [vmem:[#allocation70_spill] sm:$0xff] }
 0x8cb   :  { %v4142_v51 = vadd.f32 %v3984_v40, %v3838_v22  ;;  %4184 = vperm.xlu1 %4913, %v4162_v32   ;;  %4189 = vperm.xlu0 %4912, %v4163_v54   ;;  %v3011_v35 = vsel %vm2705_vm4, %v2987_v2, 0.0  ;;  %v4116_v36 = vmul.f32 %v7616_v16, %v4032_v10  ;;  %v9018_v10 = vld [vmem:[#allocation68_spill] sm:$0xff] }
 0x8cc   :  { %v3095_v26 = vmul.f32 %v7556_v24, %v3011_v35  ;;  %v4346_v24 = vld [vmem:[%s8577_s2 + $0x6b8] sm:$0xff]  ;;  %v4348_v35 = vld [vmem:[%s8577_s2 + $0x6c8] sm:$0xff] }
 0x8cd   :  { %v8119_v59 = vadd.f32 %v4142_v51, %v4130_v62  ;;  %v3124_v33 = vpop.permute.xlu1 %3123  ;;  %v2965_v6 = vpop.permute.xlu0 %2964  ;;  %v4161_v62 = vld [vmem:[%s8577_s2 + $0x648] sm:$0xff] }
 0x8ce   :  { %v3158_v20 = vsel %vm3153_vm2, %v5112_v21, %v3124_v33  ;;  %v2990_v23 = vsel %vm2982_vm15, %v5083_v52, %v2965_v6  ;;  %v9014_v21 = vld [vmem:[#allocation43_spill] sm:$0xff] }
 0x8cf   :  { %3992 = vrot.lane.b32.xlu1 %v7664_v19, %s5255_s23  ;;  %3994 = vrot.lane.b32.xlu0 %v7716_v48, %s5255_s23  ;;  %v3182_v63 = vsel %vm7922_vm9, %v3158_v20, 0.0  ;;  %v3014_v33 = vsel %vm2705_vm4, %v2990_v23, 0.0  ;;  %v9015_v20 = vld [vmem:[#allocation97_spill] sm:$0xff] }
 0x8d0   :  { %v3266_v42 = vmul.f32 %v7578_v12, %v3182_v63 }
 0x8d1   :  { %v3563_v31 = vpop.permute.xlu1 %3562  ;;  %v3136_v19 = vpop.permute.xlu0 %3135 }
 0x8d2   :  { %v3594_v48 = vsel %vm7903_vm7, %v3563_v31, 0.0  ;;  %v3161_v22 = vsel %vm3153_vm2, %v5093_v13, %v3136_v19  ;;  %v9016_v13 = vld [vmem:[#allocation66_spill] sm:$0xff]  ;;  %v9017_v31 = vld [vmem:[#allocation17_spill] sm:$0xff] }
 0x8d3   :  { %v3678_v8 = vmul.f32 %v7582_v49, %v3594_v48  ;;  %v3185_v14 = vsel %vm7922_vm9, %v3161_v22, 0.0  ;;  %4174 = vperm.xlu1 %4913, %v4160_v27   ;;  %4179 = vperm.xlu0 %4912, %v4161_v62   ;;  %v3532_v2 = vmul.f32 %v9016_v13, %v9015_v20  ;;  %v3098_v19 = vmul.f32 %v9017_v31, %v3014_v33  ;;  %v9023_v13 = vld [vmem:[#allocation44_spill] sm:$0xff]  ;;  %v9024_v31 = vld [vmem:[#allocation37_spill] sm:$0xff] }
 0x8d4   :  { %v3269_v32 = vmul.f32 %v7516_v30, %v3185_v14  ;;  %v4345_v30 = vld [vmem:[%s8577_s2 + $0x6b0] sm:$0xff]  ;;  %v5078_v22 = vunpack.i.h.bf16 %v7550_v29 }
 0x8d5   :  { %v3690_v12 = vadd.f32 %v3678_v8, %v3266_v42  ;;  %v3709_v50 = vpop.permute.xlu1 %3708  ;;  %v3569_v49 = vpop.permute.xlu0 %3568  ;;  %v3544_v52 = vadd.f32 %v3532_v2, %v3095_v26  ;;  %v9019_v14 = vld [vmem:[#allocation98_spill] sm:$0xff] }
 0x8d6   :  { %v3740_v54 = vsel %vm7978_vm6, %v3709_v50, 0.0  ;;  %v3597_v40 = vsel %vm7903_vm7, %v3569_v49, 0.0  ;;  %v9021_v49 = vld [vmem:[#allocation42_spill] sm:$0xff] }
 0x8d7   :  { %v4128_v3 = vadd.f32 %v4116_v36, %v3690_v12  ;;  %v3824_v51 = vmul.f32 %v9013_v47, %v3740_v54  ;;  %v3681_v16 = vmul.f32 %v9014_v21, %v3597_v40  ;;  %4280 = vperm.xlu1 %4913, %v4276_v55   ;;  %4285 = vperm.xlu0 %4912, %v4277_v15   ;;  %v9020_v55 = vld [vmem:[#allocation14_spill] sm:$0xff]  ;;  %v4518_v40 = vld [vmem:[%s8577_s2 + $0x6d8] sm:$0x3] }
 0x8d8   :  { %v3535_v15 = vmul.f32 %v9020_v55, %v9019_v14  ;;  %v4517_v54 = vld [vmem:[%s8577_s2 + $0x6d0] sm:$0xff] }
 0x8d9   :  { %v3836_v6 = vadd.f32 %v3824_v51, %v3448_v18  ;;  %v3693_v53 = vadd.f32 %v3681_v16, %v3269_v32  ;;  %v3855_v63 = vpop.permute.xlu1 %3854  ;;  %v3715_v27 = vpop.permute.xlu0 %3714  ;;  %v4347_v18 = vld [vmem:[%s8577_s2 + $0x6c0] sm:$0xff]  ;;  %v5088_v32 = vunpack.i.h.bf16 %v7554_v25 }
 0x8da   :  { %v3886_v62 = vsel %vm2706_vm8, %v3855_v63, 0.0  ;;  %v3547_v50 = vadd.f32 %v3535_v15, %v3098_v19  ;;  %v3743_v25 = vsel %vm7978_vm6, %v3715_v27, 0.0 }
 0x8db   :  { %v3970_v48 = vmul.f32 %v9018_v10, %v3886_v62  ;;  %4351 = vperm.xlu1 %4913, %v4345_v30   ;;  %4356 = vperm.xlu0 %4912, %v4346_v24   ;;  %v3827_v19 = vmul.f32 %v9024_v31, %v3743_v25  ;;  %v9033_v31 = vld [vmem:[#allocation75_spill] sm:$0xff] }
 0x8dd   :  { %v3982_v42 = vadd.f32 %v3970_v48, %v3544_v52  ;;  %v2794_v8 = vpop.permute.xlu1 %2793  ;;  %v3861_v36 = vpop.permute.xlu0 %3860  ;;  %v5103_v48 = vunpack.i.h.bf16 %v7596_v56 }
 0x8de   :  { %v2819_v23 = vsel %vm2811_vm1, %v5078_v22, %v2794_v8  ;;  %v3889_v12 = vsel %vm2706_vm8, %v3861_v36, 0.0  ;;  %v9025_v22 = vld [vmem:[#allocation69_spill] sm:$0xff]  ;;  %v9026_v8 = vld [vmem:[#allocation90_spill] sm:$0xff] }
 0x8df   :  { %v4140_v29 = vadd.f32 %v3982_v42, %v3836_v6  ;;  %v3973_v26 = vmul.f32 %v9021_v49, %v3889_v12  ;;  %4361 = vperm.xlu1 %4913, %v4347_v18   ;;  %4366 = vperm.xlu0 %4912, %v4348_v35   ;;  %v2843_v51 = vsel %vm7967_vm5, %v2819_v23, 0.0  ;;  %v5113_v6 = vunpack.i.h.bf16 %v7622_v4  ;;  %v9028_v49 = vld [vmem:[#allocation73_spill] sm:$0xff] }
 0x8e0   :  { %v5098_v4 = vunpack.i.h.bf16 %v7598_v45  ;;  %v4238_v14 = vadd.f32 %v9026_v8, %v8119_v59 }
 0x8e1   :  { %v8199_v47 = vadd.f32 %v4140_v29, %v4128_v3  ;;  %v3985_v21 = vadd.f32 %v3973_v26, %v3547_v50  ;;  %v3307_v16 = vpop.permute.xlu1 %3306  ;;  %v2957_v33 = vpop.permute.xlu0 %2956  ;;  %v9022_v3 = vld [vmem:[#allocation15_spill] sm:$0xff] }
 0x8e2   :  { %v3331_v30 = vsel %vm256_vm3, %v5088_v32, %v3307_v16  ;;  %v2927_v20 = vmul.f32 %v9022_v3, %v2843_v51  ;;  %v2988_v55 = vsel %vm2982_vm15, %v5103_v48, %v2957_v33  ;;  %v9027_v50 = vld [vmem:[#allocation59_spill] sm:$0xff]  ;;  %v5108_v32 = vunpack.i.h.bf16 %v7602_v38  ;;  %v9029_v33 = vld [vmem:[#allocation53_spill] sm:$0xff] }
 0x8e3   :  { %v3355_v24 = vsel %vm7951_vm0, %v3331_v30, 0.0  ;;  %4521 = vperm.xlu1 %4913, %v4517_v54   ;;  %4526 = vperm.xlu0 %4912, %v4518_v40   ;;  %v3012_v59 = vsel %vm2705_vm4, %v2988_v55, 0.0  ;;  %v4250_v16 = vmax.f32 %v4238_v14, 0.0  ;;  %v9036_v14 = vld [vmem:[#allocation58_spill] sm:$0xff] }
 0x8e4   :  { %v3439_v2 = vmul.f32 %v9023_v13, %v3355_v24  ;;  %v9031_v13 = vld [vmem:[#allocation71_spill] sm:$0xff] }
 0x8e5   :  { %v4007_v63 = vpop.permute.xlu1 %4006  ;;  %v3128_v62 = vpop.permute.xlu0 %3127 }
 0x8e6   :  { %v3451_v52 = vadd.f32 %v3439_v2, %v2927_v20  ;;  %v4035_v10 = vsel %vm8000_vm12, %v4007_v63, 0.0  ;;  %v3159_v27 = vsel %vm3153_vm2, %v5113_v6, %v3128_v62  ;;  %v9030_v6 = vld [vmem:[#allocation62_spill] sm:$0xff]  ;;  %v9032_v63 = vld [vmem:[#allocation57_spill] sm:$0xff] }
 0x8e7   :  { %v4119_v18 = vmul.f32 %v9025_v22, %v4035_v10  ;;  %v3183_v42 = vsel %vm7922_vm9, %v3159_v27, 0.0  ;;  %v3096_v38 = vmul.f32 %v9030_v6, %v3012_v59  ;;  %v9034_v10 = vld [vmem:[#allocation105_spill] sm:$0xff]  ;;  %v9035_v27 = vld [vmem:[#allocation67_spill] sm:$0xff] }
 0x8e8   :  { %v3839_v35 = vadd.f32 %v3827_v19, %v3451_v52  ;;  %v3267_v45 = vmul.f32 %v9027_v50, %v3183_v42  ;;  %v3533_v48 = vmul.f32 %v9035_v27, %v9034_v10 }
 0x8e9   :  { %v4131_v15 = vadd.f32 %v4119_v18, %v3693_v53  ;;  %v2786_v36 = vpop.permute.xlu1 %2785  ;;  %v3565_v23 = vpop.permute.xlu0 %3564  ;;  %v8245_v18 = vmin.f32 %v4250_v16, 6.0 }
 0x8ea   :  { %v4143_v12 = vadd.f32 %v3985_v21, %v3839_v35  ;;  %v2817_v29 = vsel %vm2811_vm1, %v5098_v4, %v2786_v36  ;;  %v3595_v56 = vsel %vm7903_vm7, %v3565_v23, 0.0  ;;  %v9037_v36 = vld [vmem:[#allocation72_spill] sm:$0xff] }
 0x8eb   :  { %v3679_v26 = vmul.f32 %v9028_v49, %v3595_v56  ;;  %v2841_v53 = vsel %vm7967_vm5, %v2817_v29, 0.0  ;;  %v9056_v29 = vld [vmem:[#allocation30_spill] sm:$0xff] }
 0x8ec   :  { %v4155_v54 = vadd.f32 %v4143_v12, %v4131_v15  ;;  %v2925_v2 = vmul.f32 %v9031_v13, %v2841_v53  ;;  %v3545_v15 = vadd.f32 %v3533_v48, %v3096_v38 }
 0x8ed   :  { %v3691_v40 = vadd.f32 %v3679_v26, %v3267_v45  ;;  %v3299_v51 = vpop.permute.xlu1 %3298  ;;  %v3711_v21 = vpop.permute.xlu0 %3710  ;;  %v9038_v26 = vld [vmem:[#allocation104_spill] sm:$0xff] }
 0x8ee   :  { %v4239_v30 = vadd.f32 %v9029_v33, %v4155_v54  ;;  %v3329_v25 = vsel %vm256_vm3, %v5108_v32, %v3299_v51  ;;  %v3741_v24 = vsel %vm7978_vm6, %v3711_v21, 0.0  ;;  %v4236_v32 = vadd.f32 %v9038_v26, %v8199_v47  ;;  %v9039_v21 = vld [vmem:[#allocation103_spill] sm:$0xff] }
 0x8ef   :  { %v3353_v3 = vsel %vm7951_vm0, %v3329_v25, 0.0  ;;  %v3825_v19 = vmul.f32 %v9033_v31, %v3741_v24 }
 0x8f0   :  { %v4251_v20 = vmax.f32 %v4239_v30, 0.0  ;;  %v3437_v62 = vmul.f32 %v9032_v63, %v3353_v3  ;;  %v4248_v33 = vmax.f32 %v4236_v32, 0.0  ;;  %v9046_v32 = vld [vmem:[#allocation32_spill] sm:$0xff] }
 0x8f1   :  { %v4003_v52 = vpop.permute.xlu1 %4002  ;;  %v3857_v22 = vpop.permute.xlu0 %3856 }
 0x8f2   :  { %v8247_v4 = vmin.f32 %v4251_v20, 6.0  ;;  %v3449_v35 = vadd.f32 %v3437_v62, %v2925_v2  ;;  %v4033_v42 = vsel %vm8000_vm12, %v4003_v52, 0.0  ;;  %v3887_v8 = vsel %vm2706_vm8, %v3857_v22, 0.0  ;;  %v9042_v62 = vld [vmem:[#allocation9_spill] sm:$0xff]  ;;  %v9044_v22 = vld [vmem:[#allocation88_spill] sm:$0xff] }
 0x8f3   :  { %v4117_v55 = vmul.f32 %v9036_v14, %v4033_v42  ;;  %v3971_v23 = vmul.f32 %v9037_v36, %v3887_v8  ;;  %v8262_v6 = vmin.f32 %v4248_v33, 6.0  ;;  %v5042_v31 = vunpack.i.l.bf16 %v9042_v62  ;;  %v9045_v14 = vld [vmem:[#allocation39_spill] sm:$0xff]  ;;  %v9047_v33 = vld [vmem:[#allocation26_spill] sm:$0xff] }
 0x8f4   :  { %v3837_v12 = vadd.f32 %v3825_v19, %v3449_v35  ;;  %v9043_v19 = vld [vmem:[#allocation27_spill] sm:$0xff]  ;;  %v5037_v35 = vunpack.i.l.bf16 %v9044_v22  ;;  %v5038_v26 = vunpack.i.h.bf16 %v9044_v22  ;;  %v9051_v22 = vld [vmem:[#allocation81_spill] sm:$0xff]  ;;  %v9127_v44 = vpack.c.bf16 %v8247_v4, %v8245_v18 }
 0x8f5   :  { %v4129_v56 = vadd.f32 %v4117_v55, %v3691_v40  ;;  %v3983_v50 = vadd.f32 %v3971_v23, %v3545_v15  ;;  %v2977_v45 = vpop.permute.xlu1 %2976  ;;  %v2806_v49 = vpop.permute.xlu0 %2805  ;;  %9040 = vst [vmem:[#allocation70_spill] sm:$0xff] %v8262_v6  ;;  %v5047_v52 = vunpack.i.l.bf16 %v9043_v19  ;;  %v5052_v55 = vunpack.i.l.bf16 %v9045_v14 }
 0x8f6   :  { %v2993_v10 = vsel %vm2982_vm15, %v5042_v31, %v2977_v45  ;;  %v2822_v15 = vsel %vm2811_vm1, %v5037_v35, %v2806_v49  ;;  %v5053_v45 = vunpack.i.h.bf16 %v9045_v14  ;;  %v9049_v31 = vld [vmem:[#allocation111_spill] sm:$0xff]  ;;  %v9052_v14 = vld [vmem:[#allocation16_spill] sm:$0xff] }
 0x8f7   :  { %v4141_v59 = vadd.f32 %v3983_v50, %v3837_v12  ;;  %v3017_v8 = vsel %vm2705_vm4, %v2993_v10, 0.0  ;;  %v5043_v12 = vunpack.i.h.bf16 %v9042_v62 }
 0x8f9   :  { %v4153_v54 = vadd.f32 %v4141_v59, %v4129_v56  ;;  %v3148_v53 = vpop.permute.xlu1 %3147  ;;  %v3319_v51 = vpop.permute.xlu0 %3318  ;;  %v3101_v59 = vmul.f32 %v9046_v32, %v3017_v8  ;;  %v5062_v8 = vunpack.i.l.bf16 %v9047_v33  ;;  %v9054_v32 = vld [vmem:[#allocation8_spill] sm:$0xff] }
 0x8fa   :  { %v3334_v42 = vsel %vm256_vm3, %v5047_v52, %v3319_v51  ;;  %v2846_v51 = vsel %vm7967_vm5, %v2822_v15, 0.0  ;;  %v9050_v52 = vld [vmem:[#allocation80_spill] sm:$0xff] }
 0x8fb   :  { %v4237_v16 = vadd.f32 %v9039_v21, %v4153_v54  ;;  %v3358_v56 = vsel %vm7951_vm0, %v3334_v42, 0.0  ;;  %v3164_v54 = vsel %vm3153_vm2, %v5052_v55, %v3148_v53  ;;  %v3538_v10 = vmul.f32 %v9050_v52, %v9049_v31 }
 0x8fc   :  { %v2930_v47 = vmul.f32 %v9054_v32, %v2846_v51 }
 0x8fd   :  { %v3575_v30 = vpop.permute.xlu1 %3574  ;;  %v8260_v25 = vpop.permute.xlu0 %4012  ;;  %v4249_v24 = vmax.f32 %v4237_v16, 0.0  ;;  %v3550_v52 = vadd.f32 %v3538_v10, %v3101_v59  ;;  %v9060_v10 = vld [vmem:[#allocation96_spill] sm:$0xff] }
 0x8fe   :  { %v3600_v21 = vsel %vm7903_vm7, %v3575_v30, 0.0  ;;  %v9053_v30 = vld [vmem:[#allocation86_spill] sm:$0xff] }
 0x8ff   :  { %v8264_v40 = vmin.f32 %v4249_v24, 6.0  ;;  %v5057_v15 = vunpack.i.l.bf16 %v9053_v30  ;;  %v9057_v24 = vld [vmem:[#allocation13_spill] sm:$0xff] }
 0x900   :  { %v5067_v55 = vunpack.i.l.bf16 %v9057_v24 }
 0x901   :  { %9041 = vst [vmem:[#allocation43_spill] sm:$0xff] %v8264_v40  ;;  %v3721_v38 = vpop.permute.xlu1 %3720  ;;  %v2798_v3 = vpop.permute.xlu0 %2797 }
 0x902   :  { %v3746_v16 = vsel %vm7978_vm6, %v3721_v38, 0.0  ;;  %v3188_v38 = vsel %vm7922_vm9, %v3164_v54, 0.0  ;;  %v2820_v54 = vsel %vm2811_vm1, %v5057_v15, %v2798_v3  ;;  %v5127_v3 = vunpack.i.l.bf16 %v7702_v11  ;;  %v9089_v11 = vld [vmem:[#allocation51_spill] sm:$0xff] }
 0x903   :  { %v3830_v31 = vmul.f32 %v9056_v29, %v3746_v16  ;;  %v3272_v34 = vmul.f32 %v9058_v1, %v3188_v38  ;;  %v4038_v29 = vsel %vm8000_vm12, %v8260_v25, 0.0  ;;  %v5117_v1 = vunpack.i.l.bf16 %v7694_v57  ;;  %v9061_v38 = vld [vmem:[#allocation40_spill] sm:$0xff] }
 0x904   :  { %v3536_v25 = vmul.f32 %v9061_v38, %v7881_v28 }
 0x905   :  { %v3867_v20 = vpop.permute.xlu1 %3866  ;;  %v3311_v13 = vpop.permute.xlu0 %3310 }
 0x906   :  { %v3892_v50 = vsel %vm2706_vm8, %v3867_v20, 0.0  ;;  %v9048_v20 = vld [vmem:[#allocation83_spill] sm:$0xff]  ;;  %v3332_v59 = vsel %vm256_vm3, %v5067_v55, %v3311_v13 }
 0x907   :  { %v3442_v62 = vmul.f32 %v9048_v20, %v3358_v56  ;;  %v3976_v53 = vmul.f32 %v9051_v22, %v3892_v50  ;;  %v9055_v56 = vld [vmem:[#allocation18_spill] sm:$0xff]  ;;  %v5072_v50 = vunpack.i.l.bf16 %v9052_v14  ;;  %v5058_v22 = vunpack.i.h.bf16 %v9053_v30 }
 0x908   :  { %v3684_v20 = vmul.f32 %v9055_v56, %v3600_v21  ;;  %v9059_v21 = vld [vmem:[#allocation92_spill] sm:$0xff]  ;;  %v9087_v30 = vld [vmem:[#allocation34_spill] sm:$0xff]  ;;  %v9130_v4 = vld [vmem:[#allocation43_spill] sm:$0xff] }
 0x909   :  { %v2969_v2 = vpop.permute.xlu1 %2968  ;;  %v8268_v63 = vpop.permute.xlu0 %4008  ;;  %v3454_v6 = vadd.f32 %v3442_v62, %v2930_v47  ;;  %v3988_v40 = vadd.f32 %v3976_v53, %v3550_v52  ;;  %v5122_v56 = vunpack.i.l.bf16 %v9059_v21  ;;  %v2844_v53 = vsel %vm7967_vm5, %v2820_v54, 0.0  ;;  %v9062_v52 = vld [vmem:[#allocation22_spill] sm:$0xff]  ;;  %v9066_v21 = vld [vmem:[#allocation20_spill] sm:$0xff] }
 0x90a   :  { %v2991_v16 = vsel %vm2982_vm15, %v5062_v8, %v2969_v2  ;;  %v3696_v47 = vadd.f32 %v3684_v20, %v3272_v34  ;;  %v4122_v13 = vmul.f32 %v9062_v52, %v4038_v29  ;;  %v3356_v2 = vsel %vm7951_vm0, %v3332_v59, 0.0  ;;  %v9063_v8 = vld [vmem:[#allocation109_spill] sm:$0xff] }
 0x90b   :  { %v3842_v62 = vadd.f32 %v3830_v31, %v3454_v6  ;;  %v3015_v57 = vsel %vm2705_vm4, %v2991_v16, 0.0  ;;  %v2985_v20 = vsel %vm2982_vm15, %v5122_v56, %v9063_v8  ;;  %v9064_v31 = vld [vmem:[#allocation110_spill] sm:$0xff]  ;;  %v2928_v29 = vmul.f32 %v9066_v21, %v2844_v53  ;;  %v9068_v56 = vld [vmem:[#allocation79_spill] sm:$0xff] }
 0x90c   :  { %v4134_v54 = vadd.f32 %v4122_v13, %v3696_v47  ;;  %v3099_v52 = vmul.f32 %v9068_v56, %v3015_v57  ;;  %v9069_v13 = vld [vmem:[#allocation64_spill] sm:$0xff]  ;;  %v9071_v57 = vld [vmem:[#allocation33_spill] sm:$0xff] }
 0x90d   :  { %v8273_v27 = vpop.permute.xlu1 %3139  ;;  %v2981_v48 = vpop.permute.xlu0 %2980  ;;  %v4146_v55 = vadd.f32 %v3988_v40, %v3842_v62  ;;  %v9067_v62 = vld [vmem:[#allocation31_spill] sm:$0xff] }
 0x90e   :  { %v2994_v15 = vsel %vm2982_vm15, %v5043_v12, %v2981_v48  ;;  %v8343_v48 = vsel %vm2811_vm1, %v5117_v1, %v9064_v31  ;;  %v9065_v12 = vld [vmem:[#allocation76_spill] sm:$0xff]  ;;  %v3440_v38 = vmul.f32 %v9067_v62, %v3356_v2  ;;  %v4036_v1 = vsel %vm8000_vm12, %v8268_v63, 0.0  ;;  %v9072_v31 = vld [vmem:[#allocation77_spill] sm:$0xff] }
 0x90f   :  { %v3539_v40 = vmul.f32 %v9065_v12, %v7928_v39  ;;  %v3018_v59 = vsel %vm2705_vm4, %v2994_v15, 0.0  ;;  %v4158_v39 = vadd.f32 %v4146_v55, %v4134_v54  ;;  %v3162_v47 = vsel %vm3153_vm2, %v5072_v50, %v8273_v27  ;;  %v9074_v54 = vld [vmem:[#allocation78_spill] sm:$0xff] }
 0x910   :  { %v3102_v2 = vmul.f32 %v9069_v13, %v3018_v59  ;;  %v9070_v55 = vunpack.i.h.bf16 %v9043_v19  ;;  %v9075_v59 = vld [vmem:[#allocation65_spill] sm:$0xff]  ;;  %v3548_v62 = vadd.f32 %v3536_v25, %v3099_v52  ;;  %v9077_v13 = vld [vmem:[#allocation23_spill] sm:$0xff]  ;;  %v3452_v52 = vadd.f32 %v3440_v38, %v2928_v29 }
 0x911   :  { %v8281_v36 = vpop.permute.xlu1 %3570  ;;  %v3152_v23 = vpop.permute.xlu0 %3151  ;;  %v9085_v29 = vld [vmem:[#allocation29_spill] sm:$0xff] }
 0x912   :  { %v3165_v16 = vsel %vm3153_vm2, %v5053_v45, %v3152_v23  ;;  %v3598_v50 = vsel %vm7903_vm7, %v8281_v36, 0.0  ;;  %v3186_v36 = vsel %vm7922_vm9, %v3162_v47, 0.0  ;;  %v9080_v47 = vld [vmem:[#allocation28_spill] sm:$0xff]  ;;  %v3537_v38 = vmul.f32 %v9085_v29, %v8018_v60 }
 0x913   :  { %v3189_v63 = vsel %vm7922_vm9, %v3165_v16, 0.0 }
 0x914   :  { %v3273_v16 = vmul.f32 %v9075_v59, %v3189_v63  ;;  %v9081_v63 = vld [vmem:[#allocation54_spill] sm:$0xff] }
 0x915   :  { %v8304_v35 = vpop.permute.xlu1 %3716  ;;  %v3577_v42 = vpop.permute.xlu0 %3576  ;;  %v4242_v25 = vadd.f32 %v9081_v63, %v4158_v39  ;;  %v9092_v63 = vld [vmem:[#allocation35_spill] sm:$0xff] }
 0x919   :  { %v3863_v51 = vpop.permute.xlu1 %3862  ;;  %v3723_v32 = vpop.permute.xlu0 %3722 }
 0x91d   :  { %v2810_v34 = vpop.permute.xlu1 %2809  ;;  %v3869_v6 = vpop.permute.xlu0 %3868 }
 0x91e   :  { %v2823_v28 = vsel %vm2811_vm1, %v5038_v26, %v2810_v34  ;;  %v3601_v26 = vsel %vm7903_vm7, %v3577_v42, 0.0  ;;  %v3893_v23 = vsel %vm2706_vm8, %v3869_v6, 0.0  ;;  %v3890_v42 = vsel %vm2706_vm8, %v3863_v51, 0.0 }
 0x91f   :  { %v2847_v53 = vsel %vm7967_vm5, %v2823_v28, 0.0  ;;  %v3685_v34 = vmul.f32 %v9071_v57, %v3601_v26  ;;  %v3747_v6 = vsel %vm7978_vm6, %v3723_v32, 0.0  ;;  %v3744_v51 = vsel %vm7978_vm6, %v8304_v35, 0.0  ;;  %v9073_v28 = vld [vmem:[#allocation85_spill] sm:$0xff]  ;;  %v9076_v32 = vld [vmem:[#allocation12_spill] sm:$0xff] }
 0x920   :  { %v2931_v19 = vmul.f32 %v9072_v31, %v2847_v53  ;;  %v3977_v12 = vmul.f32 %v9073_v28, %v3893_v23  ;;  %v3974_v56 = vmul.f32 %v9076_v32, %v3890_v42  ;;  %v9078_v23 = vld [vmem:[#allocation24_spill] sm:$0xff] }
 0x921   :  { %v3323_v45 = vpop.permute.xlu1 %3322  ;;  %v2973_v15 = vpop.permute.xlu0 %2972  ;;  %v3682_v57 = vmul.f32 %v9078_v23, %v3598_v50  ;;  %v3697_v28 = vadd.f32 %v3685_v34, %v3273_v16  ;;  %v9082_v32 = vld [vmem:[#allocation84_spill] sm:$0xff]  ;;  %v9086_v16 = vld [vmem:[#allocation113_spill] sm:$0xff] }
 0x922   :  { %v3335_v27 = vsel %vm256_vm3, %v9070_v55, %v3323_v45  ;;  %v3831_v55 = vmul.f32 %v9077_v13, %v3747_v6  ;;  %v3270_v49 = vmul.f32 %v9082_v32, %v3186_v36  ;;  %v3986_v6 = vadd.f32 %v3974_v56, %v3548_v62 }
 0x923   :  { %v3359_v8 = vsel %vm7951_vm0, %v3335_v27, 0.0  ;;  %v3551_v27 = vadd.f32 %v3539_v40, %v3102_v2  ;;  %v9083_v40 = vunpack.i.h.bf16 %v9047_v33  ;;  %v2838_v33 = vsel %vm7967_vm5, %v8343_v48, 0.0 }
 0x924   :  { %v3443_v21 = vmul.f32 %v9074_v54, %v3359_v8  ;;  %v9079_v8 = vld [vmem:[#allocation25_spill] sm:$0xff]  ;;  %v3326_v62 = vsel %vm256_vm3, %v5127_v3, %v9086_v16  ;;  %v4120_v56 = vmul.f32 %v9087_v30, %v4036_v1  ;;  %v9090_v1 = vunpack.i.h.bf16 %v9057_v24  ;;  %v9098_v30 = vld [vmem:[#allocation82_spill] sm:$0xff] }
 0x925   :  { %v4015_v26 = vpop.permute.xlu1 %4014  ;;  %v3144_v45 = vpop.permute.xlu0 %3143  ;;  %v3828_v31 = vmul.f32 %v9079_v8, %v3744_v51  ;;  %v3989_v42 = vadd.f32 %v3977_v12, %v3551_v27  ;;  %v2992_v2 = vsel %vm2982_vm15, %v9083_v40, %v2973_v15  ;;  %v3009_v12 = vsel %vm2705_vm4, %v2985_v20, 0.0  ;;  %v9091_v8 = vld [vmem:[#allocation21_spill] sm:$0xff] }
 0x926   :  { %v3455_v35 = vadd.f32 %v3443_v21, %v2931_v19  ;;  %v4039_v53 = vsel %vm8000_vm12, %v4015_v26, 0.0  ;;  %v9084_v26 = vld [vmem:[#allocation106_spill] sm:$0xff]  ;;  %v3694_v15 = vadd.f32 %v3682_v57, %v3270_v49  ;;  %v9088_v20 = vunpack.i.h.bf16 %v9052_v14 }
 0x927   :  { %v4123_v54 = vmul.f32 %v9080_v47, %v4039_v53  ;;  %v5143_v51 = vunpack.i.h.bf16 %v9084_v26  ;;  %v3840_v36 = vadd.f32 %v3828_v31, %v3452_v52 }
 0x928   :  { %v3843_v59 = vadd.f32 %v3831_v55, %v3455_v35  ;;  %v3163_v55 = vsel %vm3153_vm2, %v9088_v20, %v3144_v45  ;;  %v4254_v35 = vmax.f32 %v4242_v25, 0.0  ;;  %v4132_v57 = vadd.f32 %v4120_v56, %v3694_v15  ;;  %v9093_v25 = vld [vmem:[#allocation45_spill] sm:$0xff] }
 0x929   :  { %v4135_v19 = vadd.f32 %v4123_v54, %v3697_v28  ;;  %v2802_v21 = vpop.permute.xlu1 %2801  ;;  %v3573_v50 = vpop.permute.xlu0 %3572  ;;  %v4144_v13 = vadd.f32 %v3986_v6, %v3840_v36  ;;  %v2984_v45 = vsel %vm2982_vm15, %v5143_v51, %v8004_v5  ;;  %v3187_v54 = vsel %vm7922_vm9, %v3163_v55, 0.0  ;;  %v9095_v6 = vld [vmem:[#allocation10_spill] sm:$0xff]  ;;  %v9097_v15 = vld [vmem:[#allocation41_spill] sm:$0xff] }
 0x92a   :  { %v4147_v34 = vadd.f32 %v3989_v42, %v3843_v59  ;;  %v2821_v39 = vsel %vm2811_vm1, %v5058_v22, %v2802_v21  ;;  %v3016_v22 = vsel %vm2705_vm4, %v2992_v2, 0.0  ;;  %v3599_v3 = vsel %vm7903_vm7, %v3573_v50, 0.0  ;;  %v9094_v59 = vld [vmem:[#allocation38_spill] sm:$0xff] }
 0x92b   :  { %v2845_v49 = vsel %vm7967_vm5, %v2821_v39, 0.0  ;;  %v3100_v31 = vmul.f32 %v9091_v8, %v3016_v22  ;;  %v4156_v42 = vadd.f32 %v4144_v13, %v4132_v57  ;;  %v3683_v32 = vmul.f32 %v9094_v59, %v3599_v3  ;;  %v9096_v39 = vld [vmem:[#allocation19_spill] sm:$0xff]  ;;  %v9099_v22 = vld [vmem:[#allocation48_spill] sm:$0xff]  ;;  %v9102_v3 = vld [vmem:[#allocation114_spill] sm:$0xff] }
 0x92c   :  { %v4159_v60 = vadd.f32 %v4147_v34, %v4135_v19  ;;  %v2929_v24 = vmul.f32 %v9092_v63, %v2845_v49  ;;  %v4266_v19 = vmin.f32 %v4254_v35, 6.0  ;;  %v3271_v29 = vmul.f32 %v9096_v39, %v3187_v54  ;;  %v9100_v49 = vld [vmem:[#allocation112_spill] sm:$0xff]  ;;  %v9106_v8 = vld [vmem:[#allocation47_spill] sm:$0xff]  ;;  %v5231_v54 = vld [vmem:[#allocation6 + $0x38] sm:$0xff] }
 0x92d   :  { %v3315_v48 = vpop.permute.xlu1 %3314  ;;  %v3719_v27 = vpop.permute.xlu0 %3718  ;;  %v3549_v16 = vadd.f32 %v3537_v38, %v3100_v31  ;;  %v3008_v13 = vsel %vm2705_vm4, %v2984_v45, 0.0  ;;  %v3350_v35 = vsel %vm7951_vm0, %v3326_v62, 0.0  ;;  %v9105_v62 = vld [vmem:[#allocation60_spill] sm:$0xff]  ;;  %v4240_v31 = vadd.f32 %v9106_v8, %v4156_v42  ;;  %v9107_v63 = vld [vmem:[#allocation49_spill] sm:$0xff]  ;;  %v9111_v42 = vld [vmem:[#allocation55_spill] sm:$0xff] }
 0x92e   :  { %v4243_v53 = vadd.f32 %v9089_v11, %v4159_v60  ;;  %v3333_v23 = vsel %vm256_vm3, %v9090_v1, %v3315_v48  ;;  %v3745_v14 = vsel %vm7978_vm6, %v3719_v27, 0.0  ;;  %v3093_v60 = vmul.f32 %v9099_v22, %v3009_v12  ;;  %v9103_v1 = vld [vmem:[#allocation116_spill] sm:$0xff] }
 0x92f   :  { %v3357_v28 = vsel %vm7951_vm0, %v3333_v23, 0.0  ;;  %v3829_v40 = vmul.f32 %v9095_v6, %v3745_v14  ;;  %v9101_v48 = vunpack.i.l.bf16 %v9060_v10  ;;  %v3695_v11 = vadd.f32 %v3683_v32, %v3271_v29  ;;  %v9104_v14 = vld [vmem:[#allocation7_spill] sm:$0xff]  ;;  %v9109_v59 = vld [vmem:[#allocation52_spill] sm:$0xff] }
 0x930   :  { %v4255_v47 = vmax.f32 %v4243_v53, 0.0  ;;  %v3441_v52 = vmul.f32 %v9093_v25, %v3357_v28  ;;  %v3592_v12 = vsel %vm7903_vm7, %v9102_v3, 0.0  ;;  %v3738_v23 = vsel %vm7978_vm6, %v9103_v1, 0.0  ;;  %v9108_v25 = vld [vmem:[#allocation46_spill] sm:$0xff]  ;;  %v5232_v6 = vld [vmem:[#allocation6 + $0x20] sm:$0xff]  ;;  %v9113_v29 = vld [vmem:[#allocation56_spill] sm:$0xff] }
 0x931   :  { %v4011_v5 = vpop.permute.xlu1 %4010  ;;  %v3865_v2 = vpop.permute.xlu0 %3864  ;;  %v3156_v27 = vsel %vm3153_vm2, %v9101_v48, %v9100_v49  ;;  %v3884_v10 = vsel %vm2706_vm8, %v9104_v14, 0.0  ;;  %v3092_v57 = vmul.f32 %v9105_v62, %v3008_v13  ;;  %v3434_v32 = vmul.f32 %v9109_v59, %v3350_v35  ;;  %v9117_v48 = vld [vmem:[#allocation50_spill] sm:$0xff]  ;;  %v9118_v1 = vld [vmem:[#allocation115_spill] sm:$0xff] }
 0x932   :  { %v4267_v21 = vmin.f32 %v4255_v47, 6.0  ;;  %v3453_v50 = vadd.f32 %v3441_v52, %v2929_v24  ;;  %v4037_v51 = vsel %vm8000_vm12, %v4011_v5, 0.0  ;;  %v3891_v34 = vsel %vm2706_vm8, %v3865_v2, 0.0  ;;  %v9119_v14 = vld [vmem:[#allocation119_spill] sm:$0xff] }
 0x933   :  { %v4121_v36 = vmul.f32 %v9097_v15, %v4037_v51  ;;  %v3975_v56 = vmul.f32 %v9098_v30, %v3891_v34  ;;  %v3530_v24 = vmul.f32 %v5231_v54, %v9107_v63  ;;  %v2922_v52 = vmul.f32 %v9108_v25, %v2838_v33  ;;  %v9122_v25 = vld [vmem:[#allocation117_spill] sm:$0xff] }
 0x934   :  { %v3841_v20 = vadd.f32 %v3829_v40, %v3453_v50  ;;  %v4275_v55 = vpack.c.bf16 %v4267_v21, %v4266_v19  ;;  %v9110_v40 = vld [vmem:[#allocation95_spill] sm:$0xff]  ;;  %v3180_v2 = vsel %vm7922_vm9, %v3156_v27, 0.0  ;;  %v3968_v19 = vmul.f32 %v9111_v42, %v3884_v10 }
 0x935   :  { %v3987_v53 = vadd.f32 %v3975_v56, %v3549_v16  ;;  %v3703_v38 = vpop.permute.xlu0 %3702  ;;  %v4133_v28 = vadd.f32 %v4121_v36, %v3695_v11  ;;  %v3529_v5 = vmul.f32 %v5232_v6, %v9110_v40  ;;  %v9112_v50 = vld [vmem:[#allocation99_spill] sm:$0xff]  ;;  %v3542_v39 = vadd.f32 %v3530_v24, %v3093_v60  ;;  %v9114_v36 = vld [vmem:[#allocation89_spill] sm:$0xff]  ;;  %v3701_v33 = vpop.permute.xlu1 %3700  ;;  %v9123_v6 = vld [vmem:[#allocation74_spill] sm:$0xff] }
 0x936   :  { %v3737_v45 = vsel %vm7978_vm6, %v3703_v38, 0.0  ;;  %4848 = vmatpush3.bf16.msra.mxu0 %v4275_v55  ;;  %v3676_v15 = vmul.f32 %v9113_v29, %v3592_v12  ;;  %v3822_v16 = vmul.f32 %v9114_v36, %v3738_v23  ;;  %v9115_v56 = vld [vmem:[#allocation61_spill] sm:$0xff]  ;;  %v4252_v55 = vmax.f32 %v4240_v31, 0.0  ;;  %v9120_v31 = vld [vmem:[#allocation118_spill] sm:$0xff] }
 0x937   :  { %v4145_v47 = vadd.f32 %v3987_v53, %v3841_v20  ;;  %4849 = vmatprep.subr.bf16.mxu0 %v8473_v9  ;;  %v3821_v51 = vmul.f32 %v9112_v50, %v3737_v45  ;;  %v3541_v13 = vadd.f32 %v3529_v5, %v3092_v57  ;;  %v5142_v49 = vunpack.i.l.bf16 %v9084_v26  ;;  %v9125_v50 = vld [vmem:[#allocation93_spill] sm:$0xff] }
 0x938   :  { %v3264_v27 = vmul.f32 %v9117_v48, %v3180_v2  ;;  %v3446_v35 = vadd.f32 %v3434_v32, %v2922_v52  ;;  %v3980_v60 = vadd.f32 %v3968_v19, %v3542_v39  ;;  %v5147_v3 = vunpack.i.l.bf16 %v7832_v43  ;;  %v9124_v19 = vld [vmem:[#allocation63_spill] sm:$0xff] }
 0x939   :  { %v4157_v21 = vadd.f32 %v4145_v47, %v4133_v28  ;;  %v3849_v34 = vpop.permute.xlu0 %3848  ;;  %v3833_v11 = vadd.f32 %v3821_v51, %v8050_v46  ;;  %v4030_v23 = vsel %vm8000_vm12, %v9118_v1, 0.0  ;;  %v2983_v10 = vsel %vm2982_vm15, %v5142_v49, %v9119_v14  ;;  %v3847_v28 = vpop.permute.xlu1 %3846  ;;  %v9121_v47 = vld [vmem:[#allocation94_spill] sm:$0xff] }
 0x93a   :  { %v3883_v30 = vsel %vm2706_vm8, %v3849_v34, 0.0  ;;  %v3688_v12 = vadd.f32 %v3676_v15, %v3264_v27  ;;  %v3834_v45 = vadd.f32 %v3822_v16, %v3446_v35  ;;  %v4264_v26 = vmin.f32 %v4252_v55, 6.0  ;;  %v9128_v16 = vld [vmem:[#allocation91_spill] sm:$0xff]  ;;  %v9131_v35 = vld [vmem:[#allocation70_spill] sm:$0xff] }
 0x93b   :  { %v4241_v22 = vadd.f32 %v9115_v56, %v4157_v21  ;;  %v3967_v20 = vmul.f32 %v9116_v61, %v3883_v30  ;;  %v5137_v8 = vunpack.i.l.bf16 %v7824_v0  ;;  %v3324_v46 = vsel %vm256_vm3, %v5147_v3, %v9120_v31  ;;  %v9134_v3 = vld [vmem:[#allocation108_spill] sm:$0xff] }
 0x93c   :  { %v4114_v43 = vmul.f32 %v9121_v47, %v4030_v23  ;;  %v3007_v54 = vsel %vm2705_vm4, %v2983_v10, 0.0  ;;  %v4138_v24 = vadd.f32 %v3980_v60, %v3834_v45  ;;  %v3348_v59 = vsel %vm7951_vm0, %v3324_v46, 0.0  ;;  %v9135_v23 = vld [vmem:[#allocation120_spill] sm:$0xff]  ;;  %v9136_v10 = vld [vmem:[#allocation121_spill] sm:$0xff] }
 0x93d   :  { %v3979_v53 = vadd.f32 %v3967_v20, %v3541_v13  ;;  %v4253_v38 = vmax.f32 %v4241_v22, 0.0  ;;  %v2812_v52 = vsel %vm2811_vm1, %v5137_v8, %v9122_v25  ;;  %v3882_v0 = vsel %vm2706_vm8, %v3847_v28, 0.0  ;;  %v5222_v25 = vld [vmem:[%s8576_s1 + $0x1a0] sm:$0xff]  }
 0x93e   :  { %v4126_v32 = vadd.f32 %v4114_v43, %v3688_v12  ;;  %v3091_v40 = vmul.f32 %v9123_v6, %v3007_v54  ;;  %v2836_v5 = vsel %vm7967_vm5, %v2812_v52, 0.0  ;;  %v3736_v2 = vsel %vm7978_vm6, %v3701_v33, 0.0  ;;  %v9129_v33 = vld [vmem:[#allocation100_spill] sm:$0xff] }
 0x93f   :  { %v4265_v62 = vmin.f32 %v4253_v38, 6.0  ;;  %v4137_v57 = vadd.f32 %v3979_v53, %v3833_v11  ;;  %v3432_v21 = vmul.f32 %v9124_v19, %v3348_v59  ;;  %v3528_v51 = vmul.f32 %v5233_v58, %v9125_v50  ;;  %v9133_v53 = vld [vmem:[#allocation107_spill] sm:$0xff]  ;;  %v5224_v50 = vld [vmem:[%s8576_s1 + $0x1b0] sm:$0xff]  }
 0x940   :  { %v4150_v42 = vadd.f32 %v4138_v24, %v4126_v32  ;;  %v3966_v34 = vmul.f32 %v9126_v41, %v3882_v0  ;;  %v2920_v7 = vmul.f32 %v9128_v16, %v2836_v5  ;;  %v3820_v30 = vmul.f32 %v9129_v33, %v3736_v2  ;;  %v9137_v2 = vld [vmem:[#allocation87_spill] sm:$0xff] }
 0x941   :  { %v4274_v63 = vpack.c.bf16 %v4265_v62, %v4264_v26  ;;  %v3540_v56 = vadd.f32 %v3528_v51, %v3091_v40  ;;  %v9132_v60 = vpack.c.bf16 %v9130_v4, %v9131_v35  ;;  %vm4293_vm3 = vcmask 785408   ;;  %v9138_v19 = vld [vmem:[#allocation11_spill] sm:$0xff]  ;;  %v5225_v51 = vld [vmem:[%s8576_s1 + $0x1c0] sm:$0xff]  }
 0x942   :  { %v3444_v61 = vadd.f32 %v3432_v21, %v2920_v7  ;;  %v5226_v41 = vld [vmem:[%s8576_s1 + $0x1b8] sm:$0xff]   ;;  %v4515_v35 = vld [vmem:[%s8578_s3] sm:$0xff]  ;;  %vm4610_vm15 = vcmask 15360  }
 0x943   :  { %4850 = vmatpush3.bf16.msra.mxu0 %v4274_v63  ;;  %v3978_v20 = vadd.f32 %v3966_v34, %v3540_v56 }
 0x944   :  { %4851 = vmatprep.subr.bf16.mxu0 %v8473_v9  ;;  %v3832_v11 = vadd.f32 %v3820_v30, %v3444_v61 }
 0x946   :  { %v4185_v39 = vpop.permute.xlu1 %4184  ;;  %v4190_v29 = vpop.permute.xlu0 %4189  ;;  %v4136_v26 = vadd.f32 %v3978_v20, %v3832_v11 }
 0x947   :  { %v4234_v15 = vadd.f32 %v4185_v39, %v4150_v42  ;;  %v4235_v36 = vadd.f32 %v4190_v29, %v8027_v17  ;;  %4852 = vmatpush3.bf16.msra.mxu0 %v9127_v44 }
 0x948   :  { %4853 = vmatprep.subr.bf16.mxu0 %v8473_v9 }
 0x949   :  { %v4246_v22 = vmax.f32 %v4234_v15, 0.0  ;;  %v4247_v13 = vmax.f32 %v4235_v36, 0.0 }
 0x94a   :  { %v3993_v55 = vpop.permute.xlu1 %3992  ;;  %v3995_v49 = vpop.permute.xlu0 %3994 }
 0x94b   :  { %v4258_v48 = vmin.f32 %v4246_v22, 6.0  ;;  %v4259_v27 = vmin.f32 %v4247_v13, 6.0  ;;  %v4028_v17 = vsel %vm8000_vm12, %v3993_v55, 0.0  ;;  %v4029_v18 = vsel %vm8000_vm12, %v3995_v49, 0.0  ;;  %4854 = vmatpush3.bf16.msra.mxu0 %v9132_v60 }
 0x94c   :  { %v4112_v38 = vmul.f32 %v9133_v53, %v4028_v17  ;;  %v4113_v12 = vmul.f32 %v9134_v3, %v4029_v18  ;;  %4855 = vmatprep.subr.bf16.mxu0 %v8473_v9  ;;  %v4516_v3 = vld [vmem:[%s8578_s3 + $0x8] sm:$0x3] }
 0x94d   :  { %v4271_v1 = vpack.c.bf16 %v4259_v27, %v4258_v48 }
 0x94e   :  { %v4124_v14 = vadd.f32 %v4112_v38, %v9135_v23  ;;  %v4125_v45 = vadd.f32 %v4113_v12, %v9136_v10  ;;  %v4175_v8 = vpop.permute.xlu1 %4174  ;;  %v4180_v31 = vpop.permute.xlu0 %4179 }
 0x94f   :  { %4856 = vmatpush3.bf16.msra.mxu0 %v4271_v1 }
 0x950   :  { %v4148_v37 = vadd.f32 %v4136_v26, %v4124_v14  ;;  %v4149_v62 = vadd.f32 %v4137_v57, %v4125_v45  ;;  %4857 = vmatprep.subr.bf16.mxu0 %v8473_v9  ;;  %v5223_v9 = vld [vmem:[%s8576_s1 + $0x1a8] sm:$0xff]  }
 0x951   :  { %4865 = vmatprep.mubr.msk.bf16.mxu1 %vm8926_vm11, %v5223_v9 }
 0x952   :  { %v4232_v46 = vadd.f32 %v4175_v8, %v4148_v37  ;;  %v4233_v28 = vadd.f32 %v4180_v31, %v4149_v62  ;;  %v4281_v52 = vpop.permute.xlu1 %4280  ;;  %v4286_v32 = vpop.permute.xlu0 %4285 }
 0x954   :  { %v4244_v47 = vmax.f32 %v4232_v46, 0.0  ;;  %v4245_v43 = vmax.f32 %v4233_v28, 0.0 }
 0x956   :  { %v4256_v54 = vmin.f32 %v4244_v47, 6.0  ;;  %v4257_v63 = vmin.f32 %v4245_v43, 6.0  ;;  %v4352_v34 = vpop.permute.xlu1 %4351  ;;  %v4357_v39 = vpop.permute.xlu0 %4356 }
 0x958   :  { %v4270_v24 = vpack.c.bf16 %v4257_v63, %v4256_v54 }
 0x95a   :  { %4858 = vmatpush3.bf16.msra.mxu0 %v4270_v24  ;;  %v4362_v36 = vpop.permute.xlu1 %4361  ;;  %v4367_v16 = vpop.permute.xlu0 %4366 }
 0x95d   :  { %4860 = vmatmul.mubr.msk.bf16.vlgmr.msra.gmra.mxu0 %vm4293_vm3, %v5222_v25 }
 0x95e   :  { %4885 = vmatprep.mubr.msk.f32.mxu0 %vm2666_vm10, %v4515_v35  ;;  %v4527_v12 = vpop.permute.xlu0 %4526  ;;  %v4522_v14 = vpop.permute.xlu1 %4521 }
 0xa1d   :  { %v4331_v57 = vpop.f32.mrf.mxu0 }
 0xa1e   :  { %v4332_v0 = vadd.f32 %v4331_v57, %v4281_v52 }
 0xa1f   :  { %v4861_v59 = vpop.f32.mrf.mxu0 }
 0xa20   :  { %v4338_v42 = vadd.f32 %v4332_v0, %v9137_v2 }
 0xa21   :  { %v4334_v6 = vpop.f32.mrf.mxu0 }
 0xa22   :  { %v4335_v40 = vadd.f32 %v4334_v6, %v4286_v32 }
 0xa23   :  { %v4862_v5 = vpop.f32.mrf.mxu0 }
 0xa24   :  { %v4339_v21 = vadd.f32 %v4335_v40, %v9138_v19 }
 0xa26   :  { %v4344_v58 = vpack.c.bf16 %v4339_v21, %v4338_v42 }
 0xa28   :  { %4863 = vmatprep.subr.bf16.mxu1 %v4344_v58 }
 0xa29   :  { %4864 = vmatpush3.bf16.msra.mxu1 %v4344_v58 }
 0xa2a   :  { %4869 = vmatprep.subr.bf16.mxu1 %v5225_v51 }
 0xa2c   :  { %4866 = vmatmul.mubr.msk.bf16.vlgmr.msra.gmra.mxu1 %vm9139_vm13, %v5224_v50 }
 0xa2d   :  { %4870 = vmatpush3.bf16.msra.mxu1 %v5225_v51 }
 0xa2e   :  { %4871 = vmatprep.subr.bf16.mxu1 %v5226_v41 }
 0xa31   :  { %4872 = vmatpush3.bf16.msra.mxu1 %v5226_v41 }
 0xaec   :  { %v4867_v29 = vpop.f32.mrf.mxu1 }
 0xaed   :  { %v4428_v7 = vadd.f32 %v4867_v29, %v4362_v36 }
 0xaee   :  { %v4419_v15 = vpop.f32.mrf.mxu1 }
 0xaef   :  { %v4420_v44 = vadd.f32 %v4419_v15, %v4352_v34  ;;  %v4436_v20 = vmax.f32 %v4428_v7, 0.0 }
 0xaf0   :  { %v4868_v33 = vpop.f32.mrf.mxu1 }
 0xaf1   :  { %v4431_v30 = vadd.f32 %v4868_v33, %v4367_v16  ;;  %v4434_v22 = vmax.f32 %v4420_v44, 0.0  ;;  %v4440_v17 = vmin.f32 %v4436_v20, 6.0 }
 0xaf2   :  { %v4422_v56 = vpop.f32.mrf.mxu1 }
 0xaf3   :  { %v4437_v13 = vmax.f32 %v4431_v30, 0.0  ;;  %v4423_v61 = vadd.f32 %v4422_v56, %v4357_v39  ;;  %v4438_v48 = vmin.f32 %v4434_v22, 6.0 }
 0xaf5   :  { %v4435_v55 = vmax.f32 %v4423_v61, 0.0  ;;  %v4441_v49 = vmin.f32 %v4437_v13, 6.0 }
 0xaf7   :  { %v4439_v27 = vmin.f32 %v4435_v55, 6.0  ;;  %v4443_v4 = vpack.c.bf16 %v4441_v49, %v4440_v17 }
 0xaf9   :  { %v4442_v18 = vpack.c.bf16 %v4439_v27, %v4438_v48 }
 0xafb   :  { %4873 = vmatprep.mubr.msk.bf16.mxu1 %vm2666_vm10, %v4442_v18 }
 0xafc   :  { %4874 = vmatmul.mubr.msk.bf16.vlgmr.msra.gmra.mxu1 %vm2666_vm10, %v4443_v4 }
 0xbbc   :  { %v4875_v60 = vpop.f32.mrf.mxu1 }
 0xbbe   :  { %v4500_v11 = vpop.f32.mrf.mxu1 }
 0xbc0   :  { %v4876_v53 = vpop.f32.mrf.mxu1 }
 0xbc1   :  { %4877 = vmatprep.subr.mxu0 %v4876_v53 }
 0xbc2   :  { %4878 = vmatpush3.msra.mxu0 %v4876_v53  ;;  %v4503_v38 = vpop.f32.mrf.mxu1 }
 0xbc3   :  { %4879 = vmatprep.subr.mxu0 %v4875_v60 }
 0xbc4   :  { %4880 = vmatpush3.msra.mxu0 %v4875_v60 }
 0xbc5   :  { %4881 = vmatprep.subr.mxu0 %v4503_v38 }
 0xbc6   :  { %4882 = vmatpush3.msra.mxu0 %v4503_v38 }
 0xbc7   :  { %4883 = vmatprep.subr.mxu0 %v4500_v11 }
 0xbc8   :  { %4884 = vmatpush3.msra.mxu0 %v4500_v11 }
 0xbc9   :  { %4886 = vmatmul.mubr.msk.f32.vlgmr.msra.gmra.mxu0 %vm2666_vm10, %v4516_v3 }
 0xc89   :  { %v4887_v1 = vpop.f32.mrf.mxu0 }
 0xc8a   :  { %v4607_v23 = vadd.f32 %v4887_v1, %v4527_v12 }
 0xc8b   :  { %v4601_v10 = vpop.f32.mrf.mxu0 }
 0xc8c   :  { %4613 = vst.msk [vmem:[%s8579_s4 + $0x8] sm:$0x3] %vm4612_vm14, %v4607_v23  ;;  %v4602_v45 = vadd.f32 %v4601_v10, %v4522_v14 }
 0xc8e   :  { %4611 = vst.msk [vmem:[%s8579_s4] sm:$0xff] %vm4610_vm15, %v4602_v45 }

</bundles_post_ra>
